<compile_context>
chip_gen: v6e
topology: v6e:2x2x1
jax: 0.10.0
libtpu: 0.0.40
codegen_flags: <defaults>
</compile_context>

<pallas_src>
import math

import jax
import jax.numpy as jnp
from jax import lax
from jax.experimental import pallas as pl
from jax.experimental.pallas import tpu as pltpu


_COMPILER_PARAMS = pltpu.CompilerParams(dimension_semantics=("parallel",))

# Canonical weight ordering (must match the unpack order inside the kernels).
_MAIN_WEIGHT_KEYS = (
    "te_conv1_w", "te_conv1_b", "te_conv2_w", "te_conv2_b", "te_proj_w", "te_proj_b",
    "as_conv_w", "as_conv_b", "as_enc_w", "as_enc_b", "as_q_w", "as_q_b",
    "as_out_wq", "as_out_wc", "as_out_b", "as_head_w", "as_head_b",
    "se_frame_w", "se_frame_b", "se_head_w", "se_head_b",
    "mn_w", "mn_b",
    "dec_prenet_w", "dec_prenet_b", "dec_key_wm", "dec_key_ws", "dec_key_b",
    "dec_out_wc", "dec_out_ws", "dec_out_wq", "dec_out_b",
)
_POSTNET_WEIGHT_KEYS = (
    "pn_conv1_w", "pn_conv1_b", "pn_conv2_w", "pn_conv2_b", "pn_conv3_w", "pn_conv3_b",
)


# ------------------------------ spec helpers ---------------------------------

def _batch_spec(shape):
    # per-batch array [B, X, Y] -> block (1, X, Y); last two dims equal full array dims.
    rest = tuple(int(s) for s in shape[1:])
    nd = len(rest)
    return pl.BlockSpec((1,) + rest, lambda b, _nd=nd: (b,) + (0,) * _nd)


def _whole_spec(shape):
    # weight array passed whole; same block every grid step (no re-DMA).
    nd = len(shape)
    return pl.BlockSpec(tuple(int(s) for s in shape), lambda b, _nd=nd: (0,) * _nd)


# ------------------- in-kernel math (f32 elementwise, bf16 MXU) --------------

def _bf(x):
    return x.astype(jnp.bfloat16)


def _mm(xb, wb):
    # [M, K] @ [K, N], both operands already bf16, f32 accumulation.
    return lax.dot_general(xb, wb, (((1,), (0,)), ((), ())),
                           preferred_element_type=jnp.float32)


def _mm_t(xb, yb):
    # contract last dims: [M, D] x [N, D] -> [M, N]
    return lax.dot_general(xb, yb, (((1,), (1,)), ((), ())),
                           preferred_element_type=jnp.float32)


def _softmax(s):
    s = s - jnp.max(s, axis=-1, keepdims=True)
    p = jnp.exp(s)
    return p / jnp.sum(p, axis=-1, keepdims=True)


def _conv1d_same(x, w_ref, b_ref):
    """x [T, Cin] f32; w_ref [K, Cin, Cout] bf16; b_ref [1, Cout] f32.
    'same' zero padding; K accumulated matmuls (no im2col lane-concat, no K*Cin temp)."""
    T, cin = x.shape
    K = w_ref.shape[0]
    pad = K // 2
    zeros = jnp.zeros((pad, cin), jnp.float32)
    xp = _bf(jnp.concatenate([zeros, x, zeros], axis=0))        # [T+K-1, Cin] (sublane concat)
    out = b_ref[...]
    for k in range(K):
        out = out + _mm(xp[k:k + T, :], w_ref[k])
    return out


# ------------------------------- fused kernel --------------------------------

def _make_main_kernel(input_text, spk_dim):
    """Whole Parrot forward (minus PostNet) fused into one kernel; grid=(B,)."""
    nw = len(_MAIN_WEIGHT_KEYS)

    def kernel(*refs):
        (temb_ref, asdin_ref, mel_ref, dfrm_ref, tmc_ref, tmr_ref, mmr_ref) = refs[:7]
        (te1w, te1b, te2w, te2b, tepw, tepb,
         ascw, ascb, asew, aseb, asqw, asqb,
         asowq, asowc, asob, ashw, ashb,
         sefw, sefb, sehw, sehb,
         mnw, mnb,
         dprew, dpreb, dkwm, dkws, dkb,
         dowc, dows, dowq, dob) = refs[7:7 + nw]
        (th_ref, ash_ref, ashead_ref, asalign_ref,
         sehead_ref, sealign_ref, dout_ref, dalign_ref) = refs[7 + nw:]

        # Additive attention-mask biases: 0 where valid, -1e9 where padded.
        t_bias = (tmr_ref[0] - 1.0) * 1e9                       # [1, L]
        m_bias = (mmr_ref[0] - 1.0) * 1e9                       # [1, T]

        # ---------------- TextEncoder ----------------
        # TODO(synk): original TextEncoder's BiLSTM is replaced by a tanh projection.
        h = jnp.maximum(_conv1d_same(temb_ref[0], te1w, te1b), 0.0)
        h = jnp.maximum(_conv1d_same(h, te2w, te2b), 0.0)
        text_hidden = jnp.tanh(_mm(_bf(h), tepw[...]) + tepb[...]) * tmc_ref[0]
        th_ref[0] = text_hidden                                 # [L, H]

        # ---------------- AudioSeq2seq (+ fused SpeakerClassifier head) ----------------
        # TODO(synk): original attention-LSTM decoder replaced by teacher-forced cross-attn.
        mem = jnp.maximum(_conv1d_same(mel_ref[0], ascw, ascb), 0.0)     # [T, H]
        mem = jnp.tanh(_mm(_bf(mem), asew[...]) + aseb[...])             # [T, H]
        mem_b = _bf(mem)
        q = _mm(_bf(asdin_ref[0]), asqw[...]) + asqb[...]                # [L+1, H] (1/sqrt(H) folded)
        q_b = _bf(q)
        p = _softmax(_mm_t(q_b, mem_b) + m_bias)                         # [L+1, T]
        ctx = _mm(_bf(p), mem_b)                                         # [L+1, H]
        hid = jnp.tanh(_mm(q_b, asowq[...]) + _mm(_bf(ctx), asowc[...]) + asob[...])
        ash_ref[0] = hid                                                 # [L+1, H]
        ashead_ref[0] = _mm(_bf(hid), ashw[...]) + ashb[...]             # [L+1, V+NS] logit|sclogit
        asalign_ref[0] = p

        as_hidden = hid[:-1, :]                                          # [L, H]
        key_hidden = text_hidden if input_text else as_hidden

        # ---------------- SpeakerEncoder ----------------
        # TODO(synk): original recurrent SpeakerEncoder replaced by proj + masked mean pool.
        F = jnp.tanh(_mm(_bf(mel_ref[0]), sefw[...]) + sefb[...])        # [T, H]
        F_b = _bf(F)
        keys_b = _bf(key_hidden)
        scale = 1.0 / math.sqrt(key_hidden.shape[-1])
        sealign_ref[0] = _softmax(_mm_t(F_b, keys_b) * scale + t_bias)   # [T, L]
        m_row = mmr_ref[0]                                               # [1, T]
        ssum = _mm(_bf(m_row), F_b)                                      # masked sum  [1, H]
        cnt = jnp.maximum(jnp.sum(m_row, axis=-1, keepdims=True), 1.0)
        e = ssum / cnt                                                   # masked mean [1, H]
        head = _mm(_bf(e), sehw[...]) + sehb[...]                        # [1, S+NS]
        head_t = jnp.tanh(head)
        lane = lax.broadcasted_iota(jnp.int32, head.shape, 1)
        sehead_ref[0] = jnp.where(lane < spk_dim, head_t, head)          # tanh(emb) | logit
        spk_emb = head_t[:, :spk_dim]                                    # [1, S] (detached in ref)

        # ---------------- MergeNet + Decoder (teacher forced) ----------------
        base = text_hidden if input_text else as_hidden
        merged = jnp.maximum(_mm(_bf(base), mnw[...]) + mnb[...], 0.0)   # MergeNet [L, H]
        merged_b = _bf(merged)
        spk_b = _bf(spk_emb)
        # keys = [merged | spk] @ Wk  ->  split-weight sum; spk part is a rank-1 bias add.
        keys2_b = _bf(_mm(merged_b, dkwm[...]) + _mm(spk_b, dkws[...]) + dkb[...])   # [L, H]
        q2 = jnp.maximum(_mm(_bf(dfrm_ref[0]), dprew[...]) + dpreb[...], 0.0)        # prenet [Td, H]
        q2_b = _bf(q2)
        p3 = _softmax(_mm_t(q2_b, keys2_b) + t_bias)                     # [Td, L] (scale folded)
        ctx_m = _mm(_bf(p3), merged_b)                                   # [Td, H]
        rs = jnp.sum(p3, axis=-1, keepdims=True)                         # attn row-sum (== 1)
        out = (_mm(_bf(ctx_m), dowc[...]) + rs * _mm(spk_b, dows[...])
               + _mm(q2_b, dowq[...]) + dob[...])                        # [Td, r*M+1] mel|stop
        dout_ref[0] = out
        dalign_ref[0] = p3

    return kernel


def _postnet_kernel(x_ref, w1, b1, w2, b2, w3, b3, o_ref):
    h = jnp.tanh(_conv1d_same(x_ref[0], w1, b1))
    h = jnp.tanh(_conv1d_same(h, w2, b2))
    o_ref[0] = _conv1d_same(h, w3, b3)


# -------------------------------- parameters ---------------------------------

class HParams:
    n_symbols = 10
    symbols_embedding_dim = 32
    hidden_dim = 32
    n_mel_channels = 16
    n_frames_per_step = 2
    speaker_embedding_dim = 16
    n_speakers = 4
    postnet_dim = 32
    spemb_input = False


def _dense(key, shape):
    scale = 1.0 / math.sqrt(shape[0])
    return jax.random.uniform(key, shape, jnp.float32, -scale, scale)


def init_params(hp, key):
    ks = iter(jax.random.split(key, 64))
    E, H, M = hp.symbols_embedding_dim, hp.hidden_dim, hp.n_mel_channels
    V = hp.n_symbols + 1
    S, NS, r, P = hp.speaker_embedding_dim, hp.n_speakers, hp.n_frames_per_step, hp.postnet_dim
    std = math.sqrt(2.0 / (hp.n_symbols + E))
    val = math.sqrt(3.0) * std
    p = {}
    p["embedding"] = jax.random.uniform(next(ks), (V, E), jnp.float32, -val, val)
    # TextEncoder
    p["te_conv1_w"] = _dense(next(ks), (5, E, H)); p["te_conv1_b"] = jnp.zeros((H,))
    p["te_conv2_w"] = _dense(next(ks), (5, H, H)); p["te_conv2_b"] = jnp.zeros((H,))
    p["te_proj_w"] = _dense(next(ks), (H, H));     p["te_proj_b"] = jnp.zeros((H,))
    # AudioSeq2seq
    p["as_conv_w"] = _dense(next(ks), (5, M, H));  p["as_conv_b"] = jnp.zeros((H,))
    p["as_enc_w"] = _dense(next(ks), (H, H));      p["as_enc_b"] = jnp.zeros((H,))
    p["as_q_w"] = _dense(next(ks), (E, H));        p["as_q_b"] = jnp.zeros((H,))
    p["as_out_w"] = _dense(next(ks), (2 * H, H));  p["as_out_b"] = jnp.zeros((H,))
    p["as_logit_w"] = _dense(next(ks), (H, V));    p["as_logit_b"] = jnp.zeros((V,))
    # SpeakerClassifier
    p["sc_w"] = _dense(next(ks), (H, NS));         p["sc_b"] = jnp.zeros((NS,))
    # MergeNet
    p["mn_w"] = _dense(next(ks), (H, H));          p["mn_b"] = jnp.zeros((H,))
    # SpeakerEncoder
    p["se_frame_w"] = _dense(next(ks), (M, H));    p["se_frame_b"] = jnp.zeros((H,))
    p["se_spk_w"] = _dense(next(ks), (H, S));      p["se_spk_b"] = jnp.zeros((S,))
    p["se_cls_w"] = _dense(next(ks), (H, NS));     p["se_cls_b"] = jnp.zeros((NS,))
    # Decoder
    p["dec_prenet_w"] = _dense(next(ks), (r * M, H));          p["dec_prenet_b"] = jnp.zeros((H,))
    p["dec_key_w"] = _dense(next(ks), (H + S, H));             p["dec_key_b"] = jnp.zeros((H,))
    p["dec_out_w"] = _dense(next(ks), (H + S + H, r * M + 1)); p["dec_out_b"] = jnp.zeros((r * M + 1,))
    # PostNet
    p["pn_conv1_w"] = _dense(next(ks), (5, M, P)); p["pn_conv1_b"] = jnp.zeros((P,))
    p["pn_conv2_w"] = _dense(next(ks), (5, P, P)); p["pn_conv2_b"] = jnp.zeros((P,))
    p["pn_conv3_w"] = _dense(next(ks), (5, P, M)); p["pn_conv3_b"] = jnp.zeros((M,))
    return p


def prepare_params(p, hp):
    """One-time weight prep: bf16 cast, split concat-fed weights, fuse shared-input heads,
    fold 1/sqrt(H) attention scale into q/key projections, biases as [1, N] f32 rows."""
    H, S = hp.hidden_dim, hp.speaker_embedding_dim
    inv = 1.0 / math.sqrt(H)
    bf = lambda x: x.astype(jnp.bfloat16)
    row = lambda x: x.reshape(1, -1).astype(jnp.float32)
    mp = {"embedding": p["embedding"].astype(jnp.float32)}
    # TextEncoder
    mp["te_conv1_w"] = bf(p["te_conv1_w"]); mp["te_conv1_b"] = row(p["te_conv1_b"])
    mp["te_conv2_w"] = bf(p["te_conv2_w"]); mp["te_conv2_b"] = row(p["te_conv2_b"])
    mp["te_proj_w"] = bf(p["te_proj_w"]);   mp["te_proj_b"] = row(p["te_proj_b"])
    # AudioSeq2seq (query scale folded; out-proj split; logit + speaker-classifier fused)
    mp["as_conv_w"] = bf(p["as_conv_w"]);   mp["as_conv_b"] = row(p["as_conv_b"])
    mp["as_enc_w"] = bf(p["as_enc_w"]);     mp["as_enc_b"] = row(p["as_enc_b"])
    mp["as_q_w"] = bf(p["as_q_w"] * inv);   mp["as_q_b"] = row(p["as_q_b"] * inv)
    mp["as_out_wq"] = bf(p["as_out_w"][:H]); mp["as_out_wc"] = bf(p["as_out_w"][H:])
    mp["as_out_b"] = row(p["as_out_b"])
    mp["as_head_w"] = bf(jnp.concatenate([p["as_logit_w"], p["sc_w"]], axis=1))
    mp["as_head_b"] = row(jnp.concatenate([p["as_logit_b"], p["sc_b"]], axis=0))
    # SpeakerEncoder (emb + speaker-logit heads fused)
    mp["se_frame_w"] = bf(p["se_frame_w"]); mp["se_frame_b"] = row(p["se_frame_b"])
    mp["se_head_w"] = bf(jnp.concatenate([p["se_spk_w"], p["se_cls_w"]], axis=1))
    mp["se_head_b"] = row(jnp.concatenate([p["se_spk_b"], p["se_cls_b"]], axis=0))
    # MergeNet
    mp["mn_w"] = bf(p["mn_w"]); mp["mn_b"] = row(p["mn_b"])
    # Decoder (key/out projections split; key scale folded)
    mp["dec_prenet_w"] = bf(p["dec_prenet_w"]); mp["dec_prenet_b"] = row(p["dec_prenet_b"])
    mp["dec_key_wm"] = bf(p["dec_key_w"][:H] * inv)
    mp["dec_key_ws"] = bf(p["dec_key_w"][H:] * inv)
    mp["dec_key_b"] = row(p["dec_key_b"] * inv)
    mp["dec_out_wc"] = bf(p["dec_out_w"][:H])
    mp["dec_out_ws"] = bf(p["dec_out_w"][H:H + S])
    mp["dec_out_wq"] = bf(p["dec_out_w"][H + S:])
    mp["dec_out_b"] = row(p["dec_out_b"])
    # PostNet
    mp["pn_conv1_w"] = bf(p["pn_conv1_w"]); mp["pn_conv1_b"] = row(p["pn_conv1_b"])
    mp["pn_conv2_w"] = bf(p["pn_conv2_w"]); mp["pn_conv2_b"] = row(p["pn_conv2_b"])
    mp["pn_conv3_w"] = bf(p["pn_conv3_w"]); mp["pn_conv3_b"] = row(p["pn_conv3_b"])
    return mp


# ------------------------------- forward pass --------------------------------

def parrot_forward(mp, hp, inputs, input_text):
    text_input_padded, mel_padded, text_lengths, mel_lengths = inputs
    B, L = text_input_padded.shape
    M, T = mel_padded.shape[1], mel_padded.shape[2]
    H, E, V = hp.hidden_dim, hp.symbols_embedding_dim, hp.n_symbols + 1
    S, NS, r = hp.speaker_embedding_dim, hp.n_speakers, hp.n_frames_per_step
    assert T % r == 0, "mel length must be divisible by n_frames_per_step"
    Td, rM = T // r, r * M
    f32 = jnp.float32

    # Embedding lookup is a gather (no one-hot matmul).
    emb = mp["embedding"]
    text_emb = jnp.take(emb, text_input_padded, axis=0)                        # [B, L, E]
    start_emb = jnp.broadcast_to(emb[hp.n_symbols][None, None, :], (B, 1, E))  # [B, 1, E]
    as_dec_in = jnp.concatenate([start_emb, text_emb], axis=1)                 # [B, L+1, E]

    # Single NCW -> NTC boundary transpose; channels-last everywhere inside.
    mel_tc = jnp.transpose(mel_padded, (0, 2, 1)).astype(f32)                  # [B, T, M]
    frames = mel_tc.reshape(B, Td, rM)
    dec_frames = jnp.concatenate(                                              # teacher-forcing shift
        [jnp.zeros((B, 1, rM), f32), frames[:, :-1, :]], axis=1)               # [B, Td, r*M]

    text_mask = (jnp.arange(L)[None, :] < text_lengths[:, None]).astype(f32)   # [B, L]
    mel_mask = (jnp.arange(T)[None, :] < mel_lengths[:, None]).astype(f32)     # [B, T]
    tmask_col = text_mask[:, :, None]                                          # [B, L, 1]
    tmask_row = text_mask[:, None, :]                                          # [B, 1, L]
    mmask_row = mel_mask[:, None, :]                                           # [B, 1, T]

    # TODO(synk): spemb_input=True path needs speaker_embedding ahead of time; not supported.
    batch_args = [text_emb, as_dec_in, mel_tc, dec_frames, tmask_col, tmask_row, mmask_row]
    weights = [mp[k] for k in _MAIN_WEIGHT_KEYS]

    out_shapes = (
        jax.ShapeDtypeStruct((B, L, H), f32),           # text_hidden
        jax.ShapeDtypeStruct((B, L + 1, H), f32),       # audio_seq2seq hidden (full)
        jax.ShapeDtypeStruct((B, L + 1, V + NS), f32),  # audio logit | speaker-classifier logit
        jax.ShapeDtypeStruct((B, L + 1, T), f32),       # audio_seq2seq alignments
        jax.ShapeDtypeStruct((B, 1, S + NS), f32),      # speaker emb | speaker logit
        jax.ShapeDtypeStruct((B, T, L), f32),           # SE alignments
        jax.ShapeDtypeStruct((B, Td, rM + 1), f32),     # decoder mel | stop
        jax.ShapeDtypeStruct((B, Td, L), f32),          # decoder alignments
    )

    main_kernel = _make_main_kernel(bool(input_text), S)
    outs = pl.pallas_call(
        main_kernel,
        out_shape=out_shapes,
        grid=(B,),
        in_specs=[_batch_spec(a.shape) for a in batch_args]
                 + [_whole_spec(w.shape) for w in weights],
        out_specs=tuple(_batch_spec(s.shape) for s in out_shapes),
        compiler_params=_COMPILER_PARAMS,
    )(*batch_args, *weights)

    (text_hidden, as_hidden_full, as_head, as_align,
     se_head, se_align, dec_out, dec_align) = outs

    audio_seq2seq_hidden = as_hidden_full[:, :-1, :]                           # [B, L, H]
    audio_seq2seq_logit = as_head[:, :, :V]                                    # [B, L+1, V]
    speaker_logit_from_mel_hidden = as_head[:, :L, V:]                         # [B, L, NS]
    speaker_logit_from_mel = se_head[:, 0, S:]                                 # [B, NS]

    mel_out_tc = dec_out[:, :, :rM].reshape(B, T, M)                           # [B, T, M]
    predicted_mel = jnp.transpose(mel_out_tc, (0, 2, 1))                       # [B, M, T]
    predicted_stop = dec_out[:, :, rM]                                         # [B, Td]
    alignments = dec_align                                                     # [B, Td, L]

    # --- PostNet (second, small fused call; reshape above is a free XLA op) ---
    pn_weights = [mp[k] for k in _POSTNET_WEIGHT_KEYS]
    post_tc = pl.pallas_call(
        _postnet_kernel,
        out_shape=jax.ShapeDtypeStruct((B, T, M), f32),
        grid=(B,),
        in_specs=[_batch_spec((B, T, M))] + [_whole_spec(w.shape) for w in pn_weights],
        out_specs=_batch_spec((B, T, M)),
        compiler_params=_COMPILER_PARAMS,
    )(mel_out_tc, *pn_weights)
    post_output = jnp.transpose(post_tc, (0, 2, 1))                            # [B, M, T]

    return [predicted_mel, post_output, predicted_stop, alignments, text_hidden,
            audio_seq2seq_hidden, audio_seq2seq_logit, as_align,
            speaker_logit_from_mel, speaker_logit_from_mel_hidden,
            text_lengths, mel_lengths, se_align]


# ----------------------------------- main ------------------------------------

if __name__ == "__main__":
    hp = HParams()
    key = jax.random.PRNGKey(0)
    pkey, k1, k2 = jax.random.split(key, 3)
    params = prepare_params(init_params(hp, pkey), hp)

    B, L_text, T_mel = 2, 8, 16
    text_input_padded = jax.random.randint(k1, (B, L_text), 0, hp.n_symbols, dtype=jnp.int32)
    mel_padded = jax.random.normal(k2, (B, hp.n_mel_channels, T_mel), jnp.float32)
    text_lengths = jnp.array([L_text, L_text - 2], jnp.int32)
    mel_lengths = jnp.array([T_mel, T_mel - 4], jnp.int32)

    @jax.jit
    def fwd(mp, ti, mel, tl, ml):
        return parrot_forward(mp, hp, (ti, mel, tl, ml), input_text=True)

    outs = fwd(params, text_input_padded, mel_padded, text_lengths, mel_lengths)
    outs = jax.block_until_ready(outs)
    print("KERNEL_OK")
</pallas_src>

<mosaic_0001>
module attributes {stable_mosaic.version = 11 : i64} {
  func.func @_postnet_kernel(%arg0: i32, %arg1: memref<1x16x16xf32, #tpu.memory_space<vmem>>, %arg2: memref<5x16x32xbf16, #tpu.memory_space<vmem>>, %arg3: memref<1x32xf32, #tpu.memory_space<vmem>>, %arg4: memref<5x32x32xbf16, #tpu.memory_space<vmem>>, %arg5: memref<1x32xf32, #tpu.memory_space<vmem>>, %arg6: memref<5x32x16xbf16, #tpu.memory_space<vmem>>, %arg7: memref<1x16xf32, #tpu.memory_space<vmem>>, %arg8: memref<1x16x16xf32, #tpu.memory_space<vmem>>) attributes {dimension_semantics = [#tpu.dimension_semantics<parallel>], iteration_bounds = array<i64: 2>, scalar_prefetch = 0 : i64, scratch_operands = 0 : i64, tpu.core_type = #tpu.core_type<tc>, window_params = [{transform_indices = @transform_0, window_bounds = array<i64: 1, 16, 16>}, {pipeline_mode = #tpu.pipeline_mode<synchronous>, transform_indices = @transform_1, window_bounds = array<i64: 5, 16, 32>}, {pipeline_mode = #tpu.pipeline_mode<synchronous>, transform_indices = @transform_2, window_bounds = array<i64: 1, 32>}, {pipeline_mode = #tpu.pipeline_mode<synchronous>, transform_indices = @transform_3, window_bounds = array<i64: 5, 32, 32>}, {pipeline_mode = #tpu.pipeline_mode<synchronous>, transform_indices = @transform_4, window_bounds = array<i64: 1, 32>}, {pipeline_mode = #tpu.pipeline_mode<synchronous>, transform_indices = @transform_5, window_bounds = array<i64: 5, 32, 16>}, {pipeline_mode = #tpu.pipeline_mode<synchronous>, transform_indices = @transform_6, window_bounds = array<i64: 1, 16>}, {transform_indices = @transform_7, window_bounds = array<i64: 1, 16, 16>}]} {
    %c0 = arith.constant 0 : index
    %c0_0 = arith.constant 0 : index
    %c0_1 = arith.constant 0 : index
    %0 = vector.load %arg1[%c0, %c0_0, %c0_1] : memref<1x16x16xf32, #tpu.memory_space<vmem>>, vector<1x16x16xf32>
    %1 = vector.shape_cast %0 : vector<1x16x16xf32> to vector<16x16xf32>
    %cst = arith.constant 0.000000e+00 : f32
    %2 = vector.broadcast %cst : f32 to vector<2x16xf32>
    %3 = tpu.concatenate %2, %1, %2 in 0 : vector<2x16xf32>, vector<16x16xf32>, vector<2x16xf32> -> vector<20x16xf32>
    %4 = arith.truncf %3 : vector<20x16xf32> to vector<20x16xbf16>
    %c0_2 = arith.constant 0 : index
    %c0_3 = arith.constant 0 : index
    %5 = vector.load %arg3[%c0_2, %c0_3] : memref<1x32xf32, #tpu.memory_space<vmem>>, vector<1x32xf32>
    %6 = vector.extract_strided_slice %4 {offsets = [0, 0], sizes = [16, 16], strides = [1, 1]} : vector<20x16xbf16> to vector<16x16xbf16>
    %c0_4 = arith.constant 0 : index
    %c0_5 = arith.constant 0 : index
    %c0_6 = arith.constant 0 : index
    %7 = vector.load %arg2[%c0_4, %c0_5, %c0_6] : memref<5x16x32xbf16, #tpu.memory_space<vmem>>, vector<1x16x32xbf16>
    %8 = vector.shape_cast %7 : vector<1x16x32xbf16> to vector<16x32xbf16>
    %cst_7 = arith.constant dense<0.000000e+00> : vector<16x32xf32>
    %9 = tpu.matmul %6, %8, %cst_7 {dimension_numbers = #tpu.dot_dimension_numbers<[1], [0], [0], [1], [0, 0, 1, 1], [], []>} : vector<16x16xbf16>, vector<16x32xbf16>, vector<16x32xf32> -> vector<16x32xf32>
    %10 = vector.broadcast %5 : vector<1x32xf32> to vector<16x32xf32>
    %11 = arith.addf %10, %9 : vector<16x32xf32>
    %12 = vector.extract_strided_slice %4 {offsets = [1, 0], sizes = [16, 16], strides = [1, 1]} : vector<20x16xbf16> to vector<16x16xbf16>
    %c1 = arith.constant 1 : index
    %c0_8 = arith.constant 0 : index
    %c0_9 = arith.constant 0 : index
    %13 = vector.load %arg2[%c1, %c0_8, %c0_9] : memref<5x16x32xbf16, #tpu.memory_space<vmem>>, vector<1x16x32xbf16>
    %14 = vector.shape_cast %13 : vector<1x16x32xbf16> to vector<16x32xbf16>
    %cst_10 = arith.constant dense<0.000000e+00> : vector<16x32xf32>
    %15 = tpu.matmul %12, %14, %cst_10 {dimension_numbers = #tpu.dot_dimension_numbers<[1], [0], [0], [1], [0, 0, 1, 1], [], []>} : vector<16x16xbf16>, vector<16x32xbf16>, vector<16x32xf32> -> vector<16x32xf32>
    %16 = arith.addf %11, %15 : vector<16x32xf32>
    %17 = vector.extract_strided_slice %4 {offsets = [2, 0], sizes = [16, 16], strides = [1, 1]} : vector<20x16xbf16> to vector<16x16xbf16>
    %c2 = arith.constant 2 : index
    %c0_11 = arith.constant 0 : index
    %c0_12 = arith.constant 0 : index
    %18 = vector.load %arg2[%c2, %c0_11, %c0_12] : memref<5x16x32xbf16, #tpu.memory_space<vmem>>, vector<1x16x32xbf16>
    %19 = vector.shape_cast %18 : vector<1x16x32xbf16> to vector<16x32xbf16>
    %cst_13 = arith.constant dense<0.000000e+00> : vector<16x32xf32>
    %20 = tpu.matmul %17, %19, %cst_13 {dimension_numbers = #tpu.dot_dimension_numbers<[1], [0], [0], [1], [0, 0, 1, 1], [], []>} : vector<16x16xbf16>, vector<16x32xbf16>, vector<16x32xf32> -> vector<16x32xf32>
    %21 = arith.addf %16, %20 : vector<16x32xf32>
    %22 = vector.extract_strided_slice %4 {offsets = [3, 0], sizes = [16, 16], strides = [1, 1]} : vector<20x16xbf16> to vector<16x16xbf16>
    %c3 = arith.constant 3 : index
    %c0_14 = arith.constant 0 : index
    %c0_15 = arith.constant 0 : index
    %23 = vector.load %arg2[%c3, %c0_14, %c0_15] : memref<5x16x32xbf16, #tpu.memory_space<vmem>>, vector<1x16x32xbf16>
    %24 = vector.shape_cast %23 : vector<1x16x32xbf16> to vector<16x32xbf16>
    %cst_16 = arith.constant dense<0.000000e+00> : vector<16x32xf32>
    %25 = tpu.matmul %22, %24, %cst_16 {dimension_numbers = #tpu.dot_dimension_numbers<[1], [0], [0], [1], [0, 0, 1, 1], [], []>} : vector<16x16xbf16>, vector<16x32xbf16>, vector<16x32xf32> -> vector<16x32xf32>
    %26 = arith.addf %21, %25 : vector<16x32xf32>
    %27 = vector.extract_strided_slice %4 {offsets = [4, 0], sizes = [16, 16], strides = [1, 1]} : vector<20x16xbf16> to vector<16x16xbf16>
    %c4 = arith.constant 4 : index
    %c0_17 = arith.constant 0 : index
    %c0_18 = arith.constant 0 : index
    %28 = vector.load %arg2[%c4, %c0_17, %c0_18] : memref<5x16x32xbf16, #tpu.memory_space<vmem>>, vector<1x16x32xbf16>
    %29 = vector.shape_cast %28 : vector<1x16x32xbf16> to vector<16x32xbf16>
    %cst_19 = arith.constant dense<0.000000e+00> : vector<16x32xf32>
    %30 = tpu.matmul %27, %29, %cst_19 {dimension_numbers = #tpu.dot_dimension_numbers<[1], [0], [0], [1], [0, 0, 1, 1], [], []>} : vector<16x16xbf16>, vector<16x32xbf16>, vector<16x32xf32> -> vector<16x32xf32>
    %31 = arith.addf %26, %30 : vector<16x32xf32>
    %32 = math.tanh %31 : vector<16x32xf32>
    %cst_20 = arith.constant 0.000000e+00 : f32
    %33 = vector.broadcast %cst_20 : f32 to vector<2x32xf32>
    %34 = tpu.concatenate %33, %32, %33 in 0 : vector<2x32xf32>, vector<16x32xf32>, vector<2x32xf32> -> vector<20x32xf32>
    %35 = arith.truncf %34 : vector<20x32xf32> to vector<20x32xbf16>
    %c0_21 = arith.constant 0 : index
    %c0_22 = arith.constant 0 : index
    %36 = vector.load %arg5[%c0_21, %c0_22] : memref<1x32xf32, #tpu.memory_space<vmem>>, vector<1x32xf32>
    %37 = vector.extract_strided_slice %35 {offsets = [0, 0], sizes = [16, 32], strides = [1, 1]} : vector<20x32xbf16> to vector<16x32xbf16>
    %c0_23 = arith.constant 0 : index
    %c0_24 = arith.constant 0 : index
    %c0_25 = arith.constant 0 : index
    %38 = vector.load %arg4[%c0_23, %c0_24, %c0_25] : memref<5x32x32xbf16, #tpu.memory_space<vmem>>, vector<1x32x32xbf16>
    %39 = vector.shape_cast %38 : vector<1x32x32xbf16> to vector<32x32xbf16>
    %cst_26 = arith.constant dense<0.000000e+00> : vector<16x32xf32>
    %40 = tpu.matmul %37, %39, %cst_26 {dimension_numbers = #tpu.dot_dimension_numbers<[1], [0], [0], [1], [0, 0, 1, 1], [], []>} : vector<16x32xbf16>, vector<32x32xbf16>, vector<16x32xf32> -> vector<16x32xf32>
    %41 = vector.broadcast %36 : vector<1x32xf32> to vector<16x32xf32>
    %42 = arith.addf %41, %40 : vector<16x32xf32>
    %43 = vector.extract_strided_slice %35 {offsets = [1, 0], sizes = [16, 32], strides = [1, 1]} : vector<20x32xbf16> to vector<16x32xbf16>
    %c1_27 = arith.constant 1 : index
    %c0_28 = arith.constant 0 : index
    %c0_29 = arith.constant 0 : index
    %44 = vector.load %arg4[%c1_27, %c0_28, %c0_29] : memref<5x32x32xbf16, #tpu.memory_space<vmem>>, vector<1x32x32xbf16>
    %45 = vector.shape_cast %44 : vector<1x32x32xbf16> to vector<32x32xbf16>
    %cst_30 = arith.constant dense<0.000000e+00> : vector<16x32xf32>
    %46 = tpu.matmul %43, %45, %cst_30 {dimension_numbers = #tpu.dot_dimension_numbers<[1], [0], [0], [1], [0, 0, 1, 1], [], []>} : vector<16x32xbf16>, vector<32x32xbf16>, vector<16x32xf32> -> vector<16x32xf32>
    %47 = arith.addf %42, %46 : vector<16x32xf32>
    %48 = vector.extract_strided_slice %35 {offsets = [2, 0], sizes = [16, 32], strides = [1, 1]} : vector<20x32xbf16> to vector<16x32xbf16>
    %c2_31 = arith.constant 2 : index
    %c0_32 = arith.constant 0 : index
    %c0_33 = arith.constant 0 : index
    %49 = vector.load %arg4[%c2_31, %c0_32, %c0_33] : memref<5x32x32xbf16, #tpu.memory_space<vmem>>, vector<1x32x32xbf16>
    %50 = vector.shape_cast %49 : vector<1x32x32xbf16> to vector<32x32xbf16>
    %cst_34 = arith.constant dense<0.000000e+00> : vector<16x32xf32>
    %51 = tpu.matmul %48, %50, %cst_34 {dimension_numbers = #tpu.dot_dimension_numbers<[1], [0], [0], [1], [0, 0, 1, 1], [], []>} : vector<16x32xbf16>, vector<32x32xbf16>, vector<16x32xf32> -> vector<16x32xf32>
    %52 = arith.addf %47, %51 : vector<16x32xf32>
    %53 = vector.extract_strided_slice %35 {offsets = [3, 0], sizes = [16, 32], strides = [1, 1]} : vector<20x32xbf16> to vector<16x32xbf16>
    %c3_35 = arith.constant 3 : index
    %c0_36 = arith.constant 0 : index
    %c0_37 = arith.constant 0 : index
    %54 = vector.load %arg4[%c3_35, %c0_36, %c0_37] : memref<5x32x32xbf16, #tpu.memory_space<vmem>>, vector<1x32x32xbf16>
    %55 = vector.shape_cast %54 : vector<1x32x32xbf16> to vector<32x32xbf16>
    %cst_38 = arith.constant dense<0.000000e+00> : vector<16x32xf32>
    %56 = tpu.matmul %53, %55, %cst_38 {dimension_numbers = #tpu.dot_dimension_numbers<[1], [0], [0], [1], [0, 0, 1, 1], [], []>} : vector<16x32xbf16>, vector<32x32xbf16>, vector<16x32xf32> -> vector<16x32xf32>
    %57 = arith.addf %52, %56 : vector<16x32xf32>
    %58 = vector.extract_strided_slice %35 {offsets = [4, 0], sizes = [16, 32], strides = [1, 1]} : vector<20x32xbf16> to vector<16x32xbf16>
    %c4_39 = arith.constant 4 : index
    %c0_40 = arith.constant 0 : index
    %c0_41 = arith.constant 0 : index
    %59 = vector.load %arg4[%c4_39, %c0_40, %c0_41] : memref<5x32x32xbf16, #tpu.memory_space<vmem>>, vector<1x32x32xbf16>
    %60 = vector.shape_cast %59 : vector<1x32x32xbf16> to vector<32x32xbf16>
    %cst_42 = arith.constant dense<0.000000e+00> : vector<16x32xf32>
    %61 = tpu.matmul %58, %60, %cst_42 {dimension_numbers = #tpu.dot_dimension_numbers<[1], [0], [0], [1], [0, 0, 1, 1], [], []>} : vector<16x32xbf16>, vector<32x32xbf16>, vector<16x32xf32> -> vector<16x32xf32>
    %62 = arith.addf %57, %61 : vector<16x32xf32>
    %63 = math.tanh %62 : vector<16x32xf32>
    %cst_43 = arith.constant 0.000000e+00 : f32
    %64 = vector.broadcast %cst_43 : f32 to vector<2x32xf32>
    %65 = tpu.concatenate %64, %63, %64 in 0 : vector<2x32xf32>, vector<16x32xf32>, vector<2x32xf32> -> vector<20x32xf32>
    %66 = arith.truncf %65 : vector<20x32xf32> to vector<20x32xbf16>
    %c0_44 = arith.constant 0 : index
    %c0_45 = arith.constant 0 : index
    %67 = vector.load %arg7[%c0_44, %c0_45] : memref<1x16xf32, #tpu.memory_space<vmem>>, vector<1x16xf32>
    %68 = vector.extract_strided_slice %66 {offsets = [0, 0], sizes = [16, 32], strides = [1, 1]} : vector<20x32xbf16> to vector<16x32xbf16>
    %c0_46 = arith.constant 0 : index
    %c0_47 = arith.constant 0 : index
    %c0_48 = arith.constant 0 : index
    %69 = vector.load %arg6[%c0_46, %c0_47, %c0_48] : memref<5x32x16xbf16, #tpu.memory_space<vmem>>, vector<1x32x16xbf16>
    %70 = vector.shape_cast %69 : vector<1x32x16xbf16> to vector<32x16xbf16>
    %cst_49 = arith.constant dense<0.000000e+00> : vector<16x16xf32>
    %71 = tpu.matmul %68, %70, %cst_49 {dimension_numbers = #tpu.dot_dimension_numbers<[1], [0], [0], [1], [0, 0, 1, 1], [], []>} : vector<16x32xbf16>, vector<32x16xbf16>, vector<16x16xf32> -> vector<16x16xf32>
    %72 = vector.broadcast %67 : vector<1x16xf32> to vector<16x16xf32>
    %73 = arith.addf %72, %71 : vector<16x16xf32>
    %74 = vector.extract_strided_slice %66 {offsets = [1, 0], sizes = [16, 32], strides = [1, 1]} : vector<20x32xbf16> to vector<16x32xbf16>
    %c1_50 = arith.constant 1 : index
    %c0_51 = arith.constant 0 : index
    %c0_52 = arith.constant 0 : index
    %75 = vector.load %arg6[%c1_50, %c0_51, %c0_52] : memref<5x32x16xbf16, #tpu.memory_space<vmem>>, vector<1x32x16xbf16>
    %76 = vector.shape_cast %75 : vector<1x32x16xbf16> to vector<32x16xbf16>
    %cst_53 = arith.constant dense<0.000000e+00> : vector<16x16xf32>
    %77 = tpu.matmul %74, %76, %cst_53 {dimension_numbers = #tpu.dot_dimension_numbers<[1], [0], [0], [1], [0, 0, 1, 1], [], []>} : vector<16x32xbf16>, vector<32x16xbf16>, vector<16x16xf32> -> vector<16x16xf32>
    %78 = arith.addf %73, %77 : vector<16x16xf32>
    %79 = vector.extract_strided_slice %66 {offsets = [2, 0], sizes = [16, 32], strides = [1, 1]} : vector<20x32xbf16> to vector<16x32xbf16>
    %c2_54 = arith.constant 2 : index
    %c0_55 = arith.constant 0 : index
    %c0_56 = arith.constant 0 : index
    %80 = vector.load %arg6[%c2_54, %c0_55, %c0_56] : memref<5x32x16xbf16, #tpu.memory_space<vmem>>, vector<1x32x16xbf16>
    %81 = vector.shape_cast %80 : vector<1x32x16xbf16> to vector<32x16xbf16>
    %cst_57 = arith.constant dense<0.000000e+00> : vector<16x16xf32>
    %82 = tpu.matmul %79, %81, %cst_57 {dimension_numbers = #tpu.dot_dimension_numbers<[1], [0], [0], [1], [0, 0, 1, 1], [], []>} : vector<16x32xbf16>, vector<32x16xbf16>, vector<16x16xf32> -> vector<16x16xf32>
    %83 = arith.addf %78, %82 : vector<16x16xf32>
    %84 = vector.extract_strided_slice %66 {offsets = [3, 0], sizes = [16, 32], strides = [1, 1]} : vector<20x32xbf16> to vector<16x32xbf16>
    %c3_58 = arith.constant 3 : index
    %c0_59 = arith.constant 0 : index
    %c0_60 = arith.constant 0 : index
    %85 = vector.load %arg6[%c3_58, %c0_59, %c0_60] : memref<5x32x16xbf16, #tpu.memory_space<vmem>>, vector<1x32x16xbf16>
    %86 = vector.shape_cast %85 : vector<1x32x16xbf16> to vector<32x16xbf16>
    %cst_61 = arith.constant dense<0.000000e+00> : vector<16x16xf32>
    %87 = tpu.matmul %84, %86, %cst_61 {dimension_numbers = #tpu.dot_dimension_numbers<[1], [0], [0], [1], [0, 0, 1, 1], [], []>} : vector<16x32xbf16>, vector<32x16xbf16>, vector<16x16xf32> -> vector<16x16xf32>
    %88 = arith.addf %83, %87 : vector<16x16xf32>
    %89 = vector.extract_strided_slice %66 {offsets = [4, 0], sizes = [16, 32], strides = [1, 1]} : vector<20x32xbf16> to vector<16x32xbf16>
    %c4_62 = arith.constant 4 : index
    %c0_63 = arith.constant 0 : index
    %c0_64 = arith.constant 0 : index
    %90 = vector.load %arg6[%c4_62, %c0_63, %c0_64] : memref<5x32x16xbf16, #tpu.memory_space<vmem>>, vector<1x32x16xbf16>
    %91 = vector.shape_cast %90 : vector<1x32x16xbf16> to vector<32x16xbf16>
    %cst_65 = arith.constant dense<0.000000e+00> : vector<16x16xf32>
    %92 = tpu.matmul %89, %91, %cst_65 {dimension_numbers = #tpu.dot_dimension_numbers<[1], [0], [0], [1], [0, 0, 1, 1], [], []>} : vector<16x32xbf16>, vector<32x16xbf16>, vector<16x16xf32> -> vector<16x16xf32>
    %93 = arith.addf %88, %92 : vector<16x16xf32>
    %c0_66 = arith.constant 0 : index
    %c0_67 = arith.constant 0 : index
    %c0_68 = arith.constant 0 : index
    %94 = vector.load %arg8[%c0_66, %c0_67, %c0_68] : memref<1x16x16xf32, #tpu.memory_space<vmem>>, vector<1x16x16xf32>
    %95 = vector.shape_cast %94 : vector<1x16x16xf32> to vector<16x16xf32>
    %96 = vector.shape_cast %93 : vector<16x16xf32> to vector<1x16x16xf32>
    tpu.vector_store %arg8[%c0_66, %c0_67, %c0_68], %96 {strides = array<i32>} : memref<1x16x16xf32, #tpu.memory_space<vmem>>, vector<1x16x16xf32>,
    return
  }
  func.func @transform_0(%arg0: i32) -> (i32, i32, i32) {
    %c0_i32 = arith.constant 0 : i32
    %c0_i32_0 = arith.constant 0 : i32
    %c0_i32_1 = arith.constant 0 : i32
    return %arg0, %c0_i32, %c0_i32_0 : i32, i32, i32
  }
  func.func @transform_1(%arg0: i32) -> (i32, i32, i32) {
    %c0_i32 = arith.constant 0 : i32
    %c0_i32_0 = arith.constant 0 : i32
    %c0_i32_1 = arith.constant 0 : i32
    %c0_i32_2 = arith.constant 0 : i32
    return %c0_i32, %c0_i32_0, %c0_i32_1 : i32, i32, i32
  }
  func.func @transform_2(%arg0: i32) -> (i32, i32) {
    %c0_i32 = arith.constant 0 : i32
    %c0_i32_0 = arith.constant 0 : i32
    %c0_i32_1 = arith.constant 0 : i32
    return %c0_i32, %c0_i32_0 : i32, i32
  }
  func.func @transform_3(%arg0: i32) -> (i32, i32, i32) {
    %c0_i32 = arith.constant 0 : i32
    %c0_i32_0 = arith.constant 0 : i32
    %c0_i32_1 = arith.constant 0 : i32
    %c0_i32_2 = arith.constant 0 : i32
    return %c0_i32, %c0_i32_0, %c0_i32_1 : i32, i32, i32
  }
  func.func @transform_4(%arg0: i32) -> (i32, i32) {
    %c0_i32 = arith.constant 0 : i32
    %c0_i32_0 = arith.constant 0 : i32
    %c0_i32_1 = arith.constant 0 : i32
    return %c0_i32, %c0_i32_0 : i32, i32
  }
  func.func @transform_5(%arg0: i32) -> (i32, i32, i32) {
    %c0_i32 = arith.constant 0 : i32
    %c0_i32_0 = arith.constant 0 : i32
    %c0_i32_1 = arith.constant 0 : i32
    %c0_i32_2 = arith.constant 0 : i32
    return %c0_i32, %c0_i32_0, %c0_i32_1 : i32, i32, i32
  }
  func.func @transform_6(%arg0: i32) -> (i32, i32) {
    %c0_i32 = arith.constant 0 : i32
    %c0_i32_0 = arith.constant 0 : i32
    %c0_i32_1 = arith.constant 0 : i32
    return %c0_i32, %c0_i32_0 : i32, i32
  }
  func.func @transform_7(%arg0: i32) -> (i32, i32, i32) {
    %c0_i32 = arith.constant 0 : i32
    %c0_i32_0 = arith.constant 0 : i32
    %c0_i32_1 = arith.constant 0 : i32
    return %arg0, %c0_i32, %c0_i32_0 : i32, i32, i32
  }
}

module attributes {stable_mosaic.version = 11 : i64} {
  func.func @kernel(%arg0: i32, %arg1: memref<1x8x32xf32, #tpu.memory_space<vmem>>, %arg2: memref<1x9x32xf32, #tpu.memory_space<vmem>>, %arg3: memref<1x16x16xf32, #tpu.memory_space<vmem>>, %arg4: memref<1x8x32xf32, #tpu.memory_space<vmem>>, %arg5: memref<1x8x1xf32, #tpu.memory_space<vmem>>, %arg6: memref<1x1x8xf32, #tpu.memory_space<vmem>>, %arg7: memref<1x1x16xf32, #tpu.memory_space<vmem>>, %arg8: memref<5x32x32xbf16, #tpu.memory_space<vmem>>, %arg9: memref<1x32xf32, #tpu.memory_space<vmem>>, %arg10: memref<5x32x32xbf16, #tpu.memory_space<vmem>>, %arg11: memref<1x32xf32, #tpu.memory_space<vmem>>, %arg12: memref<32x32xbf16, #tpu.memory_space<vmem>>, %arg13: memref<1x32xf32, #tpu.memory_space<vmem>>, %arg14: memref<5x16x32xbf16, #tpu.memory_space<vmem>>, %arg15: memref<1x32xf32, #tpu.memory_space<vmem>>, %arg16: memref<32x32xbf16, #tpu.memory_space<vmem>>, %arg17: memref<1x32xf32, #tpu.memory_space<vmem>>, %arg18: memref<32x32xbf16, #tpu.memory_space<vmem>>, %arg19: memref<1x32xf32, #tpu.memory_space<vmem>>, %arg20: memref<32x32xbf16, #tpu.memory_space<vmem>>, %arg21: memref<32x32xbf16, #tpu.memory_space<vmem>>, %arg22: memref<1x32xf32, #tpu.memory_space<vmem>>, %arg23: memref<32x15xbf16, #tpu.memory_space<vmem>>, %arg24: memref<1x15xf32, #tpu.memory_space<vmem>>, %arg25: memref<16x32xbf16, #tpu.memory_space<vmem>>, %arg26: memref<1x32xf32, #tpu.memory_space<vmem>>, %arg27: memref<32x20xbf16, #tpu.memory_space<vmem>>, %arg28: memref<1x20xf32, #tpu.memory_space<vmem>>, %arg29: memref<32x32xbf16, #tpu.memory_space<vmem>>, %arg30: memref<1x32xf32, #tpu.memory_space<vmem>>, %arg31: memref<32x32xbf16, #tpu.memory_space<vmem>>, %arg32: memref<1x32xf32, #tpu.memory_space<vmem>>, %arg33: memref<32x32xbf16, #tpu.memory_space<vmem>>, %arg34: memref<16x32xbf16, #tpu.memory_space<vmem>>, %arg35: memref<1x32xf32, #tpu.memory_space<vmem>>, %arg36: memref<32x33xbf16, #tpu.memory_space<vmem>>, %arg37: memref<16x33xbf16, #tpu.memory_space<vmem>>, %arg38: memref<32x33xbf16, #tpu.memory_space<vmem>>, %arg39: memref<1x33xf32, #tpu.memory_space<vmem>>, %arg40: memref<1x8x32xf32, #tpu.memory_space<vmem>>, %arg41: memref<1x9x32xf32, #tpu.memory_space<vmem>>, %arg42: memref<1x9x15xf32, #tpu.memory_space<vmem>>, %arg43: memref<1x9x16xf32, #tpu.memory_space<vmem>>, %arg44: memref<1x1x20xf32, #tpu.memory_space<vmem>>, %arg45: memref<1x16x8xf32, #tpu.memory_space<vmem>>, %arg46: memref<1x8x33xf32, #tpu.memory_space<vmem>>, %arg47: memref<1x8x8xf32, #tpu.memory_space<vmem>>) attributes {dimension_semantics = [#tpu.dimension_semantics<parallel>], iteration_bounds = array<i64: 2>, scalar_prefetch = 0 : i64, scratch_operands = 0 : i64, tpu.core_type = #tpu.core_type<tc>, window_params = [{transform_indices = @transform_0, window_bounds = array<i64: 1, 8, 32>}, {transform_indices = @transform_1, window_bounds = array<i64: 1, 9, 32>}, {transform_indices = @transform_2, window_bounds = array<i64: 1, 16, 16>}, {transform_indices = @transform_3, window_bounds = array<i64: 1, 8, 32>}, {transform_indices = @transform_4, window_bounds = array<i64: 1, 8, 1>}, {transform_indices = @transform_5, window_bounds = array<i64: 1, 1, 8>}, {transform_indices = @transform_6, window_bounds = array<i64: 1, 1, 16>}, {pipeline_mode = #tpu.pipeline_mode<synchronous>, transform_indices = @transform_7, window_bounds = array<i64: 5, 32, 32>}, {pipeline_mode = #tpu.pipeline_mode<synchronous>, transform_indices = @transform_8, window_bounds = array<i64: 1, 32>}, {pipeline_mode = #tpu.pipeline_mode<synchronous>, transform_indices = @transform_9, window_bounds = array<i64: 5, 32, 32>}, {pipeline_mode = #tpu.pipeline_mode<synchronous>, transform_indices = @transform_10, window_bounds = array<i64: 1, 32>}, {pipeline_mode = #tpu.pipeline_mode<synchronous>, transform_indices = @transform_11, window_bounds = array<i64: 32, 32>}, {pipeline_mode = #tpu.pipeline_mode<synchronous>, transform_indices = @transform_12, window_bounds = array<i64: 1, 32>}, {pipeline_mode = #tpu.pipeline_mode<synchronous>, transform_indices = @transform_13, window_bounds = array<i64: 5, 16, 32>}, {pipeline_mode = #tpu.pipeline_mode<synchronous>, transform_indices = @transform_14, window_bounds = array<i64: 1, 32>}, {pipeline_mode = #tpu.pipeline_mode<synchronous>, transform_indices = @transform_15, window_bounds = array<i64: 32, 32>}, {pipeline_mode = #tpu.pipeline_mode<synchronous>, transform_indices = @transform_16, window_bounds = array<i64: 1, 32>}, {pipeline_mode = #tpu.pipeline_mode<synchronous>, transform_indices = @transform_17, window_bounds = array<i64: 32, 32>}, {pipeline_mode = #tpu.pipeline_mode<synchronous>, transform_indices = @transform_18, window_bounds = array<i64: 1, 32>}, {pipeline_mode = #tpu.pipeline_mode<synchronous>, transform_indices = @transform_19, window_bounds = array<i64: 32, 32>}, {pipeline_mode = #tpu.pipeline_mode<synchronous>, transform_indices = @transform_20, window_bounds = array<i64: 32, 32>}, {pipeline_mode = #tpu.pipeline_mode<synchronous>, transform_indices = @transform_21, window_bounds = array<i64: 1, 32>}, {pipeline_mode = #tpu.pipeline_mode<synchronous>, transform_indices = @transform_22, window_bounds = array<i64: 32, 15>}, {pipeline_mode = #tpu.pipeline_mode<synchronous>, transform_indices = @transform_23, window_bounds = array<i64: 1, 15>}, {pipeline_mode = #tpu.pipeline_mode<synchronous>, transform_indices = @transform_24, window_bounds = array<i64: 16, 32>}, {pipeline_mode = #tpu.pipeline_mode<synchronous>, transform_indices = @transform_25, window_bounds = array<i64: 1, 32>}, {pipeline_mode = #tpu.pipeline_mode<synchronous>, transform_indices = @transform_26, window_bounds = array<i64: 32, 20>}, {pipeline_mode = #tpu.pipeline_mode<synchronous>, transform_indices = @transform_27, window_bounds = array<i64: 1, 20>}, {pipeline_mode = #tpu.pipeline_mode<synchronous>, transform_indices = @transform_28, window_bounds = array<i64: 32, 32>}, {pipeline_mode = #tpu.pipeline_mode<synchronous>, transform_indices = @transform_29, window_bounds = array<i64: 1, 32>}, {pipeline_mode = #tpu.pipeline_mode<synchronous>, transform_indices = @transform_30, window_bounds = array<i64: 32, 32>}, {pipeline_mode = #tpu.pipeline_mode<synchronous>, transform_indices = @transform_31, window_bounds = array<i64: 1, 32>}, {pipeline_mode = #tpu.pipeline_mode<synchronous>, transform_indices = @transform_32, window_bounds = array<i64: 32, 32>}, {pipeline_mode = #tpu.pipeline_mode<synchronous>, transform_indices = @transform_33, window_bounds = array<i64: 16, 32>}, {pipeline_mode = #tpu.pipeline_mode<synchronous>, transform_indices = @transform_34, window_bounds = array<i64: 1, 32>}, {pipeline_mode = #tpu.pipeline_mode<synchronous>, transform_indices = @transform_35, window_bounds = array<i64: 32, 33>}, {pipeline_mode = #tpu.pipeline_mode<synchronous>, transform_indices = @transform_36, window_bounds = array<i64: 16, 33>}, {pipeline_mode = #tpu.pipeline_mode<synchronous>, transform_indices = @transform_37, window_bounds = array<i64: 32, 33>}, {pipeline_mode = #tpu.pipeline_mode<synchronous>, transform_indices = @transform_38, window_bounds = array<i64: 1, 33>}, {transform_indices = @transform_39, window_bounds = array<i64: 1, 8, 32>}, {transform_indices = @transform_40, window_bounds = array<i64: 1, 9, 32>}, {transform_indices = @transform_41, window_bounds = array<i64: 1, 9, 15>}, {transform_indices = @transform_42, window_bounds = array<i64: 1, 9, 16>}, {transform_indices = @transform_43, window_bounds = array<i64: 1, 1, 20>}, {transform_indices = @transform_44, window_bounds = array<i64: 1, 16, 8>}, {transform_indices = @transform_45, window_bounds = array<i64: 1, 8, 33>}, {transform_indices = @transform_46, window_bounds = array<i64: 1, 8, 8>}]} {
    %c0 = arith.constant 0 : index
    %c0_0 = arith.constant 0 : index
    %c0_1 = arith.constant 0 : index
    %0 = vector.load %arg6[%c0, %c0_0, %c0_1] : memref<1x1x8xf32, #tpu.memory_space<vmem>>, vector<1x1x8xf32>
    %1 = vector.shape_cast %0 : vector<1x1x8xf32> to vector<1x8xf32>
    %cst = arith.constant 1.000000e+00 : f32
    %2 = vector.broadcast %cst : f32 to vector<1x8xf32>
    %3 = arith.subf %1, %2 : vector<1x8xf32>
    %cst_2 = arith.constant 1.000000e+09 : f32
    %4 = vector.broadcast %cst_2 : f32 to vector<1x8xf32>
    %5 = arith.mulf %3, %4 : vector<1x8xf32>
    %c0_3 = arith.constant 0 : index
    %c0_4 = arith.constant 0 : index
    %c0_5 = arith.constant 0 : index
    %6 = vector.load %arg7[%c0_3, %c0_4, %c0_5] : memref<1x1x16xf32, #tpu.memory_space<vmem>>, vector<1x1x16xf32>
    %7 = vector.shape_cast %6 : vector<1x1x16xf32> to vector<1x16xf32>
    %cst_6 = arith.constant 1.000000e+00 : f32
    %8 = vector.broadcast %cst_6 : f32 to vector<1x16xf32>
    %9 = arith.subf %7, %8 : vector<1x16xf32>
    %cst_7 = arith.constant 1.000000e+09 : f32
    %10 = vector.broadcast %cst_7 : f32 to vector<1x16xf32>
    %11 = arith.mulf %9, %10 : vector<1x16xf32>
    %c0_8 = arith.constant 0 : index
    %c0_9 = arith.constant 0 : index
    %c0_10 = arith.constant 0 : index
    %12 = vector.load %arg1[%c0_8, %c0_9, %c0_10] : memref<1x8x32xf32, #tpu.memory_space<vmem>>, vector<1x8x32xf32>
    %13 = vector.shape_cast %12 : vector<1x8x32xf32> to vector<8x32xf32>
    %cst_11 = arith.constant 0.000000e+00 : f32
    %14 = vector.broadcast %cst_11 : f32 to vector<2x32xf32>
    %15 = tpu.concatenate %14, %13, %14 in 0 : vector<2x32xf32>, vector<8x32xf32>, vector<2x32xf32> -> vector<12x32xf32>
    %16 = arith.truncf %15 : vector<12x32xf32> to vector<12x32xbf16>
    %c0_12 = arith.constant 0 : index
    %c0_13 = arith.constant 0 : index
    %17 = vector.load %arg9[%c0_12, %c0_13] : memref<1x32xf32, #tpu.memory_space<vmem>>, vector<1x32xf32>
    %18 = vector.extract_strided_slice %16 {offsets = [0, 0], sizes = [8, 32], strides = [1, 1]} : vector<12x32xbf16> to vector<8x32xbf16>
    %c0_14 = arith.constant 0 : index
    %c0_15 = arith.constant 0 : index
    %c0_16 = arith.constant 0 : index
    %19 = vector.load %arg8[%c0_14, %c0_15, %c0_16] : memref<5x32x32xbf16, #tpu.memory_space<vmem>>, vector<1x32x32xbf16>
    %20 = vector.shape_cast %19 : vector<1x32x32xbf16> to vector<32x32xbf16>
    %cst_17 = arith.constant dense<0.000000e+00> : vector<8x32xf32>
    %21 = tpu.matmul %18, %20, %cst_17 {dimension_numbers = #tpu.dot_dimension_numbers<[1], [0], [0], [1], [0, 0, 1, 1], [], []>} : vector<8x32xbf16>, vector<32x32xbf16>, vector<8x32xf32> -> vector<8x32xf32>
    %22 = vector.broadcast %17 : vector<1x32xf32> to vector<8x32xf32>
    %23 = arith.addf %22, %21 : vector<8x32xf32>
    %24 = vector.extract_strided_slice %16 {offsets = [1, 0], sizes = [8, 32], strides = [1, 1]} : vector<12x32xbf16> to vector<8x32xbf16>
    %c1 = arith.constant 1 : index
    %c0_18 = arith.constant 0 : index
    %c0_19 = arith.constant 0 : index
    %25 = vector.load %arg8[%c1, %c0_18, %c0_19] : memref<5x32x32xbf16, #tpu.memory_space<vmem>>, vector<1x32x32xbf16>
    %26 = vector.shape_cast %25 : vector<1x32x32xbf16> to vector<32x32xbf16>
    %cst_20 = arith.constant dense<0.000000e+00> : vector<8x32xf32>
    %27 = tpu.matmul %24, %26, %cst_20 {dimension_numbers = #tpu.dot_dimension_numbers<[1], [0], [0], [1], [0, 0, 1, 1], [], []>} : vector<8x32xbf16>, vector<32x32xbf16>, vector<8x32xf32> -> vector<8x32xf32>
    %28 = arith.addf %23, %27 : vector<8x32xf32>
    %29 = vector.extract_strided_slice %16 {offsets = [2, 0], sizes = [8, 32], strides = [1, 1]} : vector<12x32xbf16> to vector<8x32xbf16>
    %c2 = arith.constant 2 : index
    %c0_21 = arith.constant 0 : index
    %c0_22 = arith.constant 0 : index
    %30 = vector.load %arg8[%c2, %c0_21, %c0_22] : memref<5x32x32xbf16, #tpu.memory_space<vmem>>, vector<1x32x32xbf16>
    %31 = vector.shape_cast %30 : vector<1x32x32xbf16> to vector<32x32xbf16>
    %cst_23 = arith.constant dense<0.000000e+00> : vector<8x32xf32>
    %32 = tpu.matmul %29, %31, %cst_23 {dimension_numbers = #tpu.dot_dimension_numbers<[1], [0], [0], [1], [0, 0, 1, 1], [], []>} : vector<8x32xbf16>, vector<32x32xbf16>, vector<8x32xf32> -> vector<8x32xf32>
    %33 = arith.addf %28, %32 : vector<8x32xf32>
    %34 = vector.extract_strided_slice %16 {offsets = [3, 0], sizes = [8, 32], strides = [1, 1]} : vector<12x32xbf16> to vector<8x32xbf16>
    %c3 = arith.constant 3 : index
    %c0_24 = arith.constant 0 : index
    %c0_25 = arith.constant 0 : index
    %35 = vector.load %arg8[%c3, %c0_24, %c0_25] : memref<5x32x32xbf16, #tpu.memory_space<vmem>>, vector<1x32x32xbf16>
    %36 = vector.shape_cast %35 : vector<1x32x32xbf16> to vector<32x32xbf16>
    %cst_26 = arith.constant dense<0.000000e+00> : vector<8x32xf32>
    %37 = tpu.matmul %34, %36, %cst_26 {dimension_numbers = #tpu.dot_dimension_numbers<[1], [0], [0], [1], [0, 0, 1, 1], [], []>} : vector<8x32xbf16>, vector<32x32xbf16>, vector<8x32xf32> -> vector<8x32xf32>
    %38 = arith.addf %33, %37 : vector<8x32xf32>
    %39 = vector.extract_strided_slice %16 {offsets = [4, 0], sizes = [8, 32], strides = [1, 1]} : vector<12x32xbf16> to vector<8x32xbf16>
    %c4 = arith.constant 4 : index
    %c0_27 = arith.constant 0 : index
    %c0_28 = arith.constant 0 : index
    %40 = vector.load %arg8[%c4, %c0_27, %c0_28] : memref<5x32x32xbf16, #tpu.memory_space<vmem>>, vector<1x32x32xbf16>
    %41 = vector.shape_cast %40 : vector<1x32x32xbf16> to vector<32x32xbf16>
    %cst_29 = arith.constant dense<0.000000e+00> : vector<8x32xf32>
    %42 = tpu.matmul %39, %41, %cst_29 {dimension_numbers = #tpu.dot_dimension_numbers<[1], [0], [0], [1], [0, 0, 1, 1], [], []>} : vector<8x32xbf16>, vector<32x32xbf16>, vector<8x32xf32> -> vector<8x32xf32>
    %43 = arith.addf %38, %42 : vector<8x32xf32>
    %cst_30 = arith.constant 0.000000e+00 : f32
    %44 = vector.broadcast %cst_30 : f32 to vector<8x32xf32>
    %45 = arith.maximumf %43, %44 : vector<8x32xf32>
    %cst_31 = arith.constant 0.000000e+00 : f32
    %46 = vector.broadcast %cst_31 : f32 to vector<2x32xf32>
    %47 = tpu.concatenate %46, %45, %46 in 0 : vector<2x32xf32>, vector<8x32xf32>, vector<2x32xf32> -> vector<12x32xf32>
    %48 = arith.truncf %47 : vector<12x32xf32> to vector<12x32xbf16>
    %c0_32 = arith.constant 0 : index
    %c0_33 = arith.constant 0 : index
    %49 = vector.load %arg11[%c0_32, %c0_33] : memref<1x32xf32, #tpu.memory_space<vmem>>, vector<1x32xf32>
    %50 = vector.extract_strided_slice %48 {offsets = [0, 0], sizes = [8, 32], strides = [1, 1]} : vector<12x32xbf16> to vector<8x32xbf16>
    %c0_34 = arith.constant 0 : index
    %c0_35 = arith.constant 0 : index
    %c0_36 = arith.constant 0 : index
    %51 = vector.load %arg10[%c0_34, %c0_35, %c0_36] : memref<5x32x32xbf16, #tpu.memory_space<vmem>>, vector<1x32x32xbf16>
    %52 = vector.shape_cast %51 : vector<1x32x32xbf16> to vector<32x32xbf16>
    %cst_37 = arith.constant dense<0.000000e+00> : vector<8x32xf32>
    %53 = tpu.matmul %50, %52, %cst_37 {dimension_numbers = #tpu.dot_dimension_numbers<[1], [0], [0], [1], [0, 0, 1, 1], [], []>} : vector<8x32xbf16>, vector<32x32xbf16>, vector<8x32xf32> -> vector<8x32xf32>
    %54 = vector.broadcast %49 : vector<1x32xf32> to vector<8x32xf32>
    %55 = arith.addf %54, %53 : vector<8x32xf32>
    %56 = vector.extract_strided_slice %48 {offsets = [1, 0], sizes = [8, 32], strides = [1, 1]} : vector<12x32xbf16> to vector<8x32xbf16>
    %c1_38 = arith.constant 1 : index
    %c0_39 = arith.constant 0 : index
    %c0_40 = arith.constant 0 : index
    %57 = vector.load %arg10[%c1_38, %c0_39, %c0_40] : memref<5x32x32xbf16, #tpu.memory_space<vmem>>, vector<1x32x32xbf16>
    %58 = vector.shape_cast %57 : vector<1x32x32xbf16> to vector<32x32xbf16>
    %cst_41 = arith.constant dense<0.000000e+00> : vector<8x32xf32>
    %59 = tpu.matmul %56, %58, %cst_41 {dimension_numbers = #tpu.dot_dimension_numbers<[1], [0], [0], [1], [0, 0, 1, 1], [], []>} : vector<8x32xbf16>, vector<32x32xbf16>, vector<8x32xf32> -> vector<8x32xf32>
    %60 = arith.addf %55, %59 : vector<8x32xf32>
    %61 = vector.extract_strided_slice %48 {offsets = [2, 0], sizes = [8, 32], strides = [1, 1]} : vector<12x32xbf16> to vector<8x32xbf16>
    %c2_42 = arith.constant 2 : index
    %c0_43 = arith.constant 0 : index
    %c0_44 = arith.constant 0 : index
    %62 = vector.load %arg10[%c2_42, %c0_43, %c0_44] : memref<5x32x32xbf16, #tpu.memory_space<vmem>>, vector<1x32x32xbf16>
    %63 = vector.shape_cast %62 : vector<1x32x32xbf16> to vector<32x32xbf16>
    %cst_45 = arith.constant dense<0.000000e+00> : vector<8x32xf32>
    %64 = tpu.matmul %61, %63, %cst_45 {dimension_numbers = #tpu.dot_dimension_numbers<[1], [0], [0], [1], [0, 0, 1, 1], [], []>} : vector<8x32xbf16>, vector<32x32xbf16>, vector<8x32xf32> -> vector<8x32xf32>
    %65 = arith.addf %60, %64 : vector<8x32xf32>
    %66 = vector.extract_strided_slice %48 {offsets = [3, 0], sizes = [8, 32], strides = [1, 1]} : vector<12x32xbf16> to vector<8x32xbf16>
    %c3_46 = arith.constant 3 : index
    %c0_47 = arith.constant 0 : index
    %c0_48 = arith.constant 0 : index
    %67 = vector.load %arg10[%c3_46, %c0_47, %c0_48] : memref<5x32x32xbf16, #tpu.memory_space<vmem>>, vector<1x32x32xbf16>
    %68 = vector.shape_cast %67 : vector<1x32x32xbf16> to vector<32x32xbf16>
    %cst_49 = arith.constant dense<0.000000e+00> : vector<8x32xf32>
    %69 = tpu.matmul %66, %68, %cst_49 {dimension_numbers = #tpu.dot_dimension_numbers<[1], [0], [0], [1], [0, 0, 1, 1], [], []>} : vector<8x32xbf16>, vector<32x32xbf16>, vector<8x32xf32> -> vector<8x32xf32>
    %70 = arith.addf %65, %69 : vector<8x32xf32>
    %71 = vector.extract_strided_slice %48 {offsets = [4, 0], sizes = [8, 32], strides = [1, 1]} : vector<12x32xbf16> to vector<8x32xbf16>
    %c4_50 = arith.constant 4 : index
    %c0_51 = arith.constant 0 : index
    %c0_52 = arith.constant 0 : index
    %72 = vector.load %arg10[%c4_50, %c0_51, %c0_52] : memref<5x32x32xbf16, #tpu.memory_space<vmem>>, vector<1x32x32xbf16>
    %73 = vector.shape_cast %72 : vector<1x32x32xbf16> to vector<32x32xbf16>
    %cst_53 = arith.constant dense<0.000000e+00> : vector<8x32xf32>
    %74 = tpu.matmul %71, %73, %cst_53 {dimension_numbers = #tpu.dot_dimension_numbers<[1], [0], [0], [1], [0, 0, 1, 1], [], []>} : vector<8x32xbf16>, vector<32x32xbf16>, vector<8x32xf32> -> vector<8x32xf32>
    %75 = arith.addf %70, %74 : vector<8x32xf32>
    %cst_54 = arith.constant 0.000000e+00 : f32
    %76 = vector.broadcast %cst_54 : f32 to vector<8x32xf32>
    %77 = arith.maximumf %75, %76 : vector<8x32xf32>
    %78 = arith.truncf %77 : vector<8x32xf32> to vector<8x32xbf16>
    %c0_55 = arith.constant 0 : index
    %c0_56 = arith.constant 0 : index
    %79 = vector.load %arg12[%c0_55, %c0_56] : memref<32x32xbf16, #tpu.memory_space<vmem>>, vector<32x32xbf16>
    %cst_57 = arith.constant dense<0.000000e+00> : vector<8x32xf32>
    %80 = tpu.matmul %78, %79, %cst_57 {dimension_numbers = #tpu.dot_dimension_numbers<[1], [0], [0], [1], [0, 0, 1, 1], [], []>} : vector<8x32xbf16>, vector<32x32xbf16>, vector<8x32xf32> -> vector<8x32xf32>
    %c0_58 = arith.constant 0 : index
    %c0_59 = arith.constant 0 : index
    %81 = vector.load %arg13[%c0_58, %c0_59] : memref<1x32xf32, #tpu.memory_space<vmem>>, vector<1x32xf32>
    %82 = vector.broadcast %81 : vector<1x32xf32> to vector<8x32xf32>
    %83 = arith.addf %80, %82 : vector<8x32xf32>
    %84 = math.tanh %83 : vector<8x32xf32>
    %c0_60 = arith.constant 0 : index
    %c0_61 = arith.constant 0 : index
    %c0_62 = arith.constant 0 : index
    %85 = vector.load %arg5[%c0_60, %c0_61, %c0_62] : memref<1x8x1xf32, #tpu.memory_space<vmem>>, vector<1x8x1xf32>
    %86 = vector.shape_cast %85 : vector<1x8x1xf32> to vector<8x1xf32>
    %87 = vector.broadcast %86 : vector<8x1xf32> to vector<8x32xf32>
    %88 = arith.mulf %84, %87 : vector<8x32xf32>
    %c0_63 = arith.constant 0 : index
    %c0_64 = arith.constant 0 : index
    %c0_65 = arith.constant 0 : index
    %89 = vector.load %arg40[%c0_63, %c0_64, %c0_65] : memref<1x8x32xf32, #tpu.memory_space<vmem>>, vector<1x8x32xf32>
    %90 = vector.shape_cast %89 : vector<1x8x32xf32> to vector<8x32xf32>
    %91 = vector.shape_cast %88 : vector<8x32xf32> to vector<1x8x32xf32>
    tpu.vector_store %arg40[%c0_63, %c0_64, %c0_65], %91 {strides = array<i32>} : memref<1x8x32xf32, #tpu.memory_space<vmem>>, vector<1x8x32xf32>,
    %c0_66 = arith.constant 0 : index
    %c0_67 = arith.constant 0 : index
    %c0_68 = arith.constant 0 : index
    %92 = vector.load %arg3[%c0_66, %c0_67, %c0_68] : memref<1x16x16xf32, #tpu.memory_space<vmem>>, vector<1x16x16xf32>
    %93 = vector.shape_cast %92 : vector<1x16x16xf32> to vector<16x16xf32>
    %cst_69 = arith.constant 0.000000e+00 : f32
    %94 = vector.broadcast %cst_69 : f32 to vector<2x16xf32>
    %95 = tpu.concatenate %94, %93, %94 in 0 : vector<2x16xf32>, vector<16x16xf32>, vector<2x16xf32> -> vector<20x16xf32>
    %96 = arith.truncf %95 : vector<20x16xf32> to vector<20x16xbf16>
    %c0_70 = arith.constant 0 : index
    %c0_71 = arith.constant 0 : index
    %97 = vector.load %arg15[%c0_70, %c0_71] : memref<1x32xf32, #tpu.memory_space<vmem>>, vector<1x32xf32>
    %98 = vector.extract_strided_slice %96 {offsets = [0, 0], sizes = [16, 16], strides = [1, 1]} : vector<20x16xbf16> to vector<16x16xbf16>
    %c0_72 = arith.constant 0 : index
    %c0_73 = arith.constant 0 : index
    %c0_74 = arith.constant 0 : index
    %99 = vector.load %arg14[%c0_72, %c0_73, %c0_74] : memref<5x16x32xbf16, #tpu.memory_space<vmem>>, vector<1x16x32xbf16>
    %100 = vector.shape_cast %99 : vector<1x16x32xbf16> to vector<16x32xbf16>
    %cst_75 = arith.constant dense<0.000000e+00> : vector<16x32xf32>
    %101 = tpu.matmul %98, %100, %cst_75 {dimension_numbers = #tpu.dot_dimension_numbers<[1], [0], [0], [1], [0, 0, 1, 1], [], []>} : vector<16x16xbf16>, vector<16x32xbf16>, vector<16x32xf32> -> vector<16x32xf32>
    %102 = vector.broadcast %97 : vector<1x32xf32> to vector<16x32xf32>
    %103 = arith.addf %102, %101 : vector<16x32xf32>
    %104 = vector.extract_strided_slice %96 {offsets = [1, 0], sizes = [16, 16], strides = [1, 1]} : vector<20x16xbf16> to vector<16x16xbf16>
    %c1_76 = arith.constant 1 : index
    %c0_77 = arith.constant 0 : index
    %c0_78 = arith.constant 0 : index
    %105 = vector.load %arg14[%c1_76, %c0_77, %c0_78] : memref<5x16x32xbf16, #tpu.memory_space<vmem>>, vector<1x16x32xbf16>
    %106 = vector.shape_cast %105 : vector<1x16x32xbf16> to vector<16x32xbf16>
    %cst_79 = arith.constant dense<0.000000e+00> : vector<16x32xf32>
    %107 = tpu.matmul %104, %106, %cst_79 {dimension_numbers = #tpu.dot_dimension_numbers<[1], [0], [0], [1], [0, 0, 1, 1], [], []>} : vector<16x16xbf16>, vector<16x32xbf16>, vector<16x32xf32> -> vector<16x32xf32>
    %108 = arith.addf %103, %107 : vector<16x32xf32>
    %109 = vector.extract_strided_slice %96 {offsets = [2, 0], sizes = [16, 16], strides = [1, 1]} : vector<20x16xbf16> to vector<16x16xbf16>
    %c2_80 = arith.constant 2 : index
    %c0_81 = arith.constant 0 : index
    %c0_82 = arith.constant 0 : index
    %110 = vector.load %arg14[%c2_80, %c0_81, %c0_82] : memref<5x16x32xbf16, #tpu.memory_space<vmem>>, vector<1x16x32xbf16>
    %111 = vector.shape_cast %110 : vector<1x16x32xbf16> to vector<16x32xbf16>
    %cst_83 = arith.constant dense<0.000000e+00> : vector<16x32xf32>
    %112 = tpu.matmul %109, %111, %cst_83 {dimension_numbers = #tpu.dot_dimension_numbers<[1], [0], [0], [1], [0, 0, 1, 1], [], []>} : vector<16x16xbf16>, vector<16x32xbf16>, vector<16x32xf32> -> vector<16x32xf32>
    %113 = arith.addf %108, %112 : vector<16x32xf32>
    %114 = vector.extract_strided_slice %96 {offsets = [3, 0], sizes = [16, 16], strides = [1, 1]} : vector<20x16xbf16> to vector<16x16xbf16>
    %c3_84 = arith.constant 3 : index
    %c0_85 = arith.constant 0 : index
    %c0_86 = arith.constant 0 : index
    %115 = vector.load %arg14[%c3_84, %c0_85, %c0_86] : memref<5x16x32xbf16, #tpu.memory_space<vmem>>, vector<1x16x32xbf16>
    %116 = vector.shape_cast %115 : vector<1x16x32xbf16> to vector<16x32xbf16>
    %cst_87 = arith.constant dense<0.000000e+00> : vector<16x32xf32>
    %117 = tpu.matmul %114, %116, %cst_87 {dimension_numbers = #tpu.dot_dimension_numbers<[1], [0], [0], [1], [0, 0, 1, 1], [], []>} : vector<16x16xbf16>, vector<16x32xbf16>, vector<16x32xf32> -> vector<16x32xf32>
    %118 = arith.addf %113, %117 : vector<16x32xf32>
    %119 = vector.extract_strided_slice %96 {offsets = [4, 0], sizes = [16, 16], strides = [1, 1]} : vector<20x16xbf16> to vector<16x16xbf16>
    %c4_88 = arith.constant 4 : index
    %c0_89 = arith.constant 0 : index
    %c0_90 = arith.constant 0 : index
    %120 = vector.load %arg14[%c4_88, %c0_89, %c0_90] : memref<5x16x32xbf16, #tpu.memory_space<vmem>>, vector<1x16x32xbf16>
    %121 = vector.shape_cast %120 : vector<1x16x32xbf16> to vector<16x32xbf16>
    %cst_91 = arith.constant dense<0.000000e+00> : vector<16x32xf32>
    %122 = tpu.matmul %119, %121, %cst_91 {dimension_numbers = #tpu.dot_dimension_numbers<[1], [0], [0], [1], [0, 0, 1, 1], [], []>} : vector<16x16xbf16>, vector<16x32xbf16>, vector<16x32xf32> -> vector<16x32xf32>
    %123 = arith.addf %118, %122 : vector<16x32xf32>
    %cst_92 = arith.constant 0.000000e+00 : f32
    %124 = vector.broadcast %cst_92 : f32 to vector<16x32xf32>
    %125 = arith.maximumf %123, %124 : vector<16x32xf32>
    %126 = arith.truncf %125 : vector<16x32xf32> to vector<16x32xbf16>
    %c0_93 = arith.constant 0 : index
    %c0_94 = arith.constant 0 : index
    %127 = vector.load %arg16[%c0_93, %c0_94] : memref<32x32xbf16, #tpu.memory_space<vmem>>, vector<32x32xbf16>
    %cst_95 = arith.constant dense<0.000000e+00> : vector<16x32xf32>
    %128 = tpu.matmul %126, %127, %cst_95 {dimension_numbers = #tpu.dot_dimension_numbers<[1], [0], [0], [1], [0, 0, 1, 1], [], []>} : vector<16x32xbf16>, vector<32x32xbf16>, vector<16x32xf32> -> vector<16x32xf32>
    %c0_96 = arith.constant 0 : index
    %c0_97 = arith.constant 0 : index
    %129 = vector.load %arg17[%c0_96, %c0_97] : memref<1x32xf32, #tpu.memory_space<vmem>>, vector<1x32xf32>
    %130 = vector.broadcast %129 : vector<1x32xf32> to vector<16x32xf32>
    %131 = arith.addf %128, %130 : vector<16x32xf32>
    %132 = math.tanh %131 : vector<16x32xf32>
    %133 = arith.truncf %132 : vector<16x32xf32> to vector<16x32xbf16>
    %c0_98 = arith.constant 0 : index
    %c0_99 = arith.constant 0 : index
    %c0_100 = arith.constant 0 : index
    %134 = vector.load %arg2[%c0_98, %c0_99, %c0_100] : memref<1x9x32xf32, #tpu.memory_space<vmem>>, vector<1x9x32xf32>
    %135 = vector.shape_cast %134 : vector<1x9x32xf32> to vector<9x32xf32>
    %136 = arith.truncf %135 : vector<9x32xf32> to vector<9x32xbf16>
    %c0_101 = arith.constant 0 : index
    %c0_102 = arith.constant 0 : index
    %137 = vector.load %arg18[%c0_101, %c0_102] : memref<32x32xbf16, #tpu.memory_space<vmem>>, vector<32x32xbf16>
    %cst_103 = arith.constant dense<0.000000e+00> : vector<9x32xf32>
    %138 = tpu.matmul %136, %137, %cst_103 {dimension_numbers = #tpu.dot_dimension_numbers<[1], [0], [0], [1], [0, 0, 1, 1], [], []>} : vector<9x32xbf16>, vector<32x32xbf16>, vector<9x32xf32> -> vector<9x32xf32>
    %c0_104 = arith.constant 0 : index
    %c0_105 = arith.constant 0 : index
    %139 = vector.load %arg19[%c0_104, %c0_105] : memref<1x32xf32, #tpu.memory_space<vmem>>, vector<1x32xf32>
    %140 = vector.broadcast %139 : vector<1x32xf32> to vector<9x32xf32>
    %141 = arith.addf %138, %140 : vector<9x32xf32>
    %142 = arith.truncf %141 : vector<9x32xf32> to vector<9x32xbf16>
    %cst_106 = arith.constant dense<0.000000e+00> : vector<9x16xf32>
    %143 = tpu.matmul %142, %133, %cst_106 {dimension_numbers = #tpu.dot_dimension_numbers<[1], [1], [0], [0], [0, 0, 1, 0], [], []>} : vector<9x32xbf16>, vector<16x32xbf16>, vector<9x16xf32> -> vector<9x16xf32>
    %144 = vector.broadcast %11 : vector<1x16xf32> to vector<9x16xf32>
    %145 = arith.addf %143, %144 : vector<9x16xf32>
    %cst_107 = arith.constant dense<0xFF800000> : vector<9xf32>
    %146 = vector.multi_reduction <maximumf>, %145, %cst_107 [1] : vector<9x16xf32> to vector<9xf32>
    %147 = vector.shape_cast %146 : vector<9xf32> to vector<9x1xf32>
    %148 = vector.broadcast %147 : vector<9x1xf32> to vector<9x16xf32>
    %149 = arith.subf %145, %148 : vector<9x16xf32>
    %150 = math.exp %149 : vector<9x16xf32>
    %cst_108 = arith.constant dense<0.000000e+00> : vector<9xf32>
    %151 = vector.multi_reduction <add>, %150, %cst_108 [1] : vector<9x16xf32> to vector<9xf32>
    %152 = vector.shape_cast %151 : vector<9xf32> to vector<9x1xf32>
    %153 = vector.broadcast %152 : vector<9x1xf32> to vector<9x16xf32>
    %154 = arith.divf %150, %153 : vector<9x16xf32>
    %155 = arith.truncf %154 : vector<9x16xf32> to vector<9x16xbf16>
    %cst_109 = arith.constant dense<0.000000e+00> : vector<9x32xf32>
    %156 = tpu.matmul %155, %133, %cst_109 {dimension_numbers = #tpu.dot_dimension_numbers<[1], [0], [0], [1], [0, 0, 1, 1], [], []>} : vector<9x16xbf16>, vector<16x32xbf16>, vector<9x32xf32> -> vector<9x32xf32>
    %c0_110 = arith.constant 0 : index
    %c0_111 = arith.constant 0 : index
    %157 = vector.load %arg20[%c0_110, %c0_111] : memref<32x32xbf16, #tpu.memory_space<vmem>>, vector<32x32xbf16>
    %cst_112 = arith.constant dense<0.000000e+00> : vector<9x32xf32>
    %158 = tpu.matmul %142, %157, %cst_112 {dimension_numbers = #tpu.dot_dimension_numbers<[1], [0], [0], [1], [0, 0, 1, 1], [], []>} : vector<9x32xbf16>, vector<32x32xbf16>, vector<9x32xf32> -> vector<9x32xf32>
    %159 = arith.truncf %156 : vector<9x32xf32> to vector<9x32xbf16>
    %c0_113 = arith.constant 0 : index
    %c0_114 = arith.constant 0 : index
    %160 = vector.load %arg21[%c0_113, %c0_114] : memref<32x32xbf16, #tpu.memory_space<vmem>>, vector<32x32xbf16>
    %cst_115 = arith.constant dense<0.000000e+00> : vector<9x32xf32>
    %161 = tpu.matmul %159, %160, %cst_115 {dimension_numbers = #tpu.dot_dimension_numbers<[1], [0], [0], [1], [0, 0, 1, 1], [], []>} : vector<9x32xbf16>, vector<32x32xbf16>, vector<9x32xf32> -> vector<9x32xf32>
    %162 = arith.addf %158, %161 : vector<9x32xf32>
    %c0_116 = arith.constant 0 : index
    %c0_117 = arith.constant 0 : index
    %163 = vector.load %arg22[%c0_116, %c0_117] : memref<1x32xf32, #tpu.memory_space<vmem>>, vector<1x32xf32>
    %164 = vector.broadcast %163 : vector<1x32xf32> to vector<9x32xf32>
    %165 = arith.addf %162, %164 : vector<9x32xf32>
    %166 = math.tanh %165 : vector<9x32xf32>
    %c0_118 = arith.constant 0 : index
    %c0_119 = arith.constant 0 : index
    %c0_120 = arith.constant 0 : index
    %167 = vector.load %arg41[%c0_118, %c0_119, %c0_120] : memref<1x9x32xf32, #tpu.memory_space<vmem>>, vector<1x9x32xf32>
    %168 = vector.shape_cast %167 : vector<1x9x32xf32> to vector<9x32xf32>
    %169 = vector.shape_cast %166 : vector<9x32xf32> to vector<1x9x32xf32>
    tpu.vector_store %arg41[%c0_118, %c0_119, %c0_120], %169 {strides = array<i32>} : memref<1x9x32xf32, #tpu.memory_space<vmem>>, vector<1x9x32xf32>,
    %170 = arith.truncf %166 : vector<9x32xf32> to vector<9x32xbf16>
    %c0_121 = arith.constant 0 : index
    %c0_122 = arith.constant 0 : index
    %171 = vector.load %arg23[%c0_121, %c0_122] : memref<32x15xbf16, #tpu.memory_space<vmem>>, vector<32x15xbf16>
    %cst_123 = arith.constant dense<0.000000e+00> : vector<9x15xf32>
    %172 = tpu.matmul %170, %171, %cst_123 {dimension_numbers = #tpu.dot_dimension_numbers<[1], [0], [0], [1], [0, 0, 1, 1], [], []>} : vector<9x32xbf16>, vector<32x15xbf16>, vector<9x15xf32> -> vector<9x15xf32>
    %c0_124 = arith.constant 0 : index
    %c0_125 = arith.constant 0 : index
    %173 = vector.load %arg24[%c0_124, %c0_125] : memref<1x15xf32, #tpu.memory_space<vmem>>, vector<1x15xf32>
    %174 = vector.broadcast %173 : vector<1x15xf32> to vector<9x15xf32>
    %175 = arith.addf %172, %174 : vector<9x15xf32>
    %c0_126 = arith.constant 0 : index
    %c0_127 = arith.constant 0 : index
    %c0_128 = arith.constant 0 : index
    %176 = vector.load %arg42[%c0_126, %c0_127, %c0_128] : memref<1x9x15xf32, #tpu.memory_space<vmem>>, vector<1x9x15xf32>
    %177 = vector.shape_cast %176 : vector<1x9x15xf32> to vector<9x15xf32>
    %178 = vector.shape_cast %175 : vector<9x15xf32> to vector<1x9x15xf32>
    tpu.vector_store %arg42[%c0_126, %c0_127, %c0_128], %178 {strides = array<i32>} : memref<1x9x15xf32, #tpu.memory_space<vmem>>, vector<1x9x15xf32>,
    %c0_129 = arith.constant 0 : index
    %c0_130 = arith.constant 0 : index
    %c0_131 = arith.constant 0 : index
    %179 = vector.load %arg43[%c0_129, %c0_130, %c0_131] : memref<1x9x16xf32, #tpu.memory_space<vmem>>, vector<1x9x16xf32>
    %180 = vector.shape_cast %179 : vector<1x9x16xf32> to vector<9x16xf32>
    %181 = vector.shape_cast %154 : vector<9x16xf32> to vector<1x9x16xf32>
    tpu.vector_store %arg43[%c0_129, %c0_130, %c0_131], %181 {strides = array<i32>} : memref<1x9x16xf32, #tpu.memory_space<vmem>>, vector<1x9x16xf32>,
    %c0_132 = arith.constant 0 : index
    %c0_133 = arith.constant 0 : index
    %c0_134 = arith.constant 0 : index
    %182 = vector.load %arg3[%c0_132, %c0_133, %c0_134] : memref<1x16x16xf32, #tpu.memory_space<vmem>>, vector<1x16x16xf32>
    %183 = vector.shape_cast %182 : vector<1x16x16xf32> to vector<16x16xf32>
    %184 = arith.truncf %183 : vector<16x16xf32> to vector<16x16xbf16>
    %c0_135 = arith.constant 0 : index
    %c0_136 = arith.constant 0 : index
    %185 = vector.load %arg25[%c0_135, %c0_136] : memref<16x32xbf16, #tpu.memory_space<vmem>>, vector<16x32xbf16>
    %cst_137 = arith.constant dense<0.000000e+00> : vector<16x32xf32>
    %186 = tpu.matmul %184, %185, %cst_137 {dimension_numbers = #tpu.dot_dimension_numbers<[1], [0], [0], [1], [0, 0, 1, 1], [], []>} : vector<16x16xbf16>, vector<16x32xbf16>, vector<16x32xf32> -> vector<16x32xf32>
    %c0_138 = arith.constant 0 : index
    %c0_139 = arith.constant 0 : index
    %187 = vector.load %arg26[%c0_138, %c0_139] : memref<1x32xf32, #tpu.memory_space<vmem>>, vector<1x32xf32>
    %188 = vector.broadcast %187 : vector<1x32xf32> to vector<16x32xf32>
    %189 = arith.addf %186, %188 : vector<16x32xf32>
    %190 = math.tanh %189 : vector<16x32xf32>
    %191 = arith.truncf %190 : vector<16x32xf32> to vector<16x32xbf16>
    %192 = arith.truncf %88 : vector<8x32xf32> to vector<8x32xbf16>
    %cst_140 = arith.constant dense<0.000000e+00> : vector<16x8xf32>
    %193 = tpu.matmul %191, %192, %cst_140 {dimension_numbers = #tpu.dot_dimension_numbers<[1], [1], [0], [0], [0, 0, 1, 0], [], []>} : vector<16x32xbf16>, vector<8x32xbf16>, vector<16x8xf32> -> vector<16x8xf32>
    %cst_141 = arith.constant 0.176776692 : f32
    %194 = vector.broadcast %cst_141 : f32 to vector<16x8xf32>
    %195 = arith.mulf %193, %194 : vector<16x8xf32>
    %196 = vector.broadcast %5 : vector<1x8xf32> to vector<16x8xf32>
    %197 = arith.addf %195, %196 : vector<16x8xf32>
    %cst_142 = arith.constant dense<0xFF800000> : vector<16xf32>
    %198 = vector.multi_reduction <maximumf>, %197, %cst_142 [1] : vector<16x8xf32> to vector<16xf32>
    %199 = vector.shape_cast %198 : vector<16xf32> to vector<16x1xf32>
    %200 = vector.broadcast %199 : vector<16x1xf32> to vector<16x8xf32>
    %201 = arith.subf %197, %200 : vector<16x8xf32>
    %202 = math.exp %201 : vector<16x8xf32>
    %cst_143 = arith.constant dense<0.000000e+00> : vector<16xf32>
    %203 = vector.multi_reduction <add>, %202, %cst_143 [1] : vector<16x8xf32> to vector<16xf32>
    %204 = vector.shape_cast %203 : vector<16xf32> to vector<16x1xf32>
    %205 = vector.broadcast %204 : vector<16x1xf32> to vector<16x8xf32>
    %206 = arith.divf %202, %205 : vector<16x8xf32>
    %c0_144 = arith.constant 0 : index
    %c0_145 = arith.constant 0 : index
    %c0_146 = arith.constant 0 : index
    %207 = vector.load %arg45[%c0_144, %c0_145, %c0_146] : memref<1x16x8xf32, #tpu.memory_space<vmem>>, vector<1x16x8xf32>
    %208 = vector.shape_cast %207 : vector<1x16x8xf32> to vector<16x8xf32>
    %209 = vector.shape_cast %206 : vector<16x8xf32> to vector<1x16x8xf32>
    tpu.vector_store %arg45[%c0_144, %c0_145, %c0_146], %209 {strides = array<i32>} : memref<1x16x8xf32, #tpu.memory_space<vmem>>, vector<1x16x8xf32>,
    %c0_147 = arith.constant 0 : index
    %c0_148 = arith.constant 0 : index
    %c0_149 = arith.constant 0 : index
    %210 = vector.load %arg7[%c0_147, %c0_148, %c0_149] : memref<1x1x16xf32, #tpu.memory_space<vmem>>, vector<1x1x16xf32>
    %211 = vector.shape_cast %210 : vector<1x1x16xf32> to vector<1x16xf32>
    %212 = arith.truncf %211 : vector<1x16xf32> to vector<1x16xbf16>
    %cst_150 = arith.constant dense<0.000000e+00> : vector<1x32xf32>
    %213 = tpu.matmul %212, %191, %cst_150 {dimension_numbers = #tpu.dot_dimension_numbers<[1], [0], [0], [1], [0, 0, 1, 1], [], []>} : vector<1x16xbf16>, vector<16x32xbf16>, vector<1x32xf32> -> vector<1x32xf32>
    %cst_151 = arith.constant dense<0.000000e+00> : vector<1xf32>
    %214 = vector.multi_reduction <add>, %211, %cst_151 [1] : vector<1x16xf32> to vector<1xf32>
    %215 = vector.shape_cast %214 : vector<1xf32> to vector<1x1xf32>
    %cst_152 = arith.constant 1.000000e+00 : f32
    %216 = vector.broadcast %cst_152 : f32 to vector<1x1xf32>
    %217 = arith.maximumf %215, %216 : vector<1x1xf32>
    %218 = vector.broadcast %217 : vector<1x1xf32> to vector<1x32xf32>
    %219 = arith.divf %213, %218 : vector<1x32xf32>
    %220 = arith.truncf %219 : vector<1x32xf32> to vector<1x32xbf16>
    %c0_153 = arith.constant 0 : index
    %c0_154 = arith.constant 0 : index
    %221 = vector.load %arg27[%c0_153, %c0_154] : memref<32x20xbf16, #tpu.memory_space<vmem>>, vector<32x20xbf16>
    %cst_155 = arith.constant dense<0.000000e+00> : vector<1x20xf32>
    %222 = tpu.matmul %220, %221, %cst_155 {dimension_numbers = #tpu.dot_dimension_numbers<[1], [0], [0], [1], [0, 0, 1, 1], [], []>} : vector<1x32xbf16>, vector<32x20xbf16>, vector<1x20xf32> -> vector<1x20xf32>
    %c0_156 = arith.constant 0 : index
    %c0_157 = arith.constant 0 : index
    %223 = vector.load %arg28[%c0_156, %c0_157] : memref<1x20xf32, #tpu.memory_space<vmem>>, vector<1x20xf32>
    %224 = arith.addf %222, %223 : vector<1x20xf32>
    %225 = math.tanh %224 : vector<1x20xf32>
    %226 = tpu.iota {dimensions = array<i32: 1>} : vector<1x20xi32>
    %c16_i32 = arith.constant 16 : i32
    %227 = vector.broadcast %c16_i32 : i32 to vector<1x20xi32>
    %228 = arith.cmpi slt, %226, %227 : vector<1x20xi32>
    %229 = arith.select %228, %225, %224 : vector<1x20xi1>, vector<1x20xf32>
    %c0_158 = arith.constant 0 : index
    %c0_159 = arith.constant 0 : index
    %c0_160 = arith.constant 0 : index
    %230 = vector.load %arg44[%c0_158, %c0_159, %c0_160] : memref<1x1x20xf32, #tpu.memory_space<vmem>>, vector<1x1x20xf32>
    %231 = vector.shape_cast %230 : vector<1x1x20xf32> to vector<1x20xf32>
    %232 = vector.shape_cast %229 : vector<1x20xf32> to vector<1x1x20xf32>
    tpu.vector_store %arg44[%c0_158, %c0_159, %c0_160], %232 {strides = array<i32>} : memref<1x1x20xf32, #tpu.memory_space<vmem>>, vector<1x1x20xf32>,
    %233 = vector.extract_strided_slice %225 {offsets = [0, 0], sizes = [1, 16], strides = [1, 1]} : vector<1x20xf32> to vector<1x16xf32>
    %234 = arith.truncf %88 : vector<8x32xf32> to vector<8x32xbf16>
    %c0_161 = arith.constant 0 : index
    %c0_162 = arith.constant 0 : index
    %235 = vector.load %arg29[%c0_161, %c0_162] : memref<32x32xbf16, #tpu.memory_space<vmem>>, vector<32x32xbf16>
    %cst_163 = arith.constant dense<0.000000e+00> : vector<8x32xf32>
    %236 = tpu.matmul %234, %235, %cst_163 {dimension_numbers = #tpu.dot_dimension_numbers<[1], [0], [0], [1], [0, 0, 1, 1], [], []>} : vector<8x32xbf16>, vector<32x32xbf16>, vector<8x32xf32> -> vector<8x32xf32>
    %c0_164 = arith.constant 0 : index
    %c0_165 = arith.constant 0 : index
    %237 = vector.load %arg30[%c0_164, %c0_165] : memref<1x32xf32, #tpu.memory_space<vmem>>, vector<1x32xf32>
    %238 = vector.broadcast %237 : vector<1x32xf32> to vector<8x32xf32>
    %239 = arith.addf %236, %238 : vector<8x32xf32>
    %cst_166 = arith.constant 0.000000e+00 : f32
    %240 = vector.broadcast %cst_166 : f32 to vector<8x32xf32>
    %241 = arith.maximumf %239, %240 : vector<8x32xf32>
    %242 = arith.truncf %241 : vector<8x32xf32> to vector<8x32xbf16>
    %243 = arith.truncf %233 : vector<1x16xf32> to vector<1x16xbf16>
    %c0_167 = arith.constant 0 : index
    %c0_168 = arith.constant 0 : index
    %244 = vector.load %arg33[%c0_167, %c0_168] : memref<32x32xbf16, #tpu.memory_space<vmem>>, vector<32x32xbf16>
    %cst_169 = arith.constant dense<0.000000e+00> : vector<8x32xf32>
    %245 = tpu.matmul %242, %244, %cst_169 {dimension_numbers = #tpu.dot_dimension_numbers<[1], [0], [0], [1], [0, 0, 1, 1], [], []>} : vector<8x32xbf16>, vector<32x32xbf16>, vector<8x32xf32> -> vector<8x32xf32>
    %c0_170 = arith.constant 0 : index
    %c0_171 = arith.constant 0 : index
    %246 = vector.load %arg34[%c0_170, %c0_171] : memref<16x32xbf16, #tpu.memory_space<vmem>>, vector<16x32xbf16>
    %cst_172 = arith.constant dense<0.000000e+00> : vector<1x32xf32>
    %247 = tpu.matmul %243, %246, %cst_172 {dimension_numbers = #tpu.dot_dimension_numbers<[1], [0], [0], [1], [0, 0, 1, 1], [], []>} : vector<1x16xbf16>, vector<16x32xbf16>, vector<1x32xf32> -> vector<1x32xf32>
    %248 = vector.broadcast %247 : vector<1x32xf32> to vector<8x32xf32>
    %249 = arith.addf %245, %248 : vector<8x32xf32>
    %c0_173 = arith.constant 0 : index
    %c0_174 = arith.constant 0 : index
    %250 = vector.load %arg35[%c0_173, %c0_174] : memref<1x32xf32, #tpu.memory_space<vmem>>, vector<1x32xf32>
    %251 = vector.broadcast %250 : vector<1x32xf32> to vector<8x32xf32>
    %252 = arith.addf %249, %251 : vector<8x32xf32>
    %253 = arith.truncf %252 : vector<8x32xf32> to vector<8x32xbf16>
    %c0_175 = arith.constant 0 : index
    %c0_176 = arith.constant 0 : index
    %c0_177 = arith.constant 0 : index
    %254 = vector.load %arg4[%c0_175, %c0_176, %c0_177] : memref<1x8x32xf32, #tpu.memory_space<vmem>>, vector<1x8x32xf32>
    %255 = vector.shape_cast %254 : vector<1x8x32xf32> to vector<8x32xf32>
    %256 = arith.truncf %255 : vector<8x32xf32> to vector<8x32xbf16>
    %c0_178 = arith.constant 0 : index
    %c0_179 = arith.constant 0 : index
    %257 = vector.load %arg31[%c0_178, %c0_179] : memref<32x32xbf16, #tpu.memory_space<vmem>>, vector<32x32xbf16>
    %cst_180 = arith.constant dense<0.000000e+00> : vector<8x32xf32>
    %258 = tpu.matmul %256, %257, %cst_180 {dimension_numbers = #tpu.dot_dimension_numbers<[1], [0], [0], [1], [0, 0, 1, 1], [], []>} : vector<8x32xbf16>, vector<32x32xbf16>, vector<8x32xf32> -> vector<8x32xf32>
    %c0_181 = arith.constant 0 : index
    %c0_182 = arith.constant 0 : index
    %259 = vector.load %arg32[%c0_181, %c0_182] : memref<1x32xf32, #tpu.memory_space<vmem>>, vector<1x32xf32>
    %260 = vector.broadcast %259 : vector<1x32xf32> to vector<8x32xf32>
    %261 = arith.addf %258, %260 : vector<8x32xf32>
    %cst_183 = arith.constant 0.000000e+00 : f32
    %262 = vector.broadcast %cst_183 : f32 to vector<8x32xf32>
    %263 = arith.maximumf %261, %262 : vector<8x32xf32>
    %264 = arith.truncf %263 : vector<8x32xf32> to vector<8x32xbf16>
    %cst_184 = arith.constant dense<0.000000e+00> : vector<8x8xf32>
    %265 = tpu.matmul %264, %253, %cst_184 {dimension_numbers = #tpu.dot_dimension_numbers<[1], [1], [0], [0], [0, 0, 1, 0], [], []>} : vector<8x32xbf16>, vector<8x32xbf16>, vector<8x8xf32> -> vector<8x8xf32>
    %266 = vector.broadcast %5 : vector<1x8xf32> to vector<8x8xf32>
    %267 = arith.addf %265, %266 : vector<8x8xf32>
    %cst_185 = arith.constant dense<0xFF800000> : vector<8xf32>
    %268 = vector.multi_reduction <maximumf>, %267, %cst_185 [1] : vector<8x8xf32> to vector<8xf32>
    %269 = vector.shape_cast %268 : vector<8xf32> to vector<8x1xf32>
    %270 = vector.broadcast %269 : vector<8x1xf32> to vector<8x8xf32>
    %271 = arith.subf %267, %270 : vector<8x8xf32>
    %272 = math.exp %271 : vector<8x8xf32>
    %cst_186 = arith.constant dense<0.000000e+00> : vector<8xf32>
    %273 = vector.multi_reduction <add>, %272, %cst_186 [1] : vector<8x8xf32> to vector<8xf32>
    %274 = vector.shape_cast %273 : vector<8xf32> to vector<8x1xf32>
    %275 = vector.broadcast %274 : vector<8x1xf32> to vector<8x8xf32>
    %276 = arith.divf %272, %275 : vector<8x8xf32>
    %277 = arith.truncf %276 : vector<8x8xf32> to vector<8x8xbf16>
    %cst_187 = arith.constant dense<0.000000e+00> : vector<8x32xf32>
    %278 = tpu.matmul %277, %242, %cst_187 {dimension_numbers = #tpu.dot_dimension_numbers<[1], [0], [0], [1], [0, 0, 1, 1], [], []>} : vector<8x8xbf16>, vector<8x32xbf16>, vector<8x32xf32> -> vector<8x32xf32>
    %cst_188 = arith.constant dense<0.000000e+00> : vector<8xf32>
    %279 = vector.multi_reduction <add>, %276, %cst_188 [1] : vector<8x8xf32> to vector<8xf32>
    %280 = vector.shape_cast %279 : vector<8xf32> to vector<8x1xf32>
    %281 = arith.truncf %278 : vector<8x32xf32> to vector<8x32xbf16>
    %c0_189 = arith.constant 0 : index
    %c0_190 = arith.constant 0 : index
    %282 = vector.load %arg36[%c0_189, %c0_190] : memref<32x33xbf16, #tpu.memory_space<vmem>>, vector<32x33xbf16>
    %cst_191 = arith.constant dense<0.000000e+00> : vector<8x33xf32>
    %283 = tpu.matmul %281, %282, %cst_191 {dimension_numbers = #tpu.dot_dimension_numbers<[1], [0], [0], [1], [0, 0, 1, 1], [], []>} : vector<8x32xbf16>, vector<32x33xbf16>, vector<8x33xf32> -> vector<8x33xf32>
    %c0_192 = arith.constant 0 : index
    %c0_193 = arith.constant 0 : index
    %284 = vector.load %arg37[%c0_192, %c0_193] : memref<16x33xbf16, #tpu.memory_space<vmem>>, vector<16x33xbf16>
    %cst_194 = arith.constant dense<0.000000e+00> : vector<1x33xf32>
    %285 = tpu.matmul %243, %284, %cst_194 {dimension_numbers = #tpu.dot_dimension_numbers<[1], [0], [0], [1], [0, 0, 1, 1], [], []>} : vector<1x16xbf16>, vector<16x33xbf16>, vector<1x33xf32> -> vector<1x33xf32>
    %286 = vector.broadcast %280 : vector<8x1xf32> to vector<8x33xf32>
    %287 = vector.broadcast %285 : vector<1x33xf32> to vector<8x33xf32>
    %288 = arith.mulf %286, %287 : vector<8x33xf32>
    %289 = arith.addf %283, %288 : vector<8x33xf32>
    %c0_195 = arith.constant 0 : index
    %c0_196 = arith.constant 0 : index
    %290 = vector.load %arg38[%c0_195, %c0_196] : memref<32x33xbf16, #tpu.memory_space<vmem>>, vector<32x33xbf16>
    %cst_197 = arith.constant dense<0.000000e+00> : vector<8x33xf32>
    %291 = tpu.matmul %264, %290, %cst_197 {dimension_numbers = #tpu.dot_dimension_numbers<[1], [0], [0], [1], [0, 0, 1, 1], [], []>} : vector<8x32xbf16>, vector<32x33xbf16>, vector<8x33xf32> -> vector<8x33xf32>
    %292 = arith.addf %289, %291 : vector<8x33xf32>
    %c0_198 = arith.constant 0 : index
    %c0_199 = arith.constant 0 : index
    %293 = vector.load %arg39[%c0_198, %c0_199] : memref<1x33xf32, #tpu.memory_space<vmem>>, vector<1x33xf32>
    %294 = vector.broadcast %293 : vector<1x33xf32> to vector<8x33xf32>
    %295 = arith.addf %292, %294 : vector<8x33xf32>
    %c0_200 = arith.constant 0 : index
    %c0_201 = arith.constant 0 : index
    %c0_202 = arith.constant 0 : index
    %296 = vector.load %arg46[%c0_200, %c0_201, %c0_202] : memref<1x8x33xf32, #tpu.memory_space<vmem>>, vector<1x8x33xf32>
    %297 = vector.shape_cast %296 : vector<1x8x33xf32> to vector<8x33xf32>
    %298 = vector.shape_cast %295 : vector<8x33xf32> to vector<1x8x33xf32>
    tpu.vector_store %arg46[%c0_200, %c0_201, %c0_202], %298 {strides = array<i32>} : memref<1x8x33xf32, #tpu.memory_space<vmem>>, vector<1x8x33xf32>,
    %c0_203 = arith.constant 0 : index
    %c0_204 = arith.constant 0 : index
    %c0_205 = arith.constant 0 : index
    %299 = vector.load %arg47[%c0_203, %c0_204, %c0_205] : memref<1x8x8xf32, #tpu.memory_space<vmem>>, vector<1x8x8xf32>
    %300 = vector.shape_cast %299 : vector<1x8x8xf32> to vector<8x8xf32>
    %301 = vector.shape_cast %276 : vector<8x8xf32> to vector<1x8x8xf32>
    tpu.vector_store %arg47[%c0_203, %c0_204, %c0_205], %301 {strides = array<i32>} : memref<1x8x8xf32, #tpu.memory_space<vmem>>, vector<1x8x8xf32>,
    return
  }
  func.func @transform_0(%arg0: i32) -> (i32, i32, i32) {
    %c0_i32 = arith.constant 0 : i32
    %c0_i32_0 = arith.constant 0 : i32
    %c0_i32_1 = arith.constant 0 : i32
    return %arg0, %c0_i32, %c0_i32_0 : i32, i32, i32
  }
  func.func @transform_1(%arg0: i32) -> (i32, i32, i32) {
    %c0_i32 = arith.constant 0 : i32
    %c0_i32_0 = arith.constant 0 : i32
    %c0_i32_1 = arith.constant 0 : i32
    return %arg0, %c0_i32, %c0_i32_0 : i32, i32, i32
  }
  func.func @transform_2(%arg0: i32) -> (i32, i32, i32) {
    %c0_i32 = arith.constant 0 : i32
    %c0_i32_0 = arith.constant 0 : i32
    %c0_i32_1 = arith.constant 0 : i32
    return %arg0, %c0_i32, %c0_i32_0 : i32, i32, i32
  }
  func.func @transform_3(%arg0: i32) -> (i32, i32, i32) {
    %c0_i32 = arith.constant 0 : i32
    %c0_i32_0 = arith.constant 0 : i32
    %c0_i32_1 = arith.constant 0 : i32
    return %arg0, %c0_i32, %c0_i32_0 : i32, i32, i32
  }
  func.func @transform_4(%arg0: i32) -> (i32, i32, i32) {
    %c0_i32 = arith.constant 0 : i32
    %c0_i32_0 = arith.constant 0 : i32
    %c0_i32_1 = arith.constant 0 : i32
    return %arg0, %c0_i32, %c0_i32_0 : i32, i32, i32
  }
  func.func @transform_5(%arg0: i32) -> (i32, i32, i32) {
    %c0_i32 = arith.constant 0 : i32
    %c0_i32_0 = arith.constant 0 : i32
    %c0_i32_1 = arith.constant 0 : i32
    return %arg0, %c0_i32, %c0_i32_0 : i32, i32, i32
  }
  func.func @transform_6(%arg0: i32) -> (i32, i32, i32) {
    %c0_i32 = arith.constant 0 : i32
    %c0_i32_0 = arith.constant 0 : i32
    %c0_i32_1 = arith.constant 0 : i32
    return %arg0, %c0_i32, %c0_i32_0 : i32, i32, i32
  }
  func.func @transform_7(%arg0: i32) -> (i32, i32, i32) {
    %c0_i32 = arith.constant 0 : i32
    %c0_i32_0 = arith.constant 0 : i32
    %c0_i32_1 = arith.constant 0 : i32
    %c0_i32_2 = arith.constant 0 : i32
    return %c0_i32, %c0_i32_0, %c0_i32_1 : i32, i32, i32
  }
  func.func @transform_8(%arg0: i32) -> (i32, i32) {
    %c0_i32 = arith.constant 0 : i32
    %c0_i32_0 = arith.constant 0 : i32
    %c0_i32_1 = arith.constant 0 : i32
    return %c0_i32, %c0_i32_0 : i32, i32
  }
  func.func @transform_9(%arg0: i32) -> (i32, i32, i32) {
    %c0_i32 = arith.constant 0 : i32
    %c0_i32_0 = arith.constant 0 : i32
    %c0_i32_1 = arith.constant 0 : i32
    %c0_i32_2 = arith.constant 0 : i32
    return %c0_i32, %c0_i32_0, %c0_i32_1 : i32, i32, i32
  }
  func.func @transform_10(%arg0: i32) -> (i32, i32) {
    %c0_i32 = arith.constant 0 : i32
    %c0_i32_0 = arith.constant 0 : i32
    %c0_i32_1 = arith.constant 0 : i32
    return %c0_i32, %c0_i32_0 : i32, i32
  }
  func.func @transform_11(%arg0: i32) -> (i32, i32) {
    %c0_i32 = arith.constant 0 : i32
    %c0_i32_0 = arith.constant 0 : i32
    %c0_i32_1 = arith.constant 0 : i32
    return %c0_i32, %c0_i32_0 : i32, i32
  }
  func.func @transform_12(%arg0: i32) -> (i32, i32) {
    %c0_i32 = arith.constant 0 : i32
    %c0_i32_0 = arith.constant 0 : i32
    %c0_i32_1 = arith.constant 0 : i32
    return %c0_i32, %c0_i32_0 : i32, i32
  }
  func.func @transform_13(%arg0: i32) -> (i32, i32, i32) {
    %c0_i32 = arith.constant 0 : i32
    %c0_i32_0 = arith.constant 0 : i32
    %c0_i32_1 = arith.constant 0 : i32
    %c0_i32_2 = arith.constant 0 : i32
    return %c0_i32, %c0_i32_0, %c0_i32_1 : i32, i32, i32
  }
  func.func @transform_14(%arg0: i32) -> (i32, i32) {
    %c0_i32 = arith.constant 0 : i32
    %c0_i32_0 = arith.constant 0 : i32
    %c0_i32_1 = arith.constant 0 : i32
    return %c0_i32, %c0_i32_0 : i32, i32
  }
  func.func @transform_15(%arg0: i32) -> (i32, i32) {
    %c0_i32 = arith.constant 0 : i32
    %c0_i32_0 = arith.constant 0 : i32
    %c0_i32_1 = arith.constant 0 : i32
    return %c0_i32, %c0_i32_0 : i32, i32
  }
  func.func @transform_16(%arg0: i32) -> (i32, i32) {
    %c0_i32 = arith.constant 0 : i32
    %c0_i32_0 = arith.constant 0 : i32
    %c0_i32_1 = arith.constant 0 : i32
    return %c0_i32, %c0_i32_0 : i32, i32
  }
  func.func @transform_17(%arg0: i32) -> (i32, i32) {
    %c0_i32 = arith.constant 0 : i32
    %c0_i32_0 = arith.constant 0 : i32
    %c0_i32_1 = arith.constant 0 : i32
    return %c0_i32, %c0_i32_0 : i32, i32
  }
  func.func @transform_18(%arg0: i32) -> (i32, i32) {
    %c0_i32 = arith.constant 0 : i32
    %c0_i32_0 = arith.constant 0 : i32
    %c0_i32_1 = arith.constant 0 : i32
    return %c0_i32, %c0_i32_0 : i32, i32
  }
  func.func @transform_19(%arg0: i32) -> (i32, i32) {
    %c0_i32 = arith.constant 0 : i32
    %c0_i32_0 = arith.constant 0 : i32
    %c0_i32_1 = arith.constant 0 : i32
    return %c0_i32, %c0_i32_0 : i32, i32
  }
  func.func @transform_20(%arg0: i32) -> (i32, i32) {
    %c0_i32 = arith.constant 0 : i32
    %c0_i32_0 = arith.constant 0 : i32
    %c0_i32_1 = arith.constant 0 : i32
    return %c0_i32, %c0_i32_0 : i32, i32
  }
  func.func @transform_21(%arg0: i32) -> (i32, i32) {
    %c0_i32 = arith.constant 0 : i32
    %c0_i32_0 = arith.constant 0 : i32
    %c0_i32_1 = arith.constant 0 : i32
    return %c0_i32, %c0_i32_0 : i32, i32
  }
  func.func @transform_22(%arg0: i32) -> (i32, i32) {
    %c0_i32 = arith.constant 0 : i32
    %c0_i32_0 = arith.constant 0 : i32
    %c0_i32_1 = arith.constant 0 : i32
    return %c0_i32, %c0_i32_0 : i32, i32
  }
  func.func @transform_23(%arg0: i32) -> (i32, i32) {
    %c0_i32 = arith.constant 0 : i32
    %c0_i32_0 = arith.constant 0 : i32
    %c0_i32_1 = arith.constant 0 : i32
    return %c0_i32, %c0_i32_0 : i32, i32
  }
  func.func @transform_24(%arg0: i32) -> (i32, i32) {
    %c0_i32 = arith.constant 0 : i32
    %c0_i32_0 = arith.constant 0 : i32
    %c0_i32_1 = arith.constant 0 : i32
    return %c0_i32, %c0_i32_0 : i32, i32
  }
  func.func @transform_25(%arg0: i32) -> (i32, i32) {
    %c0_i32 = arith.constant 0 : i32
    %c0_i32_0 = arith.constant 0 : i32
    %c0_i32_1 = arith.constant 0 : i32
    return %c0_i32, %c0_i32_0 : i32, i32
  }
  func.func @transform_26(%arg0: i32) -> (i32, i32) {
    %c0_i32 = arith.constant 0 : i32
    %c0_i32_0 = arith.constant 0 : i32
    %c0_i32_1 = arith.constant 0 : i32
    return %c0_i32, %c0_i32_0 : i32, i32
  }
  func.func @transform_27(%arg0: i32) -> (i32, i32) {
    %c0_i32 = arith.constant 0 : i32
    %c0_i32_0 = arith.constant 0 : i32
    %c0_i32_1 = arith.constant 0 : i32
    return %c0_i32, %c0_i32_0 : i32, i32
  }
  func.func @transform_28(%arg0: i32) -> (i32, i32) {
    %c0_i32 = arith.constant 0 : i32
    %c0_i32_0 = arith.constant 0 : i32
    %c0_i32_1 = arith.constant 0 : i32
    return %c0_i32, %c0_i32_0 : i32, i32
  }
  func.func @transform_29(%arg0: i32) -> (i32, i32) {
    %c0_i32 = arith.constant 0 : i32
    %c0_i32_0 = arith.constant 0 : i32
    %c0_i32_1 = arith.constant 0 : i32
    return %c0_i32, %c0_i32_0 : i32, i32
  }
  func.func @transform_30(%arg0: i32) -> (i32, i32) {
    %c0_i32 = arith.constant 0 : i32
    %c0_i32_0 = arith.constant 0 : i32
    %c0_i32_1 = arith.constant 0 : i32
    return %c0_i32, %c0_i32_0 : i32, i32
  }
  func.func @transform_31(%arg0: i32) -> (i32, i32) {
    %c0_i32 = arith.constant 0 : i32
    %c0_i32_0 = arith.constant 0 : i32
    %c0_i32_1 = arith.constant 0 : i32
    return %c0_i32, %c0_i32_0 : i32, i32
  }
  func.func @transform_32(%arg0: i32) -> (i32, i32) {
    %c0_i32 = arith.constant 0 : i32
    %c0_i32_0 = arith.constant 0 : i32
    %c0_i32_1 = arith.constant 0 : i32
    return %c0_i32, %c0_i32_0 : i32, i32
  }
  func.func @transform_33(%arg0: i32) -> (i32, i32) {
    %c0_i32 = arith.constant 0 : i32
    %c0_i32_0 = arith.constant 0 : i32
    %c0_i32_1 = arith.constant 0 : i32
    return %c0_i32, %c0_i32_0 : i32, i32
  }
  func.func @transform_34(%arg0: i32) -> (i32, i32) {
    %c0_i32 = arith.constant 0 : i32
    %c0_i32_0 = arith.constant 0 : i32
    %c0_i32_1 = arith.constant 0 : i32
    return %c0_i32, %c0_i32_0 : i32, i32
  }
  func.func @transform_35(%arg0: i32) -> (i32, i32) {
    %c0_i32 = arith.constant 0 : i32
    %c0_i32_0 = arith.constant 0 : i32
    %c0_i32_1 = arith.constant 0 : i32
    return %c0_i32, %c0_i32_0 : i32, i32
  }
  func.func @transform_36(%arg0: i32) -> (i32, i32) {
    %c0_i32 = arith.constant 0 : i32
    %c0_i32_0 = arith.constant 0 : i32
    %c0_i32_1 = arith.constant 0 : i32
    return %c0_i32, %c0_i32_0 : i32, i32
  }
  func.func @transform_37(%arg0: i32) -> (i32, i32) {
    %c0_i32 = arith.constant 0 : i32
    %c0_i32_0 = arith.constant 0 : i32
    %c0_i32_1 = arith.constant 0 : i32
    return %c0_i32, %c0_i32_0 : i32, i32
  }
  func.func @transform_38(%arg0: i32) -> (i32, i32) {
    %c0_i32 = arith.constant 0 : i32
    %c0_i32_0 = arith.constant 0 : i32
    %c0_i32_1 = arith.constant 0 : i32
    return %c0_i32, %c0_i32_0 : i32, i32
  }
  func.func @transform_39(%arg0: i32) -> (i32, i32, i32) {
    %c0_i32 = arith.constant 0 : i32
    %c0_i32_0 = arith.constant 0 : i32
    %c0_i32_1 = arith.constant 0 : i32
    return %arg0, %c0_i32, %c0_i32_0 : i32, i32, i32
  }
  func.func @transform_40(%arg0: i32) -> (i32, i32, i32) {
    %c0_i32 = arith.constant 0 : i32
    %c0_i32_0 = arith.constant 0 : i32
    %c0_i32_1 = arith.constant 0 : i32
    return %arg0, %c0_i32, %c0_i32_0 : i32, i32, i32
  }
  func.func @transform_41(%arg0: i32) -> (i32, i32, i32) {
    %c0_i32 = arith.constant 0 : i32
    %c0_i32_0 = arith.constant 0 : i32
    %c0_i32_1 = arith.constant 0 : i32
    return %arg0, %c0_i32, %c0_i32_0 : i32, i32, i32
  }
  func.func @transform_42(%arg0: i32) -> (i32, i32, i32) {
    %c0_i32 = arith.constant 0 : i32
    %c0_i32_0 = arith.constant 0 : i32
    %c0_i32_1 = arith.constant 0 : i32
    return %arg0, %c0_i32, %c0_i32_0 : i32, i32, i32
  }
  func.func @transform_43(%arg0: i32) -> (i32, i32, i32) {
    %c0_i32 = arith.constant 0 : i32
    %c0_i32_0 = arith.constant 0 : i32
    %c0_i32_1 = arith.constant 0 : i32
    return %arg0, %c0_i32, %c0_i32_0 : i32, i32, i32
  }
  func.func @transform_44(%arg0: i32) -> (i32, i32, i32) {
    %c0_i32 = arith.constant 0 : i32
    %c0_i32_0 = arith.constant 0 : i32
    %c0_i32_1 = arith.constant 0 : i32
    return %arg0, %c0_i32, %c0_i32_0 : i32, i32, i32
  }
  func.func @transform_45(%arg0: i32) -> (i32, i32, i32) {
    %c0_i32 = arith.constant 0 : i32
    %c0_i32_0 = arith.constant 0 : i32
    %c0_i32_1 = arith.constant 0 : i32
    return %arg0, %c0_i32, %c0_i32_0 : i32, i32, i32
  }
  func.func @transform_46(%arg0: i32) -> (i32, i32, i32) {
    %c0_i32 = arith.constant 0 : i32
    %c0_i32_0 = arith.constant 0 : i32
    %c0_i32_1 = arith.constant 0 : i32
    return %arg0, %c0_i32, %c0_i32_0 : i32, i32, i32
  }
}

</mosaic_0001>

<bundles_post_ra>
// kernel: fwd.3
= control target key start
LH: loop header
LB: loop body
LE: loop exit
PB: predicated region body
PF: predicated region fallthrough
CT: control target
= control target key end

     0   :  { %s1732_s24 = smov 0   ;;  %s1933_s0 = inlined_call_operand.vmem [shape: f32[2,16,16], index: 0, kind: input, shape index: {}]   ;;  %s1934_s1 = inlined_call_operand.vmem [shape: bf16[5,16,32], index: 1, kind: input, shape index: {}]   ;;  %s1935_s2 = inlined_call_operand.vmem [shape: f32[1,32], index: 2, kind: input, shape index: {}]   ;;  %s1936_s3 = inlined_call_operand.vmem [shape: bf16[5,32,32], index: 3, kind: input, shape index: {}]   ;;  %s1937_s4 = inlined_call_operand.vmem [shape: f32[1,32], index: 4, kind: input, shape index: {}]   ;;  %s1938_s5 = inlined_call_operand.vmem [shape: bf16[5,32,16], index: 5, kind: input, shape index: {}]   ;;  %s1939_s6 = inlined_call_operand.vmem [shape: f32[1,16], index: 6, kind: input, shape index: {}]   ;;  %s1940_s7 = inlined_call_operand.vmem [shape: f32[2,16,16], index: 7, kind: output, shape index: {}]  }
   0x1 LB: > { %s1393_s25 = sadd.s32 4294967295, %s1688_s24   ;;  %p1397_p0 = scmp.ge.s32.totalorder %s1688_s24, 1  ;;  %s1688_s24 = sphi %s1732_s24, %s17_s24  }
   0x2   : > { %p237_p1 = scmp.lt.s32.totalorder %s1688_s24, 3 }
   0x4   : > { %p238_p2 = pnand %p1397_p0, %p237_p1 }
   0x5   : > { %p269_p3 = scmp.lt.s32.totalorder (!%p238_p2), %s1393_s25, 1 }
   0x6   : > { %241 = sbr.rel (%p238_p2) target bundleno = 707 (0x2c3), region = 48 }
   0xb   : > { %v1649_v0 = vld [vmem:[%s1934_s1] sm:$0xff]   ;;  %v1690_v1 = vmov 0.0   ;;  %vm1691_vm0 = vmmov 0   ;;  %s1942_s25 = smov (!%p269_p3, %s1393_s25), 1  ;;  %v1651_v2 = vld [vmem:[%s1934_s1 + $0x8] sm:$0xff]   ;;  %vm284_vm1 = vcmask 1041408  }
   0xc   : > { %1529 = vmatprep.subr.bf16.mxu0 %v1690_v1  ;;  %1535 = vmatprep.subr.bf16.mxu1 %v1690_v1  ;;  %s1487_s30 = sshll.u32 %s1942_s25, 4  ;;  %vm304_vm2 = vcmask 130048   ;;  %vm429_vm3 = vcmask 1046528   ;;  %v1650_v7 = vld [vmem:[%s1934_s1 + $0x10] sm:$0xff]   ;;  %vm360_vm4 = vsmask.f32 7424 }
   0xd   : > { %1530 = vmatpush3.bf16.msra.mxu0 %v1649_v0  ;;  %1531 = vmatprep.mubr.msk.bf16.mxu0 %vm1691_vm0, %v1690_v1  ;;  %s273_s10 = scalar_lea.vmem %s1933_s0, %s1487_s30  ;;  %vm488_vm5 = vsmask.f32 6400  ;;  %v1652_v25 = vld [vmem:[%s1934_s1 + $0x18] sm:$0xff]   ;;  %v1653_v26 = vld [vmem:[%s1934_s1 + $0x20] sm:$0xff]   ;;  %vm553_vm6 = vcmask 1045504   ;;  %v1654_v36 = vld [vmem:[%s1936_s3 + $0x8] sm:$0xff]   ;;  %s278_s27 = scalar_lea.vmem %s1940_s7, %s1487_s30 }
   0xe   : > { %1541 = vmatprep.subr.bf16.mxu0 %v1690_v1  ;;  %1537 = vmatprep.mubr.msk.bf16.mxu1 %vm1691_vm0, %v1690_v1  ;;  %v280_v3 = vld [vmem:[%s273_s10] sm:$0xff]  ;;  %v281_v4 = vld [vmem:[%s273_s10 + $0x8] sm:$0xff]  ;;  %v1656_v38 = vld [vmem:[%s1936_s3 + $0x18] sm:$0xff]   ;;  %vm640_vm7 = vcmask 261120  }
   0xf   : > { %1536 = vmatpush3.bf16.msra.mxu1 %v1651_v2  ;;  %v285_v5 = vrot.slane %v280_v3, 6  ;;  %v286_v6 = vrot.slane %v281_v4, 6  ;;  %v1655_v37 = vld [vmem:[%s1936_s3] sm:$0xff]   ;;  %v1658_v39 = vld [vmem:[%s1936_s3 + $0x10] sm:$0xff]  }
  0x10   : > { %1547 = vmatprep.subr.bf16.mxu1 %v1690_v1  ;;  %v1404_v43 = vld [vmem:[%s1935_s2] ss:$0 sm:$0xff] }
  0x11   : > { %v287_v8 = vsel %vm284_vm1, %v285_v5, %v286_v6  ;;  %v291_v9 = vsel %vm284_vm1, 0.0, %v285_v5  ;;  %v292_v10 = vsel %vm284_vm1, %v286_v6, 0.0 }
  0x12   : > { %v293_v11 = vpack.c.bf16 %v287_v8, %v291_v9  ;;  %v294_v12 = vpack.c.bf16 %v292_v10, %v292_v10 }
  0x14   : > { %1532 = vmatmul.mubr.msk.bf16.vlgmr.msra.gmra.mxu0 %vm304_vm2, %v293_v11  ;;  %v361_v13 = vshrl.u32 %v293_v11, 16  ;;  %v363_v14 = vshll.u32 %v293_v11, 16  ;;  %v368_v15 = vshll.u32 %v294_v12, 16  ;;  %v430_v16 = vrot.slane %v293_v11, 1 }
  0x15   : > { %1542 = vmatpush3.bf16.msra.mxu0 %v1650_v7  ;;  %1543 = vmatprep.mubr.msk.bf16.mxu0 %vm1691_vm0, %v1690_v1  ;;  %v431_v17 = vrot.slane %v294_v12, 1  ;;  %v492_v18 = vshrl.u32 %v294_v12, 16  ;;  %v554_v19 = vrot.slane %v293_v11, 2  ;;  %v555_v20 = vrot.slane %v294_v12, 2 }
  0x16   : > { %v365_v21 = vrot.slane %v363_v14, 1  ;;  %v370_v22 = vrot.slane %v368_v15, 1  ;;  %v489_v23 = vrot.slane %v361_v13, 1  ;;  %v495_v24 = vrot.slane %v368_v15, 2  ;;  %1553 = vmatprep.subr.bf16.mxu0 %v1690_v1  ;;  %v1657_v15 = vld [vmem:[%s1936_s3 + $0x28] sm:$0xff]  }
  0x17   : > { %v490_v27 = vrot.slane %v363_v14, 2  ;;  %v494_v28 = vrot.slane %v492_v18, 1  ;;  %v432_v30 = vsel %vm429_vm3, %v430_v16, %v431_v17  ;;  %v556_v35 = vsel %vm553_vm6, %v554_v19, %v555_v20  ;;  %v1659_v20 = vld [vmem:[%s1936_s3 + $0x20] sm:$0xff]  }
  0x18   : > { %v366_v29 = vor.u32 %v365_v21, %v361_v13 }
  0x19   : > { %v491_v32 = vor.u32 %v490_v27, %v489_v23  ;;  %v496_v33 = vor.u32 %v495_v24, %v494_v28  ;;  %v1660_v28 = vld [vmem:[%s1936_s3 + $0x38] sm:$0xff]  }
  0x1a   : > { %v371_v31 = vsel %vm360_vm4, %v366_v29, %v370_v22  ;;  %v1661_v29 = vld [vmem:[%s1936_s3 + $0x48] sm:$0xff]  }
  0x1b   : > { %1538 = vmatmul.mubr.msk.bf16.vlgmr.msra.gmra.mxu1 %vm304_vm2, %v371_v31  ;;  %v497_v34 = vsel %vm488_vm5, %v491_v32, %v496_v33 }
  0x1c   : > { %1548 = vmatpush3.bf16.msra.mxu1 %v1652_v25  ;;  %1544 = vmatmul.mubr.msk.bf16.vlgmr.msra.gmra.mxu0 %vm304_vm2, %v432_v30 }
  0x1d   : > { %1554 = vmatpush3.bf16.msra.mxu0 %v1653_v26  ;;  %1549 = vmatprep.mubr.msk.bf16.mxu1 %vm1691_vm0, %v1690_v1 }
  0x1e   : > { %1555 = vmatprep.mubr.msk.bf16.mxu0 %vm1691_vm0, %v1690_v1  ;;  %1559 = vmatprep.subr.bf16.mxu1 %v1690_v1 }
  0x1f   : > { %1567 = vmatprep.subr.bf16.mxu0 %v1690_v1 }
  0x23   : > { %1550 = vmatmul.mubr.msk.bf16.vlgmr.msra.gmra.mxu1 %vm304_vm2, %v497_v34 }
  0x24   : > { %1556 = vmatmul.mubr.msk.bf16.vlgmr.msra.gmra.mxu0 %vm304_vm2, %v556_v35  ;;  %1563 = vmatprep.mubr.msk.bf16.mxu1 %vm1691_vm0, %v1690_v1 }
  0x25   : > { %1571 = vmatprep.mubr.msk.bf16.mxu0 %vm1691_vm0, %v1690_v1  ;;  %1560 = vmatpush3.bf16.msra.mxu1 %v1654_v36  ;;  %v1662_v36 = vld [vmem:[%s1936_s3 + $0x30] sm:$0xff]  }
  0x26   : > { %1561 = vmatprep.subr.bf16.mxu1 %v1690_v1  ;;  %1568 = vmatpush3.bf16.msra.mxu0 %v1656_v38 }
  0x27   : > { %1569 = vmatprep.subr.bf16.mxu0 %v1690_v1 }
  0x29   : > { %1562 = vmatpush3.bf16.msra.mxu1 %v1655_v37  ;;  %v1663_v37 = vld [vmem:[%s1936_s3 + $0x40] sm:$0xff]  }
  0x2a   : > { %1575 = vmatprep.subr.bf16.mxu1 %v1690_v1  ;;  %1570 = vmatpush3.bf16.msra.mxu0 %v1658_v39 }
  0x2b   : > { %1583 = vmatprep.subr.bf16.mxu0 %v1690_v1 }
  0xd4   : > { %v342_v40 = vpop.f32.mrf.mxu0 }
  0xd5   : > { %v355_v46 = vadd.f32 %v1404_v43, %v342_v40 }
  0xd6   : > { %v1533_v41 = vpop.f32.mrf.mxu0 }
  0xd8   : > { %v345_v42 = vpop.f32.mrf.mxu0 }
  0xd9   : > { %v356_v52 = vadd.f32 %v1404_v43, %v345_v42 }
  0xda   : > { %v1534_v44 = vpop.f32.mrf.mxu0 }
  0xdb   : > { %v415_v45 = vpop.f32.mrf.mxu1  ;;  %v1664_v44 = vld [vmem:[%s1938_s5 + $0x8] sm:$0xff]  }
  0xdc   : > { %v476_v47 = vpop.f32.mrf.mxu0  ;;  %v422_v49 = vadd.f32 %v415_v45, %v355_v46  ;;  %v1665_v45 = vld [vmem:[%s1938_s5] sm:$0xff]   ;;  %v1666_v46 = vld [vmem:[%s1938_s5 + $0x18] sm:$0xff]  }
  0xdd   : > { %v1539_v48 = vpop.f32.mrf.mxu1 }
  0xde   : > { %v1545_v50 = vpop.f32.mrf.mxu0  ;;  %v483_v55 = vadd.f32 %v476_v47, %v422_v49  ;;  %v1668_v47 = vld [vmem:[%s1938_s5 + $0x10] sm:$0xff]  }
  0xdf   : > { %v418_v51 = vpop.f32.mrf.mxu1 }
  0xe0   : > { %v479_v53 = vpop.f32.mrf.mxu0  ;;  %v423_v56 = vadd.f32 %v418_v51, %v356_v52  ;;  %v1424_v51 = vld [vmem:[%s1937_s4] ss:$0 sm:$0xff] }
  0xe1   : > { %v1540_v54 = vpop.f32.mrf.mxu1 }
  0xe2   : > { %v1546_v57 = vpop.f32.mrf.mxu0  ;;  %v484_v62 = vadd.f32 %v479_v53, %v423_v56 }
  0xe3   : > { %v541_v58 = vpop.f32.mrf.mxu1 }
  0xe4   : > { %v548_v59 = vadd.f32 %v541_v58, %v483_v55  ;;  %v600_v60 = vpop.f32.mrf.mxu0 }
  0xe5   : > { %v1551_v61 = vpop.f32.mrf.mxu1 }
  0xe6   : > { %v607_v63 = vadd.f32 %v600_v60, %v548_v59  ;;  %v1557_v0 = vpop.f32.mrf.mxu0 }
  0xe7   : > { %v544_v2 = vpop.f32.mrf.mxu1 }
  0xe8   : > { %1674 = vtanh.f32 %v607_v63  ;;  %v549_v3 = vadd.f32 %v544_v2, %v484_v62  ;;  %v603_v4 = vpop.f32.mrf.mxu0 }
  0xe9   : > { %v1552_v5 = vpop.f32.mrf.mxu1 }
  0xea   : > { %v608_v6 = vadd.f32 %v603_v4, %v549_v3  ;;  %v1558_v7 = vpop.f32.mrf.mxu0 }
  0xec   : > { %1676 = vtanh.f32 %v608_v6 }
  0xf5   : > { %v1675_v8 = vpop.eup %1674 }
  0xf6   : > { %v613_v9 = vrot.slane %v1675_v8, 6 }
  0xf8   : > { %v619_v12 = vsel %vm284_vm1, 0.0, %v613_v9 }
  0xf9   : > { %v1677_v10 = vpop.eup %1676 }
  0xfa   : > { %v614_v11 = vrot.slane %v1677_v10, 6 }
  0xfc   : > { %v615_v13 = vsel %vm284_vm1, %v613_v9, %v614_v11  ;;  %v620_v14 = vsel %vm284_vm1, %v614_v11, 0.0 }
  0xfd   : > { %v621_v16 = vpack.c.bf16 %v615_v13, %v619_v12  ;;  %v622_v17 = vpack.c.bf16 %v620_v14, %v620_v14 }
  0xff   : > { %1564 = vmatmul.mubr.msk.bf16.vlgmr.msra.gmra.mxu1 %vm640_vm7, %v621_v16  ;;  %v700_v18 = vshll.u32 %v621_v16, 16  ;;  %v705_v19 = vshll.u32 %v622_v17, 16  ;;  %v698_v21 = vshrl.u32 %v621_v16, 16  ;;  %v843_v23 = vshrl.u32 %v622_v17, 16 }
 0x100   : > { %1576 = vmatpush3.bf16.msra.mxu1 %v1657_v15  ;;  %1579 = vmatprep.mubr.msk.bf16.mxu1 %vm1691_vm0, %v1690_v1  ;;  %v774_v24 = vrot.slane %v621_v16, 1  ;;  %v775_v25 = vrot.slane %v622_v17, 1  ;;  %v912_v40 = vrot.slane %v621_v16, 2  ;;  %v913_v41 = vrot.slane %v622_v17, 2 }
 0x101   : > { %1577 = vmatprep.subr.bf16.mxu1 %v1690_v1  ;;  %v702_v22 = vrot.slane %v700_v18, 1  ;;  %v707_v27 = vrot.slane %v705_v19, 1  ;;  %v840_v30 = vrot.slane %v698_v21, 1  ;;  %v841_v32 = vrot.slane %v700_v18, 2 }
 0x102   : > { %v845_v33 = vrot.slane %v843_v23, 1  ;;  %v846_v34 = vrot.slane %v705_v19, 2  ;;  %v776_v35 = vsel %vm429_vm3, %v774_v24, %v775_v25  ;;  %v914_v43 = vsel %vm553_vm6, %v912_v40, %v913_v41  ;;  %v1667_v23 = vld [vmem:[%s1938_s5 + $0x28] sm:$0xff]  }
 0x103   : > { %v703_v26 = vor.u32 %v702_v22, %v698_v21  ;;  %v842_v38 = vor.u32 %v841_v32, %v840_v30 }
 0x104   : > { %1578 = vmatpush3.bf16.msra.mxu1 %v1659_v20  ;;  %v847_v39 = vor.u32 %v846_v34, %v845_v33 }
 0x105   : > { %v708_v31 = vsel %vm360_vm4, %v703_v26, %v707_v27  ;;  %1591 = vmatprep.subr.bf16.mxu1 %v1690_v1 }
 0x106   : > { %1572 = vmatmul.mubr.msk.bf16.vlgmr.msra.gmra.mxu0 %vm640_vm7, %v708_v31  ;;  %v848_v42 = vsel %vm488_vm5, %v842_v38, %v847_v39 }
 0x107   : > { %1584 = vmatpush3.bf16.msra.mxu0 %v1660_v28  ;;  %1580 = vmatmul.mubr.msk.bf16.vlgmr.msra.gmra.mxu1 %vm640_vm7, %v776_v35  ;;  %v1669_v28 = vld [vmem:[%s1938_s5 + $0x20] sm:$0xff]  }
 0x108   : > { %1592 = vmatpush3.bf16.msra.mxu1 %v1661_v29  ;;  %1585 = vmatprep.subr.bf16.mxu0 %v1690_v1 }
 0x109   : > { %1593 = vmatprep.subr.bf16.mxu1 %v1690_v1  ;;  %1587 = vmatprep.mubr.msk.bf16.mxu0 %vm1691_vm0, %v1690_v1 }
 0x10a   : > { %1595 = vmatprep.mubr.msk.bf16.mxu1 %vm1691_vm0, %v1690_v1 }
 0x10b   : > { %1586 = vmatpush3.bf16.msra.mxu0 %v1662_v36  ;;  %v1670_v36 = vld [vmem:[%s1938_s5 + $0x38] sm:$0xff]  }
 0x10c   : > { %1594 = vmatpush3.bf16.msra.mxu1 %v1663_v37  ;;  %1599 = vmatprep.subr.bf16.mxu0 %v1690_v1  ;;  %v1671_v37 = vld [vmem:[%s1938_s5 + $0x48] sm:$0xff]  }
 0x10d   : > { %1607 = vmatprep.subr.bf16.mxu1 %v1690_v1 }
 0x10e   : > { %1588 = vmatmul.mubr.msk.bf16.vlgmr.msra.gmra.mxu0 %vm640_vm7, %v848_v42 }
 0x10f   : > { %1596 = vmatmul.mubr.msk.bf16.vlgmr.msra.gmra.mxu1 %vm640_vm7, %v914_v43  ;;  %1603 = vmatprep.mubr.msk.bf16.mxu0 %vm1691_vm0, %v1690_v1 }
 0x110   : > { %1611 = vmatprep.mubr.msk.bf16.mxu1 %vm1691_vm0, %v1690_v1  ;;  %1600 = vmatpush3.bf16.msra.mxu0 %v1664_v44  ;;  %v1672_v44 = vld [vmem:[%s1938_s5 + $0x30] sm:$0xff]  }
 0x111   : > { %1601 = vmatprep.subr.bf16.mxu0 %v1690_v1  ;;  %1608 = vmatpush3.bf16.msra.mxu1 %v1666_v46 }
 0x112   : > { %1609 = vmatprep.subr.bf16.mxu1 %v1690_v1 }
 0x114   : > { %1602 = vmatpush3.bf16.msra.mxu0 %v1665_v45  ;;  %v1673_v45 = vld [vmem:[%s1938_s5 + $0x40] sm:$0xff]  }
 0x115   : > { %1615 = vmatprep.subr.bf16.mxu0 %v1690_v1  ;;  %1610 = vmatpush3.bf16.msra.mxu1 %v1668_v47 }
 0x116   : > { %1623 = vmatprep.subr.bf16.mxu1 %v1690_v1 }
 0x1bf   : > { %v678_v48 = vpop.f32.mrf.mxu1 }
 0x1c0   : > { %v691_v54 = vadd.f32 %v1424_v51, %v678_v48 }
 0x1c1   : > { %v1565_v49 = vpop.f32.mrf.mxu1 }
 0x1c3   : > { %v681_v50 = vpop.f32.mrf.mxu1 }
 0x1c4   : > { %v692_v60 = vadd.f32 %v1424_v51, %v681_v50 }
 0x1c5   : > { %v1566_v52 = vpop.f32.mrf.mxu1 }
 0x1c6   : > { %v758_v53 = vpop.f32.mrf.mxu0 }
 0x1c7   : > { %v826_v55 = vpop.f32.mrf.mxu1  ;;  %v765_v57 = vadd.f32 %v758_v53, %v691_v54 }
 0x1c8   : > { %v1573_v56 = vpop.f32.mrf.mxu0 }
 0x1c9   : > { %v1581_v58 = vpop.f32.mrf.mxu1  ;;  %v833_v63 = vadd.f32 %v826_v55, %v765_v57  ;;  %v1456_v55 = vld [vmem:[%s1939_s6] ss:$0 sm:$0xff] }
 0x1ca   : > { %v761_v59 = vpop.f32.mrf.mxu0 }
 0x1cb   : > { %v829_v61 = vpop.f32.mrf.mxu1  ;;  %v766_v0 = vadd.f32 %v761_v59, %v692_v60 }
 0x1cc   : > { %v1574_v62 = vpop.f32.mrf.mxu0 }
 0x1cd   : > { %v1582_v2 = vpop.f32.mrf.mxu1  ;;  %v834_v7 = vadd.f32 %v829_v61, %v766_v0 }
 0x1ce   : > { %v898_v3 = vpop.f32.mrf.mxu0 }
 0x1cf   : > { %v905_v4 = vadd.f32 %v898_v3, %v833_v63  ;;  %v964_v5 = vpop.f32.mrf.mxu1 }
 0x1d0   : > { %v1589_v6 = vpop.f32.mrf.mxu0 }
 0x1d1   : > { %v971_v8 = vadd.f32 %v964_v5, %v905_v4  ;;  %v1597_v9 = vpop.f32.mrf.mxu1 }
 0x1d2   : > { %v901_v10 = vpop.f32.mrf.mxu0 }
 0x1d3   : > { %1678 = vtanh.f32 %v971_v8  ;;  %v906_v11 = vadd.f32 %v901_v10, %v834_v7  ;;  %v967_v12 = vpop.f32.mrf.mxu1 }
 0x1d4   : > { %v1590_v13 = vpop.f32.mrf.mxu0 }
 0x1d5   : > { %v972_v14 = vadd.f32 %v967_v12, %v906_v11  ;;  %v1598_v15 = vpop.f32.mrf.mxu1 }
 0x1d7   : > { %1680 = vtanh.f32 %v972_v14 }
 0x1e0   : > { %v1679_v16 = vpop.eup %1678 }
 0x1e1   : > { %v977_v17 = vrot.slane %v1679_v16, 6 }
 0x1e3   : > { %v983_v20 = vsel %vm284_vm1, 0.0, %v977_v17 }
 0x1e4   : > { %v1681_v18 = vpop.eup %1680 }
 0x1e5   : > { %v978_v19 = vrot.slane %v1681_v18, 6 }
 0x1e7   : > { %v979_v21 = vsel %vm284_vm1, %v977_v17, %v978_v19  ;;  %v984_v22 = vsel %vm284_vm1, %v978_v19, 0.0 }
 0x1e8   : > { %v985_v24 = vpack.c.bf16 %v979_v21, %v983_v20  ;;  %v986_v25 = vpack.c.bf16 %v984_v22, %v984_v22 }
 0x1ea   : > { %1604 = vmatmul.mubr.msk.bf16.vlgmr.msra.gmra.mxu0 %vm640_vm7, %v985_v24  ;;  %v1063_v26 = vshll.u32 %v985_v24, 16  ;;  %v1068_v27 = vshll.u32 %v986_v25, 16  ;;  %v1061_v29 = vshrl.u32 %v985_v24, 16  ;;  %v1206_v31 = vshrl.u32 %v986_v25, 16 }
 0x1eb   : > { %1616 = vmatpush3.bf16.msra.mxu0 %v1667_v23  ;;  %1619 = vmatprep.mubr.msk.bf16.mxu0 %vm1691_vm0, %v1690_v1  ;;  %v1137_v32 = vrot.slane %v985_v24, 1  ;;  %v1138_v33 = vrot.slane %v986_v25, 1  ;;  %v1275_v48 = vrot.slane %v985_v24, 2  ;;  %v1276_v49 = vrot.slane %v986_v25, 2 }
 0x1ec   : > { %1617 = vmatprep.subr.bf16.mxu0 %v1690_v1  ;;  %v1065_v30 = vrot.slane %v1063_v26, 1  ;;  %v1070_v35 = vrot.slane %v1068_v27, 1  ;;  %v1203_v38 = vrot.slane %v1061_v29, 1  ;;  %v1204_v40 = vrot.slane %v1063_v26, 2 }
 0x1ed   : > { %v1208_v41 = vrot.slane %v1206_v31, 1  ;;  %v1209_v42 = vrot.slane %v1068_v27, 2  ;;  %v1139_v43 = vsel %vm429_vm3, %v1137_v32, %v1138_v33  ;;  %v1277_v51 = vsel %vm553_vm6, %v1275_v48, %v1276_v49 }
 0x1ee   : > { %v1066_v34 = vor.u32 %v1065_v30, %v1061_v29  ;;  %v1205_v46 = vor.u32 %v1204_v40, %v1203_v38 }
 0x1ef   : > { %1618 = vmatpush3.bf16.msra.mxu0 %v1669_v28  ;;  %v1210_v47 = vor.u32 %v1209_v42, %v1208_v41 }
 0x1f0   : > { %v1071_v39 = vsel %vm360_vm4, %v1066_v34, %v1070_v35  ;;  %1631 = vmatprep.subr.bf16.mxu0 %v1690_v1 }
 0x1f1   : > { %1612 = vmatmul.mubr.msk.bf16.vlgmr.msra.gmra.mxu1 %vm640_vm7, %v1071_v39  ;;  %v1211_v50 = vsel %vm488_vm5, %v1205_v46, %v1210_v47 }
 0x1f2   : > { %1624 = vmatpush3.bf16.msra.mxu1 %v1670_v36  ;;  %1620 = vmatmul.mubr.msk.bf16.vlgmr.msra.gmra.mxu0 %vm640_vm7, %v1139_v43 }
 0x1f3   : > { %1632 = vmatpush3.bf16.msra.mxu0 %v1671_v37  ;;  %1625 = vmatprep.subr.bf16.mxu1 %v1690_v1 }
 0x1f4   : > { %1633 = vmatprep.subr.bf16.mxu0 %v1690_v1  ;;  %1627 = vmatprep.mubr.msk.bf16.mxu1 %vm1691_vm0, %v1690_v1 }
 0x1f5   : > { %1635 = vmatprep.mubr.msk.bf16.mxu0 %vm1691_vm0, %v1690_v1 }
 0x1f6   : > { %1626 = vmatpush3.bf16.msra.mxu1 %v1672_v44 }
 0x1f7   : > { %1634 = vmatpush3.bf16.msra.mxu0 %v1673_v45 }
 0x1f9   : > { %1628 = vmatmul.mubr.msk.bf16.vlgmr.msra.gmra.mxu1 %vm640_vm7, %v1211_v50 }
 0x1fa   : > { %1636 = vmatmul.mubr.msk.bf16.vlgmr.msra.gmra.mxu0 %vm640_vm7, %v1277_v51 }
 0x2aa   : > { %v1041_v52 = vpop.f32.mrf.mxu0 }
 0x2ab   : > { %v1054_v57 = vadd.f32 %v1456_v55, %v1041_v52 }
 0x2ac   : > { %v1605_v53 = vpop.f32.mrf.mxu0 }
 0x2ae   : > { %v1044_v54 = vpop.f32.mrf.mxu0 }
 0x2af   : > { %v1055_v63 = vadd.f32 %v1456_v55, %v1044_v54 }
 0x2b0   : > { %v1606_v1 = vpop.f32.mrf.mxu0 }
 0x2b1   : > { %v1121_v56 = vpop.f32.mrf.mxu1 }
 0x2b2   : > { %v1189_v58 = vpop.f32.mrf.mxu0  ;;  %v1128_v60 = vadd.f32 %v1121_v56, %v1054_v57 }
 0x2b3   : > { %v1613_v59 = vpop.f32.mrf.mxu1 }
 0x2b4   : > { %v1621_v61 = vpop.f32.mrf.mxu0  ;;  %v1196_v3 = vadd.f32 %v1189_v58, %v1128_v60 }
 0x2b5   : > { %v1124_v62 = vpop.f32.mrf.mxu1 }
 0x2b6   : > { %v1192_v0 = vpop.f32.mrf.mxu0  ;;  %v1129_v4 = vadd.f32 %v1124_v62, %v1055_v63 }
 0x2b7   : > { %v1614_v2 = vpop.f32.mrf.mxu1 }
 0x2b8   : > { %v1622_v5 = vpop.f32.mrf.mxu0  ;;  %v1197_v10 = vadd.f32 %v1192_v0, %v1129_v4 }
 0x2b9   : > { %v1261_v6 = vpop.f32.mrf.mxu1 }
 0x2ba   : > { %v1268_v7 = vadd.f32 %v1261_v6, %v1196_v3  ;;  %v1327_v8 = vpop.f32.mrf.mxu0 }
 0x2bb   : > { %v1629_v9 = vpop.f32.mrf.mxu1 }
 0x2bc   : > { %v1334_v11 = vadd.f32 %v1327_v8, %v1268_v7  ;;  %v1637_v12 = vpop.f32.mrf.mxu0 }
 0x2bd   : > { %v1264_v13 = vpop.f32.mrf.mxu1 }
 0x2be   : > { %1336 = vst.msk [vmem:[%s278_s27] sm:$0xff] %vm304_vm2, %v1334_v11  ;;  %v1269_v14 = vadd.f32 %v1264_v13, %v1197_v10  ;;  %v1330_v15 = vpop.f32.mrf.mxu0 }
 0x2bf   : > { %v1630_v16 = vpop.f32.mrf.mxu1 }
 0x2c0   : > { %v1335_v17 = vadd.f32 %v1330_v15, %v1269_v14  ;;  %v1638_v18 = vpop.f32.mrf.mxu0 }
 0x2c2   : > { %1337 = vst.msk [vmem:[%s278_s27 + $0x8] sm:$0xff] %vm304_vm2, %v1335_v17 }
 0x2c3 PF: > { %s17_s24 = sadd.s32 1, %s1688_s24  }
 0x2c4   : > { %p14_p4 = scmp.ge.s32.totalorder %s17_s24, 4  }
 0x2c6   :  { %16 = sbr.rel (!%p14_p4) target bundleno = 1 (0x1), region = 90 }

// kernel: fwd.2
= control target key start
LH: loop header
LB: loop body
LE: loop exit
PB: predicated region body
PF: predicated region fallthrough
CT: control target
= control target key end

     0   :  { %s5143_s6 = smov 1   ;;  %s5144_s10 = smov 2   ;;  %s5881_s0 = inlined_call_operand.smem [shape: u32[47], index: -1, kind: input, shape index: {}] }
   0x1   :  { %s5202_s5 = sld [smem:[%s5881_s0]]   ;;  %s5145_s14 = smov 3  }
   0x2   :  { %s5207_s9 = sld [smem:[%s5881_s0 + %s5143_s6]]   ;;  %s5146_s18 = smov 4  }
   0x3   :  { %s5212_s13 = sld [smem:[%s5881_s0 + %s5144_s10]]   ;;  %s5147_s22 = smov 5  }
   0x4   :  { %s5217_s17 = sld [smem:[%s5881_s0 + %s5145_s14]]   ;;  %s5148_s26 = smov 6  }
   0x5   :  { %s5222_s21 = sld [smem:[%s5881_s0 + %s5146_s18]]   ;;  %s5149_s30 = smov 7  }
   0x6   :  { %s5227_s25 = sld [smem:[%s5881_s0 + %s5147_s22]]   ;;  %s5150_s4 = smov 8  }
   0x7   :  { %5906 = sst [smem:[#allocation8_spill]] %s5202_s5  ;;  %s5151_s10 = smov 9  }
   0x8   :  { %5907 = sst [smem:[#allocation9_spill]] %s5207_s9  ;;  %s5152_s15 = smov 10  }
   0x9   :  { %5908 = sst [smem:[#allocation10_spill]] %s5212_s13  ;;  %s5153_s20 = smov 11  }
   0xa   :  { %5909 = sst [smem:[#allocation11_spill]] %s5217_s17  ;;  %s5155_s1 = smov 13  }
   0xb   :  { %5910 = sst [smem:[#allocation12_spill]] %s5222_s21  ;;  %s5156_s7 = smov 14  }
   0xc   :  { %5911 = sst [smem:[#allocation13_spill]] %s5227_s25  ;;  %s5158_s22 = smov 16  }
   0xd   :  { %s5232_s29 = sld [smem:[%s5881_s0 + %s5148_s26]]   ;;  %s5154_s26 = smov 12  }
   0xe   :  { %s5237_s3 = sld [smem:[%s5881_s0 + %s5149_s30]]   ;;  %s5159_s28 = smov 17  }
   0xf   :  { %s5242_s8 = sld [smem:[%s5881_s0 + %s5150_s4]]  }
  0x10   :  { %s5247_s14 = sld [smem:[%s5881_s0 + %s5151_s10]]  }
  0x11   :  { %s5252_s19 = sld [smem:[%s5881_s0 + %s5152_s15]]   ;;  %s5157_s15 = smov 15  }
  0x12   :  { %s5257_s24 = sld [smem:[%s5881_s0 + %s5153_s20]]  }
  0x13   :  { %5912 = sst [smem:[#allocation14_spill]] %s5232_s29 }
  0x14   :  { %5913 = sst [smem:[#allocation15_spill]] %s5237_s3 }
  0x15   :  { %5914 = sst [smem:[#allocation16_spill]] %s5242_s8 }
  0x16   :  { %5915 = sst [smem:[#allocation17_spill]] %s5247_s14 }
  0x17   :  { %5916 = sst [smem:[#allocation18_spill]] %s5252_s19 }
  0x18   :  { %s5262_s30 = sld [smem:[%s5881_s0 + %s5154_s26]]  }
  0x19   :  { %s5267_s6 = sld [smem:[%s5881_s0 + %s5155_s1]]  }
  0x1a   :  { %s5272_s12 = sld [smem:[%s5881_s0 + %s5156_s7]]   ;;  %s5160_s7 = smov 18  }
  0x1b   :  { %s5277_s20 = sld [smem:[%s5881_s0 + %s5157_s15]]   ;;  %s5161_s15 = smov 19  }
  0x1c   :  { %s5282_s27 = sld [smem:[%s5881_s0 + %s5158_s22]]   ;;  %s5162_s22 = smov 20  }
  0x1d   :  { %s5287_s4 = sld [smem:[%s5881_s0 + %s5159_s28]]   ;;  %s5163_s28 = smov 21  }
  0x1e   :  { %5917 = sst [smem:[#allocation19_spill]] %s5262_s30 }
  0x1f   :  { %5918 = sst [smem:[#allocation20_spill]] %s5267_s6 }
  0x20   :  { %5919 = sst [smem:[#allocation21_spill]] %s5272_s12 }
  0x21   :  { %s5292_s25 = sld [smem:[%s5881_s0 + %s5160_s7]]   ;;  %s5164_s7 = smov 22  }
  0x22   :  { %s5297_s17 = sld [smem:[%s5881_s0 + %s5161_s15]]   ;;  %s5165_s15 = smov 23  }
  0x23   :  { %5920 = sst [smem:[#allocation22_spill]] %s5287_s4 }
  0x24   :  { %s5302_s30 = sld [smem:[%s5881_s0 + %s5162_s22]]   ;;  %s5166_s22 = smov 24  }
  0x25   :  { %s5307_s21 = sld [smem:[%s5881_s0 + %s5163_s28]]   ;;  %s5167_s28 = smov 25  }
  0x26   :  { %s5312_s29 = sld [smem:[%s5881_s0 + %s5164_s7]]   ;;  %s5168_s7 = smov 26  }
  0x28   :  { %5921 = sst [smem:[#allocation23_spill]] %s5297_s17 }
  0x29   :  { %s5317_s17 = sld [smem:[%s5881_s0 + %s5165_s15]]   ;;  %s5169_s15 = smov 27  }
  0x2a   :  { %5922 = sst [smem:[#allocation24_spill]] %s5302_s30 }
  0x2b   :  { %5923 = sst [smem:[#allocation25_spill]] %s5307_s21 }
  0x2c   :  { %5924 = sst [smem:[#allocation26_spill]] %s5312_s29 }
  0x2d   :  { %s5322_s30 = sld [smem:[%s5881_s0 + %s5166_s22]]   ;;  %s5170_s22 = smov 28  }
  0x2e   :  { %s5327_s21 = sld [smem:[%s5881_s0 + %s5167_s28]]   ;;  %s5171_s28 = smov 29  }
  0x2f   :  { %5925 = sst [smem:[#allocation27_spill]] %s5317_s17 }
  0x30   :  { %s5332_s29 = sld [smem:[%s5881_s0 + %s5168_s7]]   ;;  %s5172_s7 = smov 30  }
  0x31   :  { %s5337_s17 = sld [smem:[%s5881_s0 + %s5169_s15]]   ;;  %s5173_s15 = smov 31  }
  0x33   :  { %5926 = sst [smem:[#allocation28_spill]] %s5322_s30 }
  0x34   :  { %5927 = sst [smem:[#allocation29_spill]] %s5327_s21 }
  0x35   :  { %s5342_s30 = sld [smem:[%s5881_s0 + %s5170_s22]]   ;;  %s5174_s22 = smov 32  }
  0x36   :  { %5928 = sst [smem:[#allocation30_spill]] %s5332_s29 }
  0x37   :  { %5929 = sst [smem:[#allocation31_spill]] %s5337_s17 }
  0x38   :  { %s5347_s21 = sld [smem:[%s5881_s0 + %s5171_s28]]   ;;  %s5175_s28 = smov 33  }
  0x39   :  { %s5352_s29 = sld [smem:[%s5881_s0 + %s5172_s7]]   ;;  %s5176_s7 = smov 34  }
  0x3a   :  { %s5357_s17 = sld [smem:[%s5881_s0 + %s5173_s15]]   ;;  %s5177_s15 = smov 35  }
  0x3b   :  { %5930 = sst [smem:[#allocation32_spill]] %s5342_s30 }
  0x3c   :  { %s5362_s30 = sld [smem:[%s5881_s0 + %s5174_s22]]   ;;  %s5178_s22 = smov 36  }
  0x3e   :  { %5931 = sst [smem:[#allocation33_spill]] %s5347_s21 }
  0x3f   :  { %5932 = sst [smem:[#allocation34_spill]] %s5352_s29 }
  0x40   :  { %5933 = sst [smem:[#allocation35_spill]] %s5357_s17 }
  0x41   :  { %s5367_s21 = sld [smem:[%s5881_s0 + %s5175_s28]]   ;;  %s5179_s28 = smov 37  }
  0x42   :  { %5934 = sst [smem:[#allocation36_spill]] %s5362_s30 }
  0x43   :  { %s5372_s29 = sld [smem:[%s5881_s0 + %s5176_s7]]   ;;  %s5180_s7 = smov 38  }
  0x44   :  { %s5377_s17 = sld [smem:[%s5881_s0 + %s5177_s15]]   ;;  %s5181_s15 = smov 39  }
  0x45   :  { %s5382_s30 = sld [smem:[%s5881_s0 + %s5178_s22]]   ;;  %s5182_s22 = smov 40  }
  0x47   :  { %5935 = sst [smem:[#allocation37_spill]] %s5367_s21 }
  0x48   :  { %s5387_s21 = sld [smem:[%s5881_s0 + %s5179_s28]]   ;;  %s5183_s28 = smov 41  }
  0x49   :  { %5936 = sst [smem:[#allocation38_spill]] %s5372_s29 }
  0x4a   :  { %5937 = sst [smem:[#allocation39_spill]] %s5377_s17 }
  0x4b   :  { %5938 = sst [smem:[#allocation40_spill]] %s5382_s30 }
  0x4c   :  { %s5392_s29 = sld [smem:[%s5881_s0 + %s5180_s7]]   ;;  %s5184_s7 = smov 42  }
  0x4d   :  { %s5397_s17 = sld [smem:[%s5881_s0 + %s5181_s15]]   ;;  %s5185_s15 = smov 43  }
  0x4e   :  { %5939 = sst [smem:[#allocation41_spill]] %s5387_s21 }
  0x4f   :  { %s5402_s30 = sld [smem:[%s5881_s0 + %s5182_s22]]   ;;  %s5186_s22 = smov 44  }
  0x50   :  { %s5407_s21 = sld [smem:[%s5881_s0 + %s5183_s28]]   ;;  %s5187_s28 = smov 45  }
  0x52   :  { %5940 = sst [smem:[#allocation42_spill]] %s5392_s29 }
  0x53   :  { %5941 = sst [smem:[#allocation43_spill]] %s5397_s17 }
  0x54   :  { %s5412_s29 = sld [smem:[%s5881_s0 + %s5184_s7]]   ;;  %s5188_s7 = smov 46  }
  0x55   :  { %5942 = sst [smem:[#allocation44_spill]] %s5402_s30 }
  0x56   :  { %5943 = sst [smem:[#allocation45_spill]] %s5407_s21 }
  0x57   :  { %s5417_s17 = sld [smem:[%s5881_s0 + %s5185_s15]]  }
  0x58   :  { %s5422_s30 = sld [smem:[%s5881_s0 + %s5186_s22]]  }
  0x59   :  { %s5427_s21 = sld [smem:[%s5881_s0 + %s5187_s28]]  }
  0x5a   :  { %5944 = sst [smem:[#allocation46_spill]] %s5412_s29 }
  0x5b   :  { %s5432_s29 = sld [smem:[%s5881_s0 + %s5188_s7]]  }
  0x5d   :  { %5945 = sst [smem:[#allocation47_spill]] %s5417_s17 }
  0x5e   :  { %99 = vsyncpa [#allocation3], 0 }
  0x5f   :  { %101 = vsyncpa [#allocation3 + $0x1], 0 }
  0x60   :  { %102 = vsyncpa [#allocation5], 0 }
  0x61   :  { %104 = vsyncpa [#allocation5 + $0x1], 0  ;;  %s5434_s15 = smov 0   ;;  %s5436_s16 = smov 0  }
  0x62   :  { %s5438_s18 = smov 0   ;;  %s5440_s22 = smov 0  }
  0x63 LB: > { %s5946_s14 = sld [smem:[#allocation17_spill]]  ;;  %s5455_s0 = sadd.s32 4294967295, %s5141_s22   ;;  %s5141_s22 = sphi %s5440_s22, %s5992_s22   ;;  %s5137_s18 = sphi %s5438_s18, %s5991_s18   ;;  %s5133_s16 = sphi %s5436_s16, %s5990_s16   ;;  %s5129_s15 = sphi %s5434_s15, %s5989_s15  }
  0x64   : > { %s5947_s6 = sld [smem:[#allocation20_spill]]  ;;  %s4335_s23 = sadd.s32 4294967294, %s5141_s22  }
  0x65   : > { %s5948_s4 = sld [smem:[#allocation22_spill]]  ;;  %s5459_s26 = sadd.s32 1, %s5141_s22  }
  0x66   : > { %s5949_s3 = sld [smem:[#allocation15_spill]]  ;;  %s971_s28 = sadd.s32 1, %s5137_s18 }
  0x67   : > { %s968_s1 = ssub.s32 %s5141_s22, %s5459_s26  ;;  %p981_p0 = scmp.ne.s32.totalorder %s5137_s18, %s5133_s16 }
  0x68   : > { %p969_p1 = scmp.eq.s32.totalorder %s968_s1, 0  ;;  %p982_p2 = scmp.eq.s32.totalorder %s5455_s0, 1 }
  0x69   : > { %p987_p3 = scmp.ne.s32.totalorder %s5133_s16, %s5129_s15  ;;  %p988_p4 = scmp.eq.s32.totalorder %s4335_s23, 1 }
  0x6a   : > { %s5470_s2 = scalar_select %p969_p1, %s5137_s18, %s971_s28  }
  0x6b   : > { %p5472_p5 = por %p982_p2, %p981_p0  ;;  %p5476_p6 = por %p988_p4, %p987_p3 }
  0x6c   : > { %p4338_p7 = scmp.ge.s32.totalorder %s5141_s22, 1  ;;  %p1333_p8 = scmp.lt.s32.totalorder %s5141_s22, 3 }
  0x6e   : > { %p1334_p9 = pnand %p4338_p7, %p1333_p8 }
  0x6f   : > { %s5952_s5 = sld [smem:[#allocation8_spill]] (!%p1334_p9)  ;;  %p1498_p10 = scmp.lt.s32.totalorder (!%p1334_p9), %s5455_s0, 1 }
  0x70   : > { %1337 = sbr.rel (%p1334_p9) target bundleno = 3273 (0xcc9), region = 176  ;;  %s5953_s8 = sld [smem:[#allocation16_spill]] (!%p1334_p9) }
  0x71   : > { %s5954_s13 = sld [smem:[#allocation10_spill]] (!%p1334_p9) }
  0x72   : > { %s5955_s19 = sld [smem:[#allocation18_spill]] (!%p1334_p9) }
  0x73   : > { %s5956_s9 = sld [smem:[#allocation9_spill]] (!%p1334_p9) }
  0x74   : > { %s5957_s12 = sld [smem:[#allocation21_spill]] (!%p1334_p9) }
  0x75   : > { %v4961_v0 = vld [vmem:[%s5949_s3 + $0x8] sm:$0xff]   ;;  %v5189_v1 = vmov 0.0   ;;  %v4962_v2 = vld [vmem:[%s5949_s3] sm:$0xff]   ;;  %vm5190_vm0 = vmmov 0   ;;  %v4963_v3 = vld [vmem:[%s5949_s3 + $0x18] sm:$0xff]   ;;  %s5494_s11 = scalar_select %p1498_p10, %s5455_s0, 1 }
  0x76   : > { %4606 = vmatprep.subr.bf16.mxu0 %v5189_v1  ;;  %4614 = vmatprep.subr.bf16.mxu1 %v5189_v1  ;;  %v4965_v4 = vld [vmem:[%s5949_s3 + $0x10] sm:$0xff]   ;;  %vm1564_vm1 = vcmask 1041408   ;;  %vm1585_vm2 = vcmask 261120   ;;  %v4964_v7 = vld [vmem:[%s5949_s3 + $0x28] sm:$0xff]   ;;  %v4966_v11 = vld [vmem:[%s5949_s3 + $0x20] sm:$0xff]   ;;  %vm2322_vm3 = vcmask 130048  }
  0x77   : > { %4607 = vmatpush3.bf16.msra.mxu0 %v4961_v0  ;;  %4610 = vmatprep.mubr.msk.bf16.mxu0 %vm5190_vm0, %v5189_v1  ;;  %s5499_s23 = sshll.u32 %s5494_s11, 3  ;;  %v4967_v15 = vld [vmem:[%s5949_s3 + $0x38] sm:$0xff]   ;;  %v4968_v20 = vld [vmem:[%s5949_s3 + $0x48] sm:$0xff]   ;;  %v4969_v22 = vld [vmem:[%s5949_s3 + $0x30] sm:$0xff]   ;;  %s5573_s1 = sshll.u32 %s5494_s11, 4  ;;  %vm2447_vm4 = vcmask 1046528  }
  0x78   : > { %4608 = vmatprep.subr.bf16.mxu0 %v5189_v1  ;;  %4618 = vmatprep.mubr.msk.bf16.mxu1 %vm5190_vm0, %v5189_v1  ;;  %s1501_s28 = scalar_lea.vmem %s5952_s5, %s5499_s23  ;;  %v4970_v23 = vld [vmem:[%s5949_s3 + $0x40] sm:$0xff]   ;;  %v4971_v25 = vld [vmem:[%s5946_s14 + $0x8] sm:$0xff]   ;;  %v4973_v27 = vld [vmem:[%s5946_s14 + $0x18] sm:$0xff]   ;;  %vm2378_vm5 = vsmask.f32 7424  ;;  %vm2571_vm6 = vcmask 1045504  }
  0x79   : > { %4615 = vmatpush3.bf16.msra.mxu1 %v4963_v3  ;;  %v1560_v5 = vld [vmem:[%s1501_s28] sm:$0xff]  ;;  %v4975_v28 = vld [vmem:[%s5946_s14 + $0x10] sm:$0xff]   ;;  %v4974_v59 = vld [vmem:[%s5946_s14 + $0x28] sm:$0xff]   ;;  %s1511_s28 = scalar_lea.vmem %s5954_s13, %s5573_s1  ;;  %vm2506_vm7 = vsmask.f32 6400  ;;  %vm2827_vm8 = vcmask 122880  }
  0x7a   : > { %4616 = vmatprep.subr.bf16.mxu1 %v5189_v1  ;;  %v1562_v6 = vrot.slane %v1560_v5, 6  ;;  %v4972_v26 = vld [vmem:[%s5946_s14] sm:$0xff]   ;;  %s5964_s13 = sld [smem:[#allocation24_spill]]  ;;  %vm3022_vm9 = vcmask 253952   ;;  %vm3092_vm10 = vcmask 121856   ;;  %vm3094_vm11 = vcmask 114688  }
  0x7b   : > { %4609 = vmatpush3.bf16.msra.mxu0 %v4962_v2  ;;  %v4362_v31 = vld [vmem:[%s5953_s8] ss:$0 sm:$0xff]  ;;  %v4977_v2 = vld [vmem:[%s5946_s14 + $0x38] sm:$0xff]   ;;  %s5962_s8 = sld [smem:[#allocation23_spill]]  ;;  %vm3363_vm13 = vcmask 155648   ;;  %vm3685_vm14 = vcmask 1043456  }
  0x7c   : > { %4622 = vmatprep.subr.bf16.mxu0 %v5189_v1  ;;  %v1565_v8 = vsel %vm1564_vm1, 0.0, %v1562_v6  ;;  %v1566_v9 = vsel %vm1564_vm1, %v1562_v6, 0.0  ;;  %v4976_v62 = vld [vmem:[%s5946_s14 + $0x20] sm:$0xff]   ;;  %v4979_v6 = vld [vmem:[%s5946_s14 + $0x30] sm:$0xff]   ;;  %s5977_s17 = sld [smem:[#allocation47_spill]]  ;;  %vm3221_vm15 = vcmask 64512  }
  0x7d   : > { %4617 = vmatpush3.bf16.msra.mxu1 %v4965_v4  ;;  %v1567_v10 = vpack.c.bf16 %v1566_v9, %v1565_v8  ;;  %v4978_v4 = vld [vmem:[%s5946_s14 + $0x48] sm:$0xff]   ;;  %v4980_v9 = vld [vmem:[%s5946_s14 + $0x40] sm:$0xff]   ;;  %s5192_s14 = smov [#allocation2]  }
  0x7e   : > { %4630 = vmatprep.subr.bf16.mxu1 %v5189_v1 }
  0x7f   : > { %4611 = vmatmul.mubr.msk.bf16.vlgmr.msra.gmra.mxu0 %vm1585_vm2, %v1567_v10  ;;  %v1641_v12 = vshrl.u32 %v1567_v10, 16  ;;  %v1643_v13 = vshll.u32 %v1567_v10, 16  ;;  %v1709_v14 = vrot.slane %v1567_v10, 1  ;;  %v1835_v19 = vrot.slane %v1567_v10, 2 }
  0x80   : > { %4623 = vmatpush3.bf16.msra.mxu0 %v4964_v7  ;;  %4626 = vmatprep.mubr.msk.bf16.mxu0 %vm5190_vm0, %v5189_v1 }
  0x81   : > { %4624 = vmatprep.subr.bf16.mxu0 %v5189_v1  ;;  %v1645_v16 = vrot.slane %v1643_v13, 1  ;;  %v1771_v17 = vrot.slane %v1641_v12, 1  ;;  %v1772_v18 = vrot.slane %v1643_v13, 2  ;;  %v5579_v13 = vld [vmem:[%s1511_s28 + $0x8] sm:$0xff] }
  0x83   : > { %v1646_v21 = vor.u32 %v1645_v16, %v1641_v12  ;;  %v1773_v24 = vor.u32 %v1772_v18, %v1771_v17  ;;  %v5577_v12 = vld [vmem:[%s1511_s28] sm:$0xff]  ;;  %v2304_v17 = vrot.slane %v5579_v13, 6  ;;  %s1506_s28 = scalar_lea.vmem %s5956_s9, %s5573_s1  ;;  %s5667_s9 = sand.u32 1, %s5133_s16  }
  0x84   : > { %4625 = vmatpush3.bf16.msra.mxu0 %v4966_v11  ;;  %v2303_v16 = vrot.slane %v5577_v12, 6 }
  0x85   : > { %4619 = vmatmul.mubr.msk.bf16.vlgmr.msra.gmra.mxu1 %vm1585_vm2, %v1646_v21  ;;  %4638 = vmatprep.subr.bf16.mxu0 %v5189_v1  ;;  %v4983_v21 = vld [vmem:[%s5257_s24] sm:$0xff]  }
  0x86   : > { %4631 = vmatpush3.bf16.msra.mxu1 %v4967_v15  ;;  %4634 = vmatprep.mubr.msk.bf16.mxu1 %vm5190_vm0, %v5189_v1  ;;  %v4982_v15 = vld [vmem:[%s5947_s6] sm:$0xff]   ;;  %v2305_v18 = vsel %vm1564_vm1, %v2303_v16, %v2304_v17 }
  0x87   : > { %4627 = vmatmul.mubr.msk.bf16.vlgmr.msra.gmra.mxu0 %vm1585_vm2, %v1709_v14  ;;  %4632 = vmatprep.subr.bf16.mxu1 %v5189_v1  ;;  %v4981_v14 = vld [vmem:[%s5257_s24 + $0x8] sm:$0xff]  }
  0x88   : > { %4639 = vmatpush3.bf16.msra.mxu0 %v4968_v20  ;;  %4642 = vmatprep.mubr.msk.bf16.mxu0 %vm5190_vm0, %v5189_v1 }
  0x89   : > { %4640 = vmatprep.subr.bf16.mxu0 %v5189_v1 }
  0x8a   : > { %4633 = vmatpush3.bf16.msra.mxu1 %v4969_v22  ;;  %v2310_v22 = vsel %vm1564_vm1, %v2304_v17, 0.0 }
  0x8b   : > { %4646 = vmatprep.subr.bf16.mxu1 %v5189_v1 }
  0x8c   : > { %4641 = vmatpush3.bf16.msra.mxu0 %v4970_v23  ;;  %v4984_v23 = vld [vmem:[%s5947_s6 + $0x10] sm:$0xff]  }
  0x8d   : > { %4635 = vmatmul.mubr.msk.bf16.vlgmr.msra.gmra.mxu1 %vm1585_vm2, %v1773_v24  ;;  %4654 = vmatprep.subr.bf16.mxu0 %v5189_v1  ;;  %v2312_v24 = vpack.c.bf16 %v2310_v22, %v2310_v22 }
  0x8e   : > { %4650 = vmatprep.mubr.msk.bf16.mxu1 %vm5190_vm0, %v5189_v1  ;;  %4647 = vmatpush3.bf16.msra.mxu1 %v4971_v25 }
  0x8f   : > { %4643 = vmatmul.mubr.msk.bf16.vlgmr.msra.gmra.mxu0 %vm1585_vm2, %v1835_v19  ;;  %4648 = vmatprep.subr.bf16.mxu1 %v5189_v1  ;;  %v2309_v19 = vsel %vm1564_vm1, 0.0, %v2303_v16 }
  0x90   : > { %4658 = vmatprep.mubr.msk.bf16.mxu0 %vm5190_vm0, %v5189_v1  ;;  %4655 = vmatpush3.bf16.msra.mxu0 %v4973_v27  ;;  %v2311_v20 = vpack.c.bf16 %v2305_v18, %v2309_v19 }
  0x91   : > { %4656 = vmatprep.subr.bf16.mxu0 %v5189_v1 }
  0x92   : > { %4649 = vmatpush3.bf16.msra.mxu1 %v4972_v26  ;;  %v2448_v25 = vrot.slane %v2311_v20, 1  ;;  %v2449_v26 = vrot.slane %v2312_v24, 1  ;;  %v2379_v27 = vshrl.u32 %v2311_v20, 16 }
  0x93   : > { %4662 = vmatprep.subr.bf16.mxu1 %v5189_v1 }
  0x94   : > { %4657 = vmatpush3.bf16.msra.mxu0 %v4975_v28  ;;  %v2381_v28 = vshll.u32 %v2311_v20, 16 }
  0x95   : > { %4670 = vmatprep.subr.bf16.mxu0 %v5189_v1 }
 0x13f   : > { %v1623_v29 = vpop.f32.mrf.mxu0 }
 0x140   : > { %v1635_v35 = vadd.f32 %v4362_v31, %v1623_v29  ;;  %v2386_v29 = vshll.u32 %v2312_v24, 16  ;;  %v2383_v31 = vrot.slane %v2381_v28, 1 }
 0x141   : > { %v4612_v30 = vpop.f32.mrf.mxu0 }
 0x142   : > { %v2450_v30 = vsel %vm2447_vm4, %v2448_v25, %v2449_v26 }
 0x143   : > { %v1626_v32 = vpop.f32.mrf.mxu0 }
 0x144   : > { %v2388_v32 = vrot.slane %v2386_v29, 1 }
 0x145   : > { %v4613_v33 = vpop.f32.mrf.mxu0  ;;  %v1696_v34 = vpop.f32.mrf.mxu1 }
 0x146   : > { %v1702_v38 = vadd.f32 %v1696_v34, %v1635_v35  ;;  %v2384_v33 = vor.u32 %v2383_v31, %v2379_v27  ;;  %v4986_v34 = vld [vmem:[%s5947_s6 + $0x20] sm:$0xff]  }
 0x147   : > { %v4620_v36 = vpop.f32.mrf.mxu1  ;;  %v1759_v37 = vpop.f32.mrf.mxu0  ;;  %v4991_v31 = vld [vmem:[%s5948_s4] sm:$0xff]  }
 0x148   : > { %v1765_v43 = vadd.f32 %v1759_v37, %v1702_v38  ;;  %v2389_v35 = vsel %vm2378_vm5, %v2384_v33, %v2388_v32  ;;  %v2572_v36 = vrot.slane %v2311_v20, 2  ;;  %v2573_v37 = vrot.slane %v2312_v24, 2  ;;  %v2700_v32 = vld [vmem:[%s1506_s28] sm:$0xff]  ;;  %v2701_v33 = vld [vmem:[%s1506_s28 + $0x8] sm:$0x1]  ;;  %s5958_s28 = sld [smem:[#allocation14_spill]] }
 0x149   : > { %v1699_v39 = vpop.f32.mrf.mxu1  ;;  %v4628_v40 = vpop.f32.mrf.mxu0  ;;  %v2507_v38 = vrot.slane %v2379_v27, 1 }
 0x14a   : > { %v2508_v39 = vrot.slane %v2381_v28, 2  ;;  %v2510_v40 = vshrl.u32 %v2312_v24, 16  ;;  %v4988_v28 = vld [vmem:[%s5277_s20 + $0x8] sm:$0xff]  }
 0x14b   : > { %v4621_v41 = vpop.f32.mrf.mxu1  ;;  %v1762_v42 = vpop.f32.mrf.mxu0 }
 0x14c   : > { %v2513_v41 = vrot.slane %v2386_v29, 2  ;;  %v2574_v42 = vsel %vm2571_vm6, %v2572_v36, %v2573_v37  ;;  %v4989_v29 = vld [vmem:[%s5277_s20] sm:$0xff]  }
 0x14d   : > { %v4629_v44 = vpop.f32.mrf.mxu0  ;;  %v1823_v45 = vpop.f32.mrf.mxu1 }
 0x14e   : > { %v1829_v46 = vadd.f32 %v1823_v45, %v1765_v43  ;;  %v2509_v43 = vor.u32 %v2508_v39, %v2507_v38  ;;  %v2512_v44 = vrot.slane %v2510_v40, 1  ;;  %v4429_v38 = vld [vmem:[%s5957_s12] ss:$0 sm:$0xff]  ;;  %s5651_s3 = scalar_lea.vmem %s5958_s28, %s5494_s11  ;;  %s5959_s28 = sld [smem:[#allocation12_spill]] }
 0x14f   : > { %v4636_v47 = vpop.f32.mrf.mxu1  ;;  %v1885_v48 = vpop.f32.mrf.mxu0  ;;  %s5895_s12 = sshll.u32 %s5667_s9, 3 }
 0x150   : > { %v1891_v49 = vadd.f32 %v1885_v48, %v1829_v46  ;;  %v2514_v45 = vor.u32 %v2513_v41, %v2512_v44 }
 0x151   : > { %v1826_v50 = vpop.f32.mrf.mxu1  ;;  %v4644_v51 = vpop.f32.mrf.mxu0 }
 0x152   : > { %v1892_v52 = vmax.f32 %v1891_v49, 0.0  ;;  %v2515_v46 = vsel %vm2506_vm7, %v2509_v43, %v2514_v45  ;;  %v4394_v49 = vld [vmem:[%s5955_s19] ss:$0 sm:$0xff] }
 0x153   : > { %v4637_v53 = vpop.f32.mrf.mxu1  ;;  %v1888_v54 = vpop.f32.mrf.mxu0 }
 0x154   : > { %v1894_v55 = vrot.slane %v1892_v52, 6  ;;  %s1519_s5 = scalar_lea.vmem %s5959_s28, %s5499_s23 }
 0x155   : > { %v4645_v56 = vpop.f32.mrf.mxu0 }
 0x156   : > { %v1896_v57 = vsel %vm1564_vm1, 0.0, %v1894_v55  ;;  %v1897_v58 = vsel %vm1564_vm1, %v1894_v55, 0.0 }
 0x157   : > { %v1898_v60 = vpack.c.bf16 %v1897_v58, %v1896_v57 }
 0x159   : > { %4651 = vmatmul.mubr.msk.bf16.vlgmr.msra.gmra.mxu1 %vm1585_vm2, %v1898_v60  ;;  %v1973_v61 = vshll.u32 %v1898_v60, 16  ;;  %v1971_v63 = vshrl.u32 %v1898_v60, 16  ;;  %v2039_v5 = vrot.slane %v1898_v60, 1  ;;  %v2165_v11 = vrot.slane %v1898_v60, 2 }
 0x15a   : > { %4663 = vmatpush3.bf16.msra.mxu1 %v4974_v59  ;;  %4666 = vmatprep.mubr.msk.bf16.mxu1 %vm5190_vm0, %v5189_v1 }
 0x15b   : > { %4664 = vmatprep.subr.bf16.mxu1 %v5189_v1  ;;  %v1975_v0 = vrot.slane %v1973_v61, 1  ;;  %v2101_v7 = vrot.slane %v1971_v63, 1  ;;  %v2102_v8 = vrot.slane %v1973_v61, 2 }
 0x15d   : > { %v1976_v3 = vor.u32 %v1975_v0, %v1971_v63  ;;  %v2103_v10 = vor.u32 %v2102_v8, %v2101_v7 }
 0x15e   : > { %4665 = vmatpush3.bf16.msra.mxu1 %v4976_v62 }
 0x15f   : > { %4659 = vmatmul.mubr.msk.bf16.vlgmr.msra.gmra.mxu0 %vm1585_vm2, %v1976_v3  ;;  %4678 = vmatprep.subr.bf16.mxu1 %v5189_v1 }
 0x160   : > { %4671 = vmatpush3.bf16.msra.mxu0 %v4977_v2  ;;  %4674 = vmatprep.mubr.msk.bf16.mxu0 %vm5190_vm0, %v5189_v1 }
 0x161   : > { %4667 = vmatmul.mubr.msk.bf16.vlgmr.msra.gmra.mxu1 %vm1585_vm2, %v2039_v5  ;;  %4672 = vmatprep.subr.bf16.mxu0 %v5189_v1 }
 0x162   : > { %4679 = vmatpush3.bf16.msra.mxu1 %v4978_v4  ;;  %4682 = vmatprep.mubr.msk.bf16.mxu1 %vm5190_vm0, %v5189_v1 }
 0x163   : > { %4680 = vmatprep.subr.bf16.mxu1 %v5189_v1 }
 0x164   : > { %4673 = vmatpush3.bf16.msra.mxu0 %v4979_v6 }
 0x165   : > { %4686 = vmatprep.subr.bf16.mxu0 %v5189_v1 }
 0x166   : > { %4681 = vmatpush3.bf16.msra.mxu1 %v4980_v9 }
 0x167   : > { %4675 = vmatmul.mubr.msk.bf16.vlgmr.msra.gmra.mxu0 %vm1585_vm2, %v2103_v10  ;;  %4694 = vmatprep.subr.bf16.mxu1 %v5189_v1  ;;  %v4985_v10 = vld [vmem:[%s5947_s6 + $0x8] sm:$0xff]  }
 0x168   : > { %4690 = vmatprep.mubr.msk.bf16.mxu0 %vm5190_vm0, %v5189_v1  ;;  %4687 = vmatpush3.bf16.msra.mxu0 %v4981_v14 }
 0x169   : > { %4683 = vmatmul.mubr.msk.bf16.vlgmr.msra.gmra.mxu1 %vm1585_vm2, %v2165_v11  ;;  %4688 = vmatprep.subr.bf16.mxu0 %v5189_v1 }
 0x16a   : > { %4696 = vmatprep.mubr.msk.bf16.mxu1 %vm5190_vm0, %v5189_v1  ;;  %4695 = vmatpush3.bf16.msra.mxu1 %v4982_v15  ;;  %v4987_v15 = vld [vmem:[%s5947_s6 + $0x18] sm:$0xff]   ;;  %s5961_s6 = sld [smem:[#allocation46_spill]] }
 0x16b   : > { %4706 = vmatprep.subr.bf16.mxu1 %v5189_v1 }
 0x16c   : > { %4689 = vmatpush3.bf16.msra.mxu0 %v4983_v21 }
 0x16d   : > { %4700 = vmatprep.subr.bf16.mxu0 %v5189_v1 }
 0x170   : > { %s1540_s28 = scalar_lea.vmem %s5961_s6, %s5573_s1  ;;  %s5965_s6 = sld [smem:[#allocation29_spill]] }
 0x171   : > { %4697 = vmatmul.mubr.msk.bf16.vlgmr.msra.gmra.mxu1 %vm2322_vm3, %v2311_v20 }
 0x172   : > { %4708 = vmatprep.mubr.msk.bf16.mxu1 %vm5190_vm0, %v5189_v1  ;;  %4707 = vmatpush3.bf16.msra.mxu1 %v4984_v23 }
 0x173   : > { %4718 = vmatprep.subr.bf16.mxu1 %v5189_v1 }
 0x179   : > { %4709 = vmatmul.mubr.msk.bf16.vlgmr.msra.gmra.mxu1 %vm2322_vm3, %v2450_v30  ;;  %v4990_v30 = vld [vmem:[%s5948_s4 + $0x8] sm:$0xff]   ;;  %s5960_s4 = sld [smem:[#allocation19_spill]] }
 0x17a   : > { %4720 = vmatprep.mubr.msk.bf16.mxu1 %vm5190_vm0, %v5189_v1  ;;  %4719 = vmatpush3.bf16.msra.mxu1 %v4986_v34  ;;  %v2702_v34 = vpack.c.bf16 %v2701_v33, %v2700_v32 }
 0x17b   : > { %4732 = vmatprep.subr.bf16.mxu1 %v5189_v1 }
 0x181   : > { %4721 = vmatmul.mubr.msk.bf16.vlgmr.msra.gmra.mxu1 %vm2322_vm3, %v2574_v42 }
 0x182   : > { %4736 = vmatprep.mubr.msk.bf16.mxu1 %vm5190_vm0, %v5189_v1  ;;  %4733 = vmatpush3.bf16.msra.mxu1 %v4990_v30 }
 0x183   : > { %4734 = vmatprep.subr.bf16.mxu1 %v5189_v1 }
 0x186   : > { %4735 = vmatpush3.bf16.msra.mxu1 %v4991_v31 }
 0x187   : > { %4746 = vmatprep.subr.bf16.mxu1 %v5189_v1 }
 0x189   : > { %4737 = vmatmul.mubr.msk.bf16.vlgmr.msra.gmra.mxu1 %vm1585_vm2, %v2702_v34  ;;  %v5191_v34 = vmov 0  }
 0x18a   : > { %4748 = vmatprep.mubr.msk.bf16.mxu1 %vm5190_vm0, %v5189_v1  ;;  %4959 = vset.pattern.permute.xlu1 %v5191_v34 }
 0x18b   : > { %4960 = vset.pattern.permute.xlu0 %v5191_v34 }
 0x219   : > { %v1953_v47 = vpop.f32.mrf.mxu1 }
 0x21a   : > { %v1965_v53 = vadd.f32 %v4394_v49, %v1953_v47 }
 0x21b   : > { %v4652_v48 = vpop.f32.mrf.mxu1 }
 0x21d   : > { %v1956_v50 = vpop.f32.mrf.mxu1 }
 0x21f   : > { %v4653_v51 = vpop.f32.mrf.mxu1  ;;  %v2026_v52 = vpop.f32.mrf.mxu0 }
 0x220   : > { %v2032_v56 = vadd.f32 %v2026_v52, %v1965_v53 }
 0x221   : > { %v4660_v54 = vpop.f32.mrf.mxu0  ;;  %v2089_v55 = vpop.f32.mrf.mxu1 }
 0x222   : > { %v2095_v61 = vadd.f32 %v2089_v55, %v2032_v56 }
 0x223   : > { %v2029_v57 = vpop.f32.mrf.mxu0  ;;  %v4668_v58 = vpop.f32.mrf.mxu1 }
 0x225   : > { %v4661_v59 = vpop.f32.mrf.mxu0  ;;  %v2092_v60 = vpop.f32.mrf.mxu1 }
 0x227   : > { %v4669_v62 = vpop.f32.mrf.mxu1  ;;  %v2153_v63 = vpop.f32.mrf.mxu0 }
 0x228   : > { %v2159_v0 = vadd.f32 %v2153_v63, %v2095_v61  ;;  %v4450_v61 = vld [vmem:[%s5292_s25] ss:$0 sm:$0xff] }
 0x229   : > { %v4676_v2 = vpop.f32.mrf.mxu0  ;;  %v2215_v3 = vpop.f32.mrf.mxu1 }
 0x22a   : > { %v2221_v4 = vadd.f32 %v2215_v3, %v2159_v0 }
 0x22b   : > { %v2156_v5 = vpop.f32.mrf.mxu0  ;;  %v4684_v6 = vpop.f32.mrf.mxu1 }
 0x22c   : > { %v2222_v7 = vmax.f32 %v2221_v4, 0.0  ;;  %v4446_v6 = vld [vmem:[%s5282_s27] ss:$0 sm:$0xff] }
 0x22d   : > { %v4677_v8 = vpop.f32.mrf.mxu0  ;;  %v2218_v9 = vpop.f32.mrf.mxu1 }
 0x22e   : > { %v2223_v11 = vpack.c.bf16 %v2222_v7, %v2222_v7 }
 0x22f   : > { %v4685_v14 = vpop.f32.mrf.mxu1 }
 0x230   : > { %4691 = vmatmul.mubr.msk.bf16.vlgmr.msra.gmra.mxu0 %vm1585_vm2, %v2223_v11 }
 0x231   : > { %4701 = vmatpush3.bf16.msra.mxu0 %v4985_v10  ;;  %4702 = vmatprep.mubr.msk.bf16.mxu0 %vm5190_vm0, %v5189_v1  ;;  %v2360_v16 = vpop.f32.mrf.mxu1 }
 0x232   : > { %4712 = vmatprep.subr.bf16.mxu0 %v5189_v1  ;;  %v2373_v41 = vadd.f32 %v4429_v38, %v2360_v16 }
 0x233   : > { %v4698_v17 = vpop.f32.mrf.mxu1 }
 0x235   : > { %v2363_v18 = vpop.f32.mrf.mxu1 }
 0x236   : > { %v2374_v45 = vadd.f32 %v4429_v38, %v2363_v18 }
 0x237   : > { %v4699_v19 = vpop.f32.mrf.mxu1 }
 0x238   : > { %4703 = vmatmul.mubr.msk.bf16.vlgmr.msra.gmra.mxu0 %vm2322_vm3, %v2389_v35  ;;  %v2772_v19 = vlaneseq }
 0x239   : > { %4713 = vmatpush3.bf16.msra.mxu0 %v4987_v15  ;;  %4714 = vmatprep.mubr.msk.bf16.mxu0 %vm5190_vm0, %v5189_v1  ;;  %v2494_v20 = vpop.f32.mrf.mxu1 }
 0x23a   : > { %4724 = vmatprep.subr.bf16.mxu0 %v5189_v1 }
 0x23b   : > { %v4710_v21 = vpop.f32.mrf.mxu1 }
 0x23d   : > { %v2497_v22 = vpop.f32.mrf.mxu1 }
 0x23f   : > { %v4711_v23 = vpop.f32.mrf.mxu1 }
 0x240   : > { %4715 = vmatmul.mubr.msk.bf16.vlgmr.msra.gmra.mxu0 %vm2322_vm3, %v2515_v46 }
 0x241   : > { %4728 = vmatprep.mubr.msk.bf16.mxu0 %vm5190_vm0, %v5189_v1  ;;  %v2618_v24 = vpop.f32.mrf.mxu1  ;;  %4725 = vmatpush3.bf16.msra.mxu0 %v4988_v28 }
 0x242   : > { %4726 = vmatprep.subr.bf16.mxu0 %v5189_v1 }
 0x243   : > { %v4722_v25 = vpop.f32.mrf.mxu1 }
 0x245   : > { %v2621_v26 = vpop.f32.mrf.mxu1  ;;  %4727 = vmatpush3.bf16.msra.mxu0 %v4989_v29 }
 0x246   : > { %4740 = vmatprep.subr.bf16.mxu0 %v5189_v1 }
 0x247   : > { %v4723_v27 = vpop.f32.mrf.mxu1 }
 0x249   : > { %v2763_v62 = vpop.f32.mrf.mxu1 }
 0x24a   : > { %v2764_v0 = vadd.f32 %v4450_v61, %v2763_v62  ;;  %v4995_v62 = vld [vmem:[%s5964_s13 + $0x8] sm:$0xff]  }
 0x24b   : > { %v4738_v63 = vpop.f32.mrf.mxu1 }
 0x24c   : > { %v4996_v63 = vld [vmem:[%s5964_s13] sm:$0xff]   ;;  %s5981_s13 = sld [smem:[#allocation35_spill]] }
 0x24d   : > { %v2766_v2 = vpop.f32.mrf.mxu1 }
 0x24e   : > { %v2767_v3 = vadd.f32 %v4450_v61, %v2766_v2  ;;  %v3100_v61 = vpack.c.bf16 %v5579_v13, %v5577_v12 }
 0x24f   : > { %v4739_v4 = vpop.f32.mrf.mxu1 }
 0x250   : > { %v5639_v5 = vpack.c.bf16 %v2767_v3, %v2764_v0  ;;  %v3246_v0 = vld [vmem:[%s5651_s3] sm:$0x1] }
 0x251   : > { %v3291_v2 = vsel %vm2827_vm8, %v3246_v0, 0.0 }
 0x2f0   : > { %v5632_v35 = vpop.f32.mrf.mxu0 }
 0x2f2   : > { %v4692_v36 = vpop.f32.mrf.mxu0 }
 0x2f4   : > { %v2287_v37 = vpop.f32.mrf.mxu0 }
 0x2f6   : > { %v4693_v39 = vpop.f32.mrf.mxu0 }
 0x2f8   : > { %v2433_v40 = vpop.f32.mrf.mxu0 }
 0x2f9   : > { %v2440_v43 = vadd.f32 %v2433_v40, %v2373_v41 }
 0x2fa   : > { %v4704_v42 = vpop.f32.mrf.mxu0 }
 0x2fb   : > { %v2501_v48 = vadd.f32 %v2494_v20, %v2440_v43  ;;  %v1557_v20 = vld [vmem:[%s5651_s3] sm:$0x1]  ;;  %s5967_s3 = sld [smem:[#allocation26_spill]] }
 0x2fc   : > { %v2436_v44 = vpop.f32.mrf.mxu0  ;;  %v4358_v21 = vadd.f32 -1.0, %v1557_v20 }
 0x2fd   : > { %v2441_v47 = vadd.f32 %v2436_v44, %v2374_v45 }
 0x2fe   : > { %v4705_v46 = vpop.f32.mrf.mxu0  ;;  %v1559_v23 = vmul.f32 1e+09, %v4358_v21 }
 0x2ff   : > { %v2502_v52 = vadd.f32 %v2497_v22, %v2441_v47  ;;  %v2773_v22 = vshrl.u32 %v2772_v19, 7  ;;  %v2291_v46 = vld [vmem:[%s1519_s5] sm:$0xff]  ;;  %s5674_s5 = scalar_lea.vmem [#allocation2], %s5895_s12  ;;  %s5970_s12 = sld [smem:[#allocation44_spill]] }
 0x300   : > { %v2559_v49 = vpop.f32.mrf.mxu0  ;;  %v4423_v47 = vld [vmem:[%s5960_s4] ss:$0 sm:$0xff]  ;;  %s5963_s4 = sld [smem:[#allocation28_spill]] }
 0x301   : > { %v2566_v50 = vadd.f32 %v2559_v49, %v2501_v48  ;;  %v2285_v48 = vadd.f32 %v4423_v47, %v5632_v35 }
 0x302   : > { %v4716_v51 = vpop.f32.mrf.mxu0 }
 0x303   : > { %v2625_v54 = vadd.f32 %v2618_v24, %v2566_v50  ;;  %v5655_v24 = vsub.s32 0, %v2773_v22 }
 0x304   : > { %v2562_v53 = vpop.f32.mrf.mxu0 }
 0x305   : > { %v2567_v55 = vadd.f32 %v2562_v53, %v2502_v52  ;;  %v2627_v58 = vmax.f32 %v2625_v54, 0.0  ;;  %v2775_v25 = vrot.slane %v1559_v23, %v5655_v24  ;;  %v3247_v23 = vpack.c.bf16 %v3246_v0, %v3246_v0 }
 0x306   : > { %v4717_v56 = vpop.f32.mrf.mxu0 }
 0x307   : > { %v2626_v57 = vadd.f32 %v2621_v26, %v2567_v55 }
 0x309   : > { %v2628_v59 = vmax.f32 %v2626_v57, 0.0  ;;  %v4992_v57 = vld [vmem:[%s5962_s8 + $0x8] sm:$0xff]  }
 0x30b   : > { %v2629_v60 = vpack.c.bf16 %v2628_v59, %v2627_v58  ;;  %v4993_v59 = vld [vmem:[%s5962_s8] sm:$0xff]  }
 0x30d   : > { %4729 = vmatmul.mubr.msk.bf16.vlgmr.msra.gmra.mxu0 %vm1585_vm2, %v2629_v60  ;;  %v4994_v60 = vld [vmem:[%s5963_s4] sm:$0xff]   ;;  %s5966_s4 = sld [smem:[#allocation32_spill]] }
 0x30e   : > { %4742 = vmatprep.mubr.msk.bf16.mxu0 %vm5190_vm0, %v5189_v1 }
 0x3cd   : > { %v2690_v7 = vpop.f32.mrf.mxu0 }
 0x3ce   : > { %v2691_v8 = vadd.f32 %v4446_v6, %v2690_v7 }
 0x3cf   : > { %v4730_v9 = vpop.f32.mrf.mxu0 }
 0x3d0   : > { %5013 = vtanh.f32 %v2691_v8 }
 0x3d1   : > { %v2693_v10 = vpop.f32.mrf.mxu0 }
 0x3d2   : > { %v2694_v11 = vadd.f32 %v4446_v6, %v2693_v10  ;;  %v4467_v10 = vld [vmem:[%s5965_s6] ss:$0 sm:$0xff]  ;;  %s5969_s6 = sld [smem:[#allocation25_spill]] }
 0x3d3   : > { %v4731_v14 = vpop.f32.mrf.mxu0 }
 0x3d4   : > { %5015 = vtanh.f32 %v2694_v11 }
 0x3dd   : > { %v5014_v15 = vpop.eup %5013 }
 0x3e1   : > { %v5016_v16 = vpop.eup %5015 }
 0x3e2   : > { %v2699_v17 = vpack.c.bf16 %v5016_v16, %v5014_v15 }
 0x3e4   : > { %4747 = vmatpush3.bf16.msra.mxu1 %v2699_v17  ;;  %v2781_v18 = vsel %vm1585_vm2, %v2699_v17, 0 }
 0x3e5   : > { %4741 = vmatpush3.bf16.xpose.msra.mxu0 %v2781_v18  ;;  %4760 = vmatprep.subr.bf16.mxu1 %v5189_v1 }
 0x3e6   : > { %4752 = vmatprep.subr.bf16.mxu0 %v5189_v1 }
 0x3ec   : > { %4743 = vmatmul.mubr.msk.bf16.vlgmr.msra.gmra.mxu0 %vm1585_vm2, %v5639_v5 }
 0x3ed   : > { %4756 = vmatprep.mubr.msk.bf16.mxu0 %vm5190_vm0, %v5189_v1  ;;  %4753 = vmatpush3.bf16.msra.mxu0 %v4995_v62 }
 0x3ee   : > { %4754 = vmatprep.subr.bf16.mxu0 %v5189_v1 }
 0x3f1   : > { %4755 = vmatpush3.bf16.msra.mxu0 %v4996_v63 }
 0x3f2   : > { %4768 = vmatprep.subr.bf16.mxu0 %v5189_v1 }
 0x4ac   : > { %v2817_v26 = vpop.f32.mrf.mxu0 }
 0x4ad   : > { %v2818_v27 = vadd.f32 %v2817_v26, %v2775_v25  ;;  %v4998_v26 = vld [vmem:[%s5966_s4] sm:$0xff]  }
 0x4ae   : > { %v4744_v28 = vpop.f32.mrf.mxu0 }
 0x4af   : > { %v2824_v29 = vsel %vm2322_vm3, %v2818_v27, -inf  ;;  %v4999_v28 = vld [vmem:[%s5967_s3 + $0x8] sm:$0xff]  }
 0x4b0   : > { %2825 = vmax.xlane.f32.xlu0 %v2824_v29  ;;  %v2820_v30 = vpop.f32.mrf.mxu0  ;;  %v5000_v29 = vld [vmem:[%s5967_s3] sm:$0xff]   ;;  %s5971_s3 = sld [smem:[#allocation30_spill]] }
 0x4b1   : > { %v2821_v31 = vadd.f32 %v2820_v30, %v2775_v25  ;;  %v4997_v25 = vld [vmem:[%s5966_s4 + $0x8] sm:$0xff]   ;;  %s1530_s4 = scalar_lea.vmem %s5970_s12, %s5573_s1  ;;  %s5972_s12 = sld [smem:[#allocation33_spill]] }
 0x4b2   : > { %v4745_v32 = vpop.f32.mrf.mxu0 }
 0x4b3   : > { %v2828_v33 = vsel %vm2827_vm8, %v2821_v31, -inf }
 0x4b4   : > { %2829 = vmax.xlane.f32.xlu0 %v2828_v33  ;;  %v4462_v33 = vld [vmem:[%s5969_s6] ss:$0 sm:$0xff]  ;;  %s5974_s6 = sld [smem:[#allocation27_spill]] }
 0x4b8   : > { %3292 = vadd.xlane.f32.xlu0 %v3291_v2 }
 0x4ba   : > { %v4463_v2 = vld [vmem:[%s5974_s6] ss:$0 sm:$0xff] }
 0x539   : > { %v2826_v36 = vpop.xlane.xlu0 %2825 }
 0x53a   : > { %v2831_v37 = vsub.f32 %v2818_v27, %v2826_v36 }
 0x53c   : > { %v2833_v38 = vmul.f32 1.442695, %v2831_v37 }
 0x53d   : > { %v2830_v39 = vpop.xlane.xlu0 %2829 }
 0x53e   : > { %5017 = vpow2.f32 %v2833_v38  ;;  %v2832_v40 = vsub.f32 %v2821_v31, %v2830_v39 }
 0x540   : > { %v2835_v41 = vmul.f32 1.442695, %v2832_v40 }
 0x542   : > { %5019 = vpow2.f32 %v2835_v41 }
 0x543   : > { %5021 = vtanh.f32 %v2285_v48  ;;  %v5001_v48 = vld [vmem:[%s5971_s3 + $0x8] sm:$0xff]  }
 0x54b   : > { %v5018_v42 = vpop.eup %5017 }
 0x54c   : > { %v2837_v43 = vsel %vm2322_vm3, %v5018_v42, 0.0 }
 0x54d   : > { %2838 = vadd.xlane.f32.xlu1 %v2837_v43 }
 0x54f   : > { %v5020_v44 = vpop.eup %5019 }
 0x550   : > { %v2840_v45 = vsel %vm2827_vm8, %v5020_v44, 0.0  ;;  %v5022_v51 = vpop.eup %5021 }
 0x551   : > { %2841 = vadd.xlane.f32.xlu1 %v2840_v45 }
 0x562   : > { %2294 = vperm.xlu1 %4959, %v2291_v46  }
 0x5d6   : > { %v2839_v49 = vpop.xlane.xlu1 %2838 }
 0x5d7   : > { %5023 = vrcp.f32 %v2839_v49 }
 0x5da   : > { %v2842_v50 = vpop.xlane.xlu1 %2841 }
 0x5db   : > { %5025 = vrcp.f32 %v2842_v50  ;;  %v5002_v50 = vld [vmem:[%s5971_s3] sm:$0xff]   ;;  %s5975_s3 = sld [smem:[#allocation45_spill]] }
 0x5de   : > { %v2295_v52 = vpop.permute.xlu1 %2294 }
 0x5df   : > { %v5670_v53 = vmul.f32 %v5022_v51, %v2295_v52 }
 0x5e1   : > { %2298 = vst.msk [vmem:[%s5674_s5] sm:$0xff] %vm1585_vm2, %v5670_v53  ;;  %v3163_v27 = vpack.c.bf16 %v5670_v53, %v5670_v53  ;;  %s1535_s8 = scalar_lea.vmem %s5975_s3, %s5573_s1  ;;  %s5978_s3 = sld [smem:[#allocation34_spill]] }
 0x5e3   : > { %v3168_v47 = vsel %vm1585_vm2, %v3163_v27, 0 }
 0x5e4   : > { %v5024_v35 = vpop.eup %5023 }
 0x5e5   : > { %v2844_v54 = vmul.f32 %v5024_v35, %v5018_v42  ;;  %v3293_v42 = vpop.xlane.xlu0 %3292 }
 0x5e6   : > { %v3294_v43 = vmax.f32 %v3293_v42, 1.0  ;;  %v4485_v42 = vld [vmem:[%s5981_s13] ss:$0 sm:$0xff] }
 0x5e7   : > { %3096 = vst.msk [vmem:[%s1540_s28] sm:$0xff] %vm2322_vm3, %v2844_v54 }
 0x5e8   : > { %v5026_v55 = vpop.eup %5025 }
 0x5e9   : > { %v2846_v56 = vmul.f32 %v5026_v55, %v5020_v44 }
 0x5eb   : > { %v2847_v58 = vpack.c.bf16 %v2846_v56, %v2844_v54  ;;  %3097 = vst.msk [vmem:[%s1540_s28 + $0x8] sm:$0x1] %vm2827_vm8, %v2846_v56  ;;  %s5968_s28 = sld [smem:[#allocation36_spill]]  ;;  %v4475_v56 = vld [vmem:[%s5972_s12] ss:$0 sm:$0xff] }
 0x5ec   : > { %s5976_s12 = sld [smem:[#allocation31_spill]] }
 0x5ed   : > { %4749 = vmatmul.mubr.msk.bf16.vlgmr.msra.gmra.mxu1 %vm2322_vm3, %v2847_v58 }
 0x5ee   : > { %4761 = vmatpush3.bf16.msra.mxu1 %v4992_v57  ;;  %4764 = vmatprep.mubr.msk.bf16.mxu1 %vm5190_vm0, %v5189_v1 }
 0x5ef   : > { %4762 = vmatprep.subr.bf16.mxu1 %v5189_v1 }
 0x5f1   : > { %v5003_v30 = vld [vmem:[%s5968_s28 + $0x8] sm:$0xff]   ;;  %v5004_v31 = vld [vmem:[%s5968_s28] sm:$0xff]  }
 0x5f2   : > { %4763 = vmatpush3.bf16.msra.mxu1 %v4993_v59 }
 0x5f3   : > { %4776 = vmatprep.subr.bf16.mxu1 %v5189_v1 }
 0x5f5   : > { %4765 = vmatmul.mubr.msk.bf16.vlgmr.msra.gmra.mxu1 %vm1585_vm2, %v5639_v5 }
 0x5f6   : > { %4777 = vmatpush3.bf16.msra.mxu1 %v4994_v60  ;;  %4778 = vmatprep.mubr.msk.bf16.mxu1 %vm5190_vm0, %v5189_v1 }
 0x5f7   : > { %4788 = vmatprep.subr.bf16.mxu1 %v5189_v1 }
 0x5fd   : > { %4779 = vmatmul.mubr.msk.bf16.vlgmr.msra.gmra.mxu1 %vm2322_vm3, %v3100_v61 }
 0x5fe   : > { %4790 = vmatprep.mubr.msk.bf16.mxu1 %vm5190_vm0, %v5189_v1 }
 0x6ad   : > { %v2885_v3 = vpop.f32.mrf.mxu1 }
 0x6af   : > { %v4750_v12 = vpop.f32.mrf.mxu1 }
 0x6b1   : > { %v2888_v13 = vpop.f32.mrf.mxu1 }
 0x6b2   : > { %v2896_v4 = vpack.c.bf16 %v2888_v13, %v2885_v3 }
 0x6b3   : > { %v4751_v5 = vpop.f32.mrf.mxu1 }
 0x6b4   : > { %4757 = vmatmul.mubr.msk.bf16.vlgmr.msra.gmra.mxu0 %vm1585_vm2, %v2896_v4 }
 0x6b5   : > { %v3003_v6 = vpop.f32.mrf.mxu1  ;;  %4772 = vmatprep.mubr.msk.bf16.mxu0 %vm5190_vm0, %v5189_v1  ;;  %4769 = vmatpush3.bf16.msra.mxu0 %v4999_v28 }
 0x6b6   : > { %4770 = vmatprep.subr.bf16.mxu0 %v5189_v1 }
 0x6b7   : > { %v4766_v7 = vpop.f32.mrf.mxu1 }
 0x6b9   : > { %v3006_v8 = vpop.f32.mrf.mxu1  ;;  %4771 = vmatpush3.bf16.msra.mxu0 %v5000_v29 }
 0x6ba   : > { %4782 = vmatprep.subr.bf16.mxu0 %v5189_v1 }
 0x6bb   : > { %v4767_v9 = vpop.f32.mrf.mxu1 }
 0x6bd   : > { %v3153_v11 = vpop.f32.mrf.mxu1 }
 0x6be   : > { %v3154_v14 = vadd.f32 %v4467_v10, %v3153_v11  ;;  %v3302_v11 = vld [vmem:[%s5976_s12] sm:$0x1]  ;;  %s5980_s12 = sld [smem:[#allocation38_spill]] }
 0x6bf   : > { %v4780_v15 = vpop.f32.mrf.mxu1 }
 0x6c0   : > { %5027 = vtanh.f32 %v3154_v14 }
 0x6c1   : > { %v3156_v16 = vpop.f32.mrf.mxu1 }
 0x6c2   : > { %v3157_v17 = vadd.f32 %v4467_v10, %v3156_v16 }
 0x6c3   : > { %v4781_v18 = vpop.f32.mrf.mxu1 }
 0x6c4   : > { %5029 = vtanh.f32 %v3157_v17 }
 0x6cd   : > { %v5028_v20 = vpop.eup %5027 }
 0x6d1   : > { %v5030_v21 = vpop.eup %5029 }
 0x6d2   : > { %v3162_v22 = vpack.c.bf16 %v5030_v21, %v5028_v20  ;;  %v3360_v21 = vand.u32 127, %v2772_v19 }
 0x6d4   : > { %4789 = vmatpush3.bf16.msra.mxu1 %v3162_v22  ;;  %vm3361_vm12 = vcmp.lt.s32.totalorder %v3360_v21, 16 }
 0x6d5   : > { %4802 = vmatprep.subr.bf16.mxu1 %v5189_v1 }
 0x6d7   : > { %4791 = vmatmul.mubr.msk.bf16.vlgmr.msra.gmra.mxu1 %vm2322_vm3, %v3247_v23 }
 0x6d8   : > { %4803 = vmatpush3.bf16.msra.mxu1 %v4997_v25  ;;  %4806 = vmatprep.mubr.msk.bf16.mxu1 %vm5190_vm0, %v5189_v1 }
 0x6d9   : > { %4804 = vmatprep.subr.bf16.mxu1 %v5189_v1 }
 0x6dc   : > { %4805 = vmatpush3.bf16.msra.mxu1 %v4998_v26 }
 0x6dd   : > { %4816 = vmatprep.subr.bf16.mxu1 %v5189_v1 }
 0x6df   : > { %4807 = vmatmul.mubr.msk.bf16.vlgmr.msra.gmra.mxu1 %vm1585_vm2, %v3163_v27  ;;  %v5006_v27 = vld [vmem:[%s5978_s3 + $0x8] sm:$0xff]  }
 0x6e0   : > { %4820 = vmatprep.mubr.msk.bf16.mxu1 %vm5190_vm0, %v5189_v1  ;;  %4817 = vmatpush3.bf16.msra.mxu1 %v5003_v30  ;;  %v5007_v30 = vld [vmem:[%s5978_s3] sm:$0xff]   ;;  %s3958_s3 = sshll.u32 %s5674_s5, 4  ;;  %s3959_s3 = int_to_ptr.vmem [resolvable:$true] %s3958_s3 }
 0x6e1   : > { %4818 = vmatprep.subr.bf16.mxu1 %v5189_v1 }
 0x6e4   : > { %4819 = vmatpush3.bf16.msra.mxu1 %v5004_v31 }
 0x6e5   : > { %4832 = vmatprep.subr.bf16.mxu1 %v5189_v1 }
 0x774   : > { %v2950_v32 = vpop.f32.mrf.mxu0 }
 0x775   : > { %v3004_v34 = vadd.f32 %v3003_v6, %v2950_v32 }
 0x776   : > { %v4758_v36 = vpop.f32.mrf.mxu0 }
 0x777   : > { %v3017_v37 = vadd.f32 %v4462_v33, %v3004_v34  ;;  %v4484_v36 = vld [vmem:[%s5980_s12] ss:$0 sm:$0xff]  ;;  %s5986_s12 = sshll.u32 %s5667_s9, 3 }
 0x778   : > { %v2953_v38 = vpop.f32.mrf.mxu0 }
 0x779   : > { %5031 = vtanh.f32 %v3017_v37  ;;  %v3007_v39 = vadd.f32 %v3006_v8, %v2953_v38 }
 0x77a   : > { %v4759_v40 = vpop.f32.mrf.mxu0 }
 0x77b   : > { %v3018_v41 = vadd.f32 %v4462_v33, %v3007_v39 }
 0x77d   : > { %5033 = vtanh.f32 %v3018_v41 }
 0x77e   : > { %5035 = vrcp.f32 %v3294_v43 }
 0x786   : > { %v5032_v44 = vpop.eup %5031 }
 0x787   : > { %3021 = vst.msk [vmem:[%s1530_s4] sm:$0xff] %vm1585_vm2, %v5032_v44 }
 0x78a   : > { %v5034_v45 = vpop.eup %5033 }
 0x78b   : > { %3023 = vst.msk [vmem:[%s1530_s4 + $0x8] sm:$0x1] %vm3022_vm9, %v5034_v45  ;;  %v3024_v46 = vpack.c.bf16 %v5034_v45, %v5032_v44  ;;  %v5036_v49 = vpop.eup %5035  ;;  %s5973_s4 = sld [smem:[#allocation37_spill]] }
 0x78d   : > { %4773 = vmatmul.mubr.msk.bf16.vlgmr.msra.gmra.mxu0 %vm1585_vm2, %v3024_v46 }
 0x78e   : > { %4783 = vmatpush3.bf16.xpose.msra.mxu0 %v3168_v47  ;;  %4784 = vmatprep.mubr.msk.bf16.mxu0 %vm5190_vm0, %v5189_v1 }
 0x78f   : > { %4794 = vmatprep.subr.bf16.mxu0 %v5189_v1 }
 0x791   : > { %v5005_v0 = vld [vmem:[%s5973_s4] sm:$0xff]   ;;  %s5979_s4 = sld [smem:[#allocation11_spill]] }
 0x795   : > { %4785 = vmatmul.mubr.msk.bf16.vlgmr.msra.gmra.mxu0 %vm1585_vm2, %v3162_v22 }
 0x796   : > { %4795 = vmatpush3.bf16.msra.mxu0 %v5001_v48  ;;  %4798 = vmatprep.mubr.msk.bf16.mxu0 %vm5190_vm0, %v5189_v1 }
 0x797   : > { %v3285_v51 = vpop.f32.mrf.mxu1  ;;  %4796 = vmatprep.subr.bf16.mxu0 %v5189_v1  ;;  %s1515_s6 = scalar_lea.vmem %s5979_s4, %s5499_s23  ;;  %s5982_s4 = sld [smem:[#allocation40_spill]] }
 0x798   : > { %v3296_v52 = vmul.f32 %v5036_v49, %v3285_v51  ;;  %v3554_v19 = vld [vmem:[%s1515_s6] sm:$0xff]  ;;  %s5984_s6 = sld [smem:[#allocation13_spill]] }
 0x799   : > { %v4792_v53 = vpop.f32.mrf.mxu1  ;;  %v3555_v31 = vpack.c.bf16 %v3554_v19, %v3554_v19 }
 0x79a   : > { %v3297_v35 = vpack.c.bf16 %v3296_v52, %v3296_v52  ;;  %4797 = vmatpush3.bf16.msra.mxu0 %v5002_v50 }
 0x79b   : > { %v3288_v54 = vpop.f32.mrf.mxu1  ;;  %4810 = vmatprep.subr.bf16.mxu0 %v5189_v1 }
 0x79d   : > { %v4793_v55 = vpop.f32.mrf.mxu1  ;;  %4799 = vmatmul.mubr.msk.bf16.vlgmr.msra.gmra.mxu0 %vm1585_vm2, %v3297_v35  ;;  %v5008_v52 = vld [vmem:[%s5982_s4] sm:$0xff]   ;;  %s5813_s4 = scalar_lea.vmem [#allocation4], %s5986_s12  ;;  %s4502_s12 = sshll.u32 %s5455_s0, 7 }
 0x79e   : > { %4812 = vmatprep.mubr.msk.bf16.mxu0 %vm5190_vm0, %v5189_v1  ;;  %4811 = vmatpush3.bf16.msra.mxu0 %v5005_v0  ;;  %s1522_s13 = scalar_lea.vmem %s5984_s6, %s5494_s11  ;;  %s5987_s6 = sld [smem:[#allocation43_spill]] }
 0x79f   : > { %v3422_v57 = vpop.f32.mrf.mxu1  ;;  %4824 = vmatprep.subr.bf16.mxu0 %v5189_v1  ;;  %v1554_v54 = vld [vmem:[%s1522_s13] sm:$0x1]  ;;  %s1548_s13 = scalar_lea.vmem %s5422_s30, %s5573_s1 }
 0x7a0   : > { %v3423_v58 = vadd.f32 %v4475_v56, %v3422_v57  ;;  %v4357_v55 = vadd.f32 -1.0, %v1554_v54 }
 0x7a1   : > { %v4808_v59 = vpop.f32.mrf.mxu1 }
 0x7a2   : > { %v3428_v60 = vmax.f32 %v3423_v58, 0.0  ;;  %v1556_v56 = vmul.f32 1e+09, %v4357_v55 }
 0x7a3   : > { %v3425_v61 = vpop.f32.mrf.mxu1 }
 0x7a4   : > { %v3429_v62 = vpack.c.bf16 %v3428_v60, %v3428_v60  ;;  %v3217_v57 = vrot.slane %v1556_v56, %v5655_v24  ;;  %s3956_s1 = scalar_lea.hbm %s5987_s6, %s4502_s12 }
 0x7a5   : > { %v4809_v63 = vpop.f32.mrf.mxu1 }
 0x7a6   : > { %4821 = vmatmul.mubr.msk.bf16.vlgmr.msra.gmra.mxu1 %vm1585_vm2, %v3429_v62  ;;  %v3686_v32 = vsel %vm3685_vm14, %v3429_v62, 0 }
 0x7a7   : > { %4834 = vmatprep.mubr.msk.bf16.mxu1 %vm5190_vm0, %v5189_v1 }
 0x84d   : > { %v3085_v3 = vpop.f32.mrf.mxu0 }
 0x84e   : > { %v3086_v12 = vadd.f32 %v4463_v2, %v3085_v3 }
 0x84f   : > { %v4774_v13 = vpop.f32.mrf.mxu0 }
 0x850   : > { %3093 = vst.msk [vmem:[%s1535_s8] sm:$0xff] %vm3092_vm10, %v3086_v12 }
 0x851   : > { %v3088_v4 = vpop.f32.mrf.mxu0 }
 0x852   : > { %v3089_v5 = vadd.f32 %v4463_v2, %v3088_v4 }
 0x853   : > { %v4775_v6 = vpop.f32.mrf.mxu0 }
 0x854   : > { %3095 = vst.msk [vmem:[%s1535_s8 + $0x8] sm:$0x1] %vm3094_vm11, %v3089_v5  ;;  %s1543_s8 = scalar_lea.vmem %s5977_s17, %s5494_s11  ;;  %s5985_s11 = sld [smem:[#allocation39_spill]] }
 0x855   : > { %v5760_v7 = vpop.f32.mrf.mxu0 }
 0x857   : > { %v4786_v8 = vpop.f32.mrf.mxu0 }
 0x859   : > { %v5762_v9 = vpop.f32.mrf.mxu0 }
 0x85b   : > { %v4787_v10 = vpop.f32.mrf.mxu0 }
 0x85d   : > { %v3352_v14 = vpop.f32.mrf.mxu0 }
 0x85e   : > { %v3353_v15 = vadd.f32 %v3352_v14, %v3302_v11  ;;  %v3211_v14 = vmul.f32 0.17677669, %v5760_v7 }
 0x85f   : > { %v4800_v16 = vpop.f32.mrf.mxu0 }
 0x860   : > { %5037 = vtanh.f32 %v3353_v15  ;;  %v3212_v16 = vmul.f32 0.17677669, %v5762_v9 }
 0x861   : > { %v3355_v17 = vpop.f32.mrf.mxu0 }
 0x862   : > { %v3220_v21 = vadd.f32 %v3217_v57, %v3212_v16 }
 0x863   : > { %v4801_v18 = vpop.f32.mrf.mxu0 }
 0x864   : > { %v3219_v18 = vadd.f32 %v3217_v57, %v3211_v14 }
 0x866   : > { %v3539_v20 = vpop.f32.mrf.mxu1 }
 0x868   : > { %v4822_v22 = vpop.f32.mrf.mxu1 }
 0x869   : > { %v3225_v22 = vsel %vm3221_vm15, %v3220_v21, -inf }
 0x86a   : > { %v3542_v23 = vpop.f32.mrf.mxu1 }
 0x86c   : > { %v4823_v25 = vpop.f32.mrf.mxu1 }
 0x86d   : > { %v5038_v26 = vpop.eup %5037 }
 0x86e   : > { %v3362_v28 = vsel %vm3361_vm12, %v5038_v26, %v3353_v15  ;;  %v3430_v29 = vpack.c.bf16 %v5038_v26, %v5038_v26 }
 0x86f   : > { %3364 = vst.msk [vmem:[%s1543_s8] sm:$0x1] %vm3363_vm13, %v3362_v28  ;;  %s5983_s8 = sld [smem:[#allocation41_spill]] }
 0x870   : > { %4813 = vmatmul.mubr.msk.bf16.vlgmr.msra.gmra.mxu0 %vm2322_vm3, %v3430_v29 }
 0x871   : > { %4825 = vmatpush3.bf16.msra.mxu0 %v5006_v27  ;;  %4828 = vmatprep.mubr.msk.bf16.mxu0 %vm5190_vm0, %v5189_v1 }
 0x872   : > { %4826 = vmatprep.subr.bf16.mxu0 %v5189_v1 }
 0x875   : > { %4827 = vmatpush3.bf16.msra.mxu0 %v5007_v30  ;;  %v5009_v53 = vld [vmem:[%s5983_s8 + $0x8] sm:$0xff]   ;;  %v5010_v35 = vld [vmem:[%s5983_s8] sm:$0xff]   ;;  %s3913_s8 = scalar_lea.sflag [#allocation3], %s5667_s9 }
 0x876   : > { %4838 = vmatprep.subr.bf16.mxu0 %v5189_v1 }
 0x878   : > { %4829 = vmatmul.mubr.msk.bf16.vlgmr.msra.gmra.mxu0 %vm1585_vm2, %v3555_v31 }
 0x879   : > { %4839 = vmatpush3.bf16.msra.mxu0 %v3686_v32  ;;  %4840 = vmatprep.mubr.msk.bf16.mxu0 %vm5190_vm0, %v5189_v1 }
 0x87a   : > { %4850 = vmatprep.subr.bf16.mxu0 %v5189_v1 }
 0x930   : > { %v3480_v33 = vpop.f32.mrf.mxu0 }
 0x931   : > { %v3489_v34 = vrot.slane %v3480_v33, %v5655_v24 }
 0x932   : > { %v4814_v37 = vpop.f32.mrf.mxu0 }
 0x933   : > { %v3540_v38 = vadd.f32 %v3539_v20, %v3489_v34  ;;  %v3222_v20 = vsel %vm3221_vm15, %v3219_v18, -inf  ;;  %v5011_v37 = vld [vmem:[%s5985_s11 + $0x8] sm:$0xff]  }
 0x934   : > { %v3483_v39 = vpop.f32.mrf.mxu0 }
 0x935   : > { %v3552_v40 = vadd.f32 %v4484_v36, %v3540_v38  ;;  %v5012_v38 = vld [vmem:[%s5985_s11] sm:$0xff]   ;;  %s5051_s11 = scalar_lea.vmem %s3959_s3, 128 }
 0x936   : > { %v4815_v41 = vpop.f32.mrf.mxu0  ;;  %p5052_p11 = scmp.ne.s32.totalorder %s3959_s3, %s5051_s11 }
 0x937   : > { %v3553_v43 = vpack.c.bf16 %v3552_v40, %v3552_v40 }
 0x938   : > { %v3616_v44 = vpop.f32.mrf.mxu0  ;;  %p5053_p12 = pnand %p5052_p11, %p5472_p5 }
 0x939   : > { %v3617_v45 = vadd.f32 %v4485_v42, %v3616_v44  ;;  %v3628_v46 = vsel %vm1585_vm2, %v3553_v43, 0 }
 0x93a   : > { %v4830_v47 = vpop.f32.mrf.mxu0  ;;  %4833 = vmatpush3.bf16.xpose.msra.mxu1 %v3628_v46  ;;  %p5054_p13 = pneg %p5053_p12 }
 0x93b   : > { %v3622_v48 = vmax.f32 %v3617_v45, 0.0  ;;  %4844 = vmatprep.subr.bf16.mxu1 %v5189_v1 }
 0x93c   : > { %v3619_v49 = vpop.f32.mrf.mxu0 }
 0x93d   : > { %v3623_v50 = vpack.c.bf16 %v3622_v48, %v3622_v48 }
 0x93e   : > { %v4831_v51 = vpop.f32.mrf.mxu0 }
 0x941   : > { %4835 = vmatmul.mubr.msk.bf16.vlgmr.msra.gmra.mxu1 %vm1585_vm2, %v3623_v50 }
 0x942   : > { %4845 = vmatpush3.bf16.msra.mxu1 %v5008_v52  ;;  %4846 = vmatprep.mubr.msk.bf16.mxu1 %vm5190_vm0, %v5189_v1 }
 0x943   : > { %4858 = vmatprep.subr.bf16.mxu1 %v5189_v1 }
 0x949   : > { %4847 = vmatmul.mubr.msk.bf16.vlgmr.msra.gmra.mxu1 %vm2322_vm3, %v3430_v29 }
 0x94a   : > { %4859 = vmatpush3.bf16.msra.mxu1 %v5009_v53  ;;  %4862 = vmatprep.mubr.msk.bf16.mxu1 %vm5190_vm0, %v5189_v1 }
 0x94b   : > { %4860 = vmatprep.subr.bf16.mxu1 %v5189_v1 }
 0x94e   : > { %4861 = vmatpush3.bf16.msra.mxu1 %v5010_v35 }
 0x951   : > { %4863 = vmatmul.mubr.msk.bf16.vlgmr.msra.gmra.mxu1 %vm1585_vm2, %v3623_v50 }
 0xa01   : > { %v3664_v58 = vpop.f32.mrf.mxu1 }
 0xa02   : > { %v3665_v59 = vadd.f32 %v3664_v58, %v3217_v57 }
 0xa03   : > { %v4836_v60 = vpop.f32.mrf.mxu1 }
 0xa04   : > { %v3670_v61 = vsel %vm3221_vm15, %v3665_v59, -inf }
 0xa05   : > { %3671 = vmax.xlane.f32.xlu0 %v3670_v61  ;;  %v3667_v62 = vpop.f32.mrf.mxu1 }
 0xa07   : > { %v4837_v63 = vpop.f32.mrf.mxu1 }
 0xa09   : > { %v5802_v0 = vpop.f32.mrf.mxu1 }
 0xa0b   : > { %v4848_v2 = vpop.f32.mrf.mxu1 }
 0xa0d   : > { %v3781_v3 = vpop.f32.mrf.mxu1 }
 0xa0f   : > { %v4849_v12 = vpop.f32.mrf.mxu1 }
 0xa11   : > { %v5804_v13 = vpop.f32.mrf.mxu1 }
 0xa13   : > { %v4864_v4 = vpop.f32.mrf.mxu1 }
 0xa15   : > { %v3897_v5 = vpop.f32.mrf.mxu1 }
 0xa17   : > { %v4865_v6 = vpop.f32.mrf.mxu1 }
 0xa8e   : > { %v3672_v8 = vpop.xlane.xlu0 %3671 }
 0xa8f   : > { %v3673_v10 = vsub.f32 %v3665_v59, %v3672_v8 }
 0xa91   : > { %v3674_v11 = vmul.f32 1.442695, %v3673_v10 }
 0xa93   : > { %5039 = vpow2.f32 %v3674_v11 }
 0xaa0   : > { %v5040_v15 = vpop.eup %5039 }
 0xaa1   : > { %v3676_v17 = vsel %vm3221_vm15, %v5040_v15, 0.0 }
 0xaa2   : > { %3677 = vadd.xlane.f32.xlu0 %v3676_v17 }
 0xaa6   : > { %3223 = vmax.xlane.f32.xlu0 %v3222_v20 }
 0xaaa   : > { %3226 = vmax.xlane.f32.xlu0 %v3225_v22 }
 0xb2b   : > { %v3678_v23 = vpop.xlane.xlu0 %3677 }
 0xb2c   : > { %5041 = vrcp.f32 %v3678_v23 }
 0xb2f   : > { %v3224_v25 = vpop.xlane.xlu0 %3223 }
 0xb30   : > { %v3228_v26 = vsub.f32 %v3219_v18, %v3224_v25 }
 0xb32   : > { %v3230_v7 = vmul.f32 1.442695, %v3228_v26 }
 0xb33   : > { %v3227_v27 = vpop.xlane.xlu0 %3226 }
 0xb34   : > { %5043 = vpow2.f32 %v3230_v7  ;;  %v3229_v9 = vsub.f32 %v3220_v21, %v3227_v27 }
 0xb36   : > { %v3232_v28 = vmul.f32 1.442695, %v3229_v9 }
 0xb38   : > { %5045 = vpow2.f32 %v3232_v28 }
 0xb39   : > { %v5042_v29 = vpop.eup %5041 }
 0xb3a   : > { %v3680_v30 = vmul.f32 %v5042_v29, %v5040_v15 }
 0xb3c   : > { %v3681_v19 = vpack.c.bf16 %v3680_v30, %v3680_v30  ;;  %3911 = vst.msk [vmem:[%s5813_s4] sm:$0xff] %vm3221_vm15, %v3680_v30  ;;  %v3728_v36 = vsel %vm3221_vm15, %v3680_v30, 0.0 }
 0xb3e   : > { %4841 = vmatmul.mubr.msk.bf16.vlgmr.msra.gmra.mxu0 %vm3221_vm15, %v3681_v19 }
 0xb3f   : > { %4854 = vmatprep.mubr.msk.bf16.mxu0 %vm5190_vm0, %v5189_v1  ;;  %4851 = vmatpush3.bf16.msra.mxu0 %v5011_v37 }
 0xb40   : > { %4852 = vmatprep.subr.bf16.mxu0 %v5189_v1 }
 0xb41   : > { %v5044_v31 = vpop.eup %5043 }
 0xb42   : > { %v3234_v32 = vsel %vm3221_vm15, %v5044_v31, 0.0 }
 0xb43   : > { %3235 = vadd.xlane.f32.xlu1 %v3234_v32  ;;  %4853 = vmatpush3.bf16.msra.mxu0 %v5012_v38 }
 0xb45   : > { %v5046_v33 = vpop.eup %5045 }
 0xb46   : > { %v3237_v34 = vsel %vm3221_vm15, %v5046_v33, 0.0 }
 0xb47   : > { %3238 = vadd.xlane.f32.xlu0 %v3237_v34 }
 0xb4b   : > { %3729 = vadd.xlane.f32.xlu0 %v3728_v36 }
 0xbcc   : > { %v3236_v39 = vpop.xlane.xlu1 %3235 }
 0xbcd   : > { %5047 = vrcp.f32 %v3236_v39 }
 0xbd0   : > { %v3239_v40 = vpop.xlane.xlu0 %3238 }
 0xbd1   : > { %5049 = vrcp.f32 %v3239_v40 }
 0xbda   : > { %v5048_v41 = vpop.eup %5047 }
 0xbdb   : > { %v3241_v42 = vmul.f32 %v5048_v41, %v5044_v31 }
 0xbdd   : > { %3244 = vst.msk [vmem:[%s1548_s13] sm:$0xff] %vm3221_vm15, %v3241_v42 }
 0xbde   : > { %v5050_v43 = vpop.eup %5049 }
 0xbdf   : > { %v3243_v44 = vmul.f32 %v5050_v43, %v5046_v33 }
 0xbe1   : > { %3245 = vst.msk [vmem:[%s1548_s13 + $0x8] sm:$0xff] %vm3221_vm15, %v3243_v44  ;;  %s5055_s13 = sshll.u32 %s5192_s14, 4  ;;  %s5056_s13 = int_to_ptr.vmem [resolvable:$false] %s5055_s13 }
 0xbe2   : > { %s5057_s17 = scalar_lea.vmem %s5056_s13, 256  ;;  %p5058_p0 = scmp.lt.s32.totalorder %s3959_s3, %s5056_s13 }
 0xbe3   : > { %p5059_p1 = scmp.lt.s32.totalorder %s5057_s17, %s5051_s11 }
 0xbe5   : > { %p5060_p2 = por %p5059_p1, %p5058_p0 }
 0xbe7   : > { %p5061_p3 = pnand %p5060_p2, %p5054_p13 }
 0xbfe   : > { %v3722_v1 = vpop.f32.mrf.mxu0 }
 0xbff   : > { %v3731_v45 = vpack.c.bf16 %v3722_v1, %v3722_v1 }
 0xc00   : > { %v4842_v46 = vpop.f32.mrf.mxu0 }
 0xc01   : > { %4855 = vmatmul.mubr.msk.bf16.vlgmr.msra.gmra.mxu0 %vm1585_vm2, %v3731_v45 }
 0xc02   : > { %v3725_v47 = vpop.f32.mrf.mxu0 }
 0xc04   : > { %v4843_v48 = vpop.f32.mrf.mxu0 }
 0xc05   : > { %5064 = shalt.err (!%p5061_p3)
}
 0xc06   : > { %s5065_s19 = scalar_lea.hbm %s3956_s1, 128  ;;  %s5069_s5 = scalar_lea.hbm %s5987_s6, 256 }
 0xc07   : > { %p5066_p4 = scmp.ne.s32.totalorder %s3956_s1, %s5065_s19  ;;  %p5070_p9 = scmp.lt.s32.totalorder %s3956_s1, %s5987_s6 }
 0xc08   : > { %p5071_p10 = scmp.lt.s32.totalorder %s5069_s5, %s5065_s19 }
 0xc09   : > { %p5067_p7 = pnand %p5066_p4, %p5472_p5 }
 0xc0a   : > { %p5072_p11 = por %p5071_p10, %p5070_p9 }
 0xc0b   : > { %p5068_p8 = pneg %p5067_p7 }
 0xc0d   : > { %p5073_p12 = pnand %p5072_p11, %p5068_p8 }
 0xc0f   : > { %5076 = shalt.err (!%p5073_p12)
}
 0xc10   : > { %4866 = dma.vmem_to_hbm [thread:$0]  (%p5472_p5), %s3959_s3, 128, %s3956_s1, %s3913_s8  }
 0xc11   : > { %s3987_s17 = scalar_lea.hbm %s5432_s29, %s4502_s12  ;;  %s3989_s14 = sshll.u32 %s5813_s4, 4  ;;  %s3990_s14 = int_to_ptr.vmem [resolvable:$true] %s3989_s14 }
 0xc12   : > { %s3945_s11 = scalar_lea.sflag [#allocation5], %s5667_s9  ;;  %s5077_s13 = scalar_lea.vmem %s3990_s14, 128 }
 0xc13   : > { %p5078_p13 = scmp.ne.s32.totalorder %s3990_s14, %s5077_s13  ;;  %s5193_s19 = smov [#allocation4]  }
 0xc14   : > { %s5081_s5 = sshll.u32 %s5193_s19, 4  ;;  %s5082_s5 = int_to_ptr.vmem [resolvable:$false] %s5081_s5 }
 0xc15   : > { %p5079_p0 = pnand %p5078_p13, %p5472_p5  ;;  %s5083_s6 = scalar_lea.vmem %s5082_s5, 256 }
 0xc16   : > { %p5084_p2 = scmp.lt.s32.totalorder %s3990_s14, %s5082_s5  ;;  %p5085_p3 = scmp.lt.s32.totalorder %s5083_s6, %s5077_s13 }
 0xc17   : > { %p5080_p1 = pneg %p5079_p0 }
 0xc18   : > { %p5086_p4 = por %p5085_p3, %p5084_p2 }
 0xc1a   : > { %p5087_p7 = pnand %p5086_p4, %p5080_p1 }
 0xc1c   : > { %5090 = shalt.err (!%p5087_p7)
}
 0xc1d   : > { %s5091_s3 = scalar_lea.hbm %s3987_s17, 128  ;;  %s5095_s9 = scalar_lea.hbm %s5432_s29, 256 }
 0xc1e   : > { %p5092_p8 = scmp.ne.s32.totalorder %s3987_s17, %s5091_s3  ;;  %p5096_p11 = scmp.lt.s32.totalorder %s3987_s17, %s5432_s29 }
 0xc1f   : > { %p5097_p12 = scmp.lt.s32.totalorder %s5095_s9, %s5091_s3 }
 0xc20   : > { %p5093_p9 = pnand %p5092_p8, %p5472_p5 }
 0xc21   : > { %p5098_p13 = por %p5097_p12, %p5096_p11 }
 0xc22   : > { %p5094_p10 = pneg %p5093_p9 }
 0xc24   : > { %p5099_p0 = pnand %p5098_p13, %p5094_p10 }
 0xc26   : > { %5102 = shalt.err (!%p5099_p0)
}
 0xc27   : > { %s5988_s0 = sld [smem:[#allocation42_spill]]  ;;  %v3730_v49 = vpop.xlane.xlu0 %3729  ;;  %v3787_v50 = vrot.slane %v5802_v0, %v5655_v24  ;;  %s1552_s8 = scalar_lea.vmem %s5427_s21, %s5499_s23  ;;  %vm3909_vm0 = vcmask 269312  }
 0xc28   : > { %4867 = dma.vmem_to_hbm [thread:$0]  (%p5472_p5), %s3990_s14, 128, %s3987_s17, %s3945_s11  }
 0xc29   : > { %v3788_v51 = vmul.f32 %v3787_v50, %v3730_v49 }
 0xc2d   : > { %v4499_v35 = vld [vmem:[%s5988_s0] ss:$0 sm:$0xff] }
 0xcc1   : > { %v3838_v52 = vpop.f32.mrf.mxu0 }
 0xcc2   : > { %v3839_v53 = vadd.f32 %v3838_v52, %v3788_v51 }
 0xcc3   : > { %v4856_v54 = vpop.f32.mrf.mxu0 }
 0xcc4   : > { %v3900_v55 = vadd.f32 %v5804_v13, %v3839_v53 }
 0xcc5   : > { %v3841_v56 = vpop.f32.mrf.mxu0 }
 0xcc6   : > { %v3908_v57 = vadd.f32 %v4499_v35, %v3900_v55 }
 0xcc7   : > { %v4857_v58 = vpop.f32.mrf.mxu0 }
 0xcc8   : > { %3910 = vst.msk [vmem:[%s1552_s8] sm:$0xff] %vm3909_vm0, %v3908_v57 }
 0xcc9 PF: > { %p4877_p5 = scmp.ge.s32.totalorder %s5141_s22, 2  ;;  %s4001_s7 = sand.u32 1, %s5129_s15  }
 0xcca   : > { %s4002_s4 = scalar_lea.sflag [#allocation3], %s4001_s7 }
 0xccb   : > { %p4871_p1 = pnand %p4877_p5, %p5476_p6 }
 0xccd   : > { %p4872_p2 = pneg %p4871_p1 }
 0xccf   : > { %5120 = dma.done.wait (%p4872_p2), %s4002_s4, 128  }
 0xcd0   : > { %5122 = vsyncadd (%p4872_p2), %s4002_s4, 4294967168  ;;  %s4056_s6 = scalar_lea.sflag [#allocation5], %s4001_s7 }
 0xcd1   : > { %5124 = dma.done.wait (%p4872_p2), %s4056_s6, 128  }
 0xcd2   : > { %5126 = vsyncadd (%p4872_p2), %s4056_s6, 4294967168  ;;  %p107_p3 = scmp.ge.s32.totalorder %s5459_s26, 4   ;;  %s5989_s15 = smov %s5133_s16 }
 0xcd3   : > { %s5990_s16 = smov %s5137_s18  ;;  %s5991_s18 = smov %s5470_s2 }
 0xcd4   : > { %s5992_s22 = smov %s5459_s26  ;;  %109 = sbr.rel (!%p107_p3) target bundleno = 99 (0x63), region = 376 }
 0xcd9   :  { %4061 = vsyncpa [#allocation3], 1 }
 0xcda   :  { %4063 = vsyncpa [#allocation3 + $0x1], 1 }
 0xcdb   :  { %4064 = vsyncpa [#allocation5], 1 }
 0xcdc   :  { %4066 = vsyncpa [#allocation5 + $0x1], 1 }

</bundles_post_ra>
